<compile_context>
chip_gen: v7x
topology: tpu7x:2x2x1
jax: 0.10.0
libtpu: 0.0.40
codegen_flags: <defaults>
</compile_context>

<pallas_src>
import jax
import jax.numpy as jnp
from jax.experimental import pallas as pl
from jax.experimental.pallas import tpu as pltpu

# Layer widths of the PyTorch AutoEncoder.
ENC_DIMS = [784, 128, 64, 16, 2]
DEC_DIMS = [2, 16, 64, 128, 784]

TB = 128        # batch tile: fills the MXU M dimension (128 rows)
CODE_PAD = 128  # lane-dense padding for the 2-wide code vector


def _autoencoder_kernel(x_ref,
                        ew0, eb0, ew1, eb1, ew2, eb2, ew3, eb3,   # encoder
                        dw0, db0, dw1, db1, dw2, db2, dw3, db3,   # decoder
                        codes_ref, decoded_ref):
    """One (TB, 784) batch tile through the whole encoder+decoder MLP."""
    f32 = jnp.float32
    bf16 = jnp.bfloat16

    def dense(h, w_ref, b_ref):
        # bf16 MXU operands, f32 accumulation; bias add / activations stay f32
        # (v5e has no bf16 VALU/EUP, so elementwise math must remain f32).
        return jnp.dot(h.astype(bf16), w_ref[...],
                       preferred_element_type=f32) + b_ref[...]

    # ---- encoder: Linear->Tanh x3, then Linear (no activation on codes) ----
    h = x_ref[...].astype(f32)
    h = jnp.tanh(dense(h, ew0, eb0))
    h = jnp.tanh(dense(h, ew1, eb1))
    h = jnp.tanh(dense(h, ew2, eb2))
    codes = dense(h, ew3, eb3)                 # (TB, CODE_PAD); cols >= 2 are exactly 0
    codes_ref[...] = codes.astype(codes_ref.dtype)   # lane-dense (128-wide) store

    # ---- decoder: Linear->Tanh x3, then Linear->Sigmoid ----
    d = jnp.tanh(dense(codes, dw0, db0))       # padded rows of dw0 are 0 -> same math
    d = jnp.tanh(dense(d, dw1, db1))
    d = jnp.tanh(dense(d, dw2, db2))
    decoded_ref[...] = jax.nn.sigmoid(dense(d, dw3, db3)).astype(decoded_ref.dtype)


def init_params(key):
    """Deterministic PyTorch-style (uniform +-1/sqrt(fan_in)) init.

    Returns weights already transposed to (in, out) and biases as (1, out), f32.
    """
    params = []
    for dims in (ENC_DIMS, DEC_DIMS):
        for fan_in, fan_out in zip(dims[:-1], dims[1:]):
            key, kw, kb = jax.random.split(key, 3)
            bound = 1.0 / (fan_in ** 0.5)
            w = jax.random.uniform(kw, (fan_in, fan_out), jnp.float32,
                                   minval=-bound, maxval=bound)
            b = jax.random.uniform(kb, (1, fan_out), jnp.float32,
                                   minval=-bound, maxval=bound)
            params += [w, b]
    return params


def _prepare_params(params):
    """Pad the 2-wide code dim to CODE_PAD lanes and cast weights to bf16."""
    ps = list(params)
    # Zero-padding keeps the math identical: padded output cols are 0 and the
    # padded decoder rows multiply those zeros.
    ps[6] = jnp.pad(ps[6], ((0, 0), (0, CODE_PAD - ps[6].shape[1])))   # ew3: (16,2)->(16,128)
    ps[7] = jnp.pad(ps[7], ((0, 0), (0, CODE_PAD - ps[7].shape[1])))   # eb3: (1,2)->(1,128)
    ps[8] = jnp.pad(ps[8], ((0, CODE_PAD - ps[8].shape[0]), (0, 0)))   # dw0: (2,16)->(128,16)
    # Weights (even slots) become bf16 MXU operands; biases stay f32.
    return [p.astype(jnp.bfloat16) if i % 2 == 0 else p.astype(jnp.float32)
            for i, p in enumerate(ps)]


@jax.jit
def autoencoder_forward(x, *params):
    B = x.shape[0]
    prepped = _prepare_params(params)

    # Pad batch to a multiple of the tile so the grid is exact; slice afterwards.
    b_pad = ((B + TB - 1) // TB) * TB
    x_pad = jnp.pad(x, ((0, b_pad - B), (0, 0))) if b_pad != B else x
    grid = (b_pad // TB,)

    weight_bytes = sum(int(p.size) * p.dtype.itemsize for p in prepped)
    flops = 2 * b_pad * sum(int(prepped[i].shape[0]) * int(prepped[i].shape[1])
                            for i in range(0, len(prepped), 2))
    transcendentals = b_pad * (128 + 64 + 16 + 16 + 64 + 128 + 784)  # tanh x6 + sigmoid
    bytes_accessed = (weight_bytes + int(x_pad.size) * 4
                      + b_pad * (CODE_PAD + DEC_DIMS[-1]) * 4)

    def batch_tile(d):
        return pl.BlockSpec((TB, d), lambda i: (i, 0))

    def resident(p):          # weights/biases: same block every step -> VMEM-resident
        return pl.BlockSpec(p.shape, lambda i: (0, 0))

    codes_pad, decoded = pl.pallas_call(
        _autoencoder_kernel,
        out_shape=(
            jax.ShapeDtypeStruct((b_pad, CODE_PAD), jnp.float32),     # padded codes
            jax.ShapeDtypeStruct((b_pad, DEC_DIMS[-1]), jnp.float32), # decoded
        ),
        grid=grid,
        in_specs=[batch_tile(ENC_DIMS[0])] + [resident(p) for p in prepped],
        out_specs=(batch_tile(CODE_PAD), batch_tile(DEC_DIMS[-1])),
        compiler_params=pltpu.CompilerParams(
            dimension_semantics=("parallel",)),   # megacore sharding on v7x
        cost_estimate=pl.CostEstimate(flops=flops,
                                      transcendentals=transcendentals,
                                      bytes_accessed=bytes_accessed),
    )(x_pad, *prepped)

    return codes_pad[:B, :ENC_DIMS[-1]], decoded[:B]


def reference_forward_f32(x, *params):
    """Pure-f32 JAX reference matching the PyTorch module exactly."""
    enc, dec = params[:8], params[8:]
    h = x
    for i in range(0, 6, 2):
        h = jnp.tanh(h @ enc[i] + enc[i + 1])
    codes = h @ enc[6] + enc[7]
    d = codes
    for i in range(0, 6, 2):
        d = jnp.tanh(d @ dec[i] + dec[i + 1])
    decoded = jax.nn.sigmoid(d @ dec[6] + dec[7])
    return codes, decoded


def reference_forward_bf16(x, *params):
    """Reference mimicking the kernel's bf16-operand / f32-accumulate matmuls."""
    def dense(h, w, b):
        return jnp.dot(h.astype(jnp.bfloat16), w.astype(jnp.bfloat16),
                       preferred_element_type=jnp.float32) + b
    enc, dec = params[:8], params[8:]
    h = x
    for i in range(0, 6, 2):
        h = jnp.tanh(dense(h, enc[i], enc[i + 1]))
    codes = dense(h, enc[6], enc[7])
    d = codes
    for i in range(0, 6, 2):
        d = jnp.tanh(dense(d, dec[i], dec[i + 1]))
    decoded = jax.nn.sigmoid(dense(d, dec[6], dec[7]))
    return codes, decoded


if __name__ == "__main__":
    key = jax.random.PRNGKey(0)
    key, kx = jax.random.split(key)

    B = 8  # small demo batch (padded to TB=128 inside the wrapper)
    x = jax.random.normal(kx, (B, 784), jnp.float32)
    params = init_params(key)

    codes, decoded = autoencoder_forward(x, *params)
    jax.block_until_ready((codes, decoded))

    assert codes.shape == (B, 2) and decoded.shape == (B, 784)

    # Tight check vs a reference with the same bf16-operand matmuls.
    ref_codes_bf, ref_dec_bf = reference_forward_bf16(x, *params)
    assert jnp.allclose(codes, ref_codes_bf, atol=2e-3, rtol=2e-3)
    assert jnp.allclose(decoded, ref_dec_bf, atol=2e-3, rtol=2e-3)

    # Loose check vs the exact f32 PyTorch semantics (bf16 operand rounding).
    ref_codes, ref_decoded = reference_forward_f32(x, *params)
    assert jnp.allclose(codes, ref_codes, atol=3e-2, rtol=3e-2)
    assert jnp.allclose(decoded, ref_decoded, atol=3e-2, rtol=3e-2)

    print("KERNEL_OK")
</pallas_src>

<mosaic_0001>
module attributes {stable_mosaic.version = 11 : i64} {
  func.func @_autoencoder_kernel(%arg0: i32, %arg1: memref<128x784xf32, #tpu.memory_space<vmem>>, %arg2: memref<784x128xbf16, #tpu.memory_space<vmem>>, %arg3: memref<1x128xf32, #tpu.memory_space<vmem>>, %arg4: memref<128x64xbf16, #tpu.memory_space<vmem>>, %arg5: memref<1x64xf32, #tpu.memory_space<vmem>>, %arg6: memref<64x16xbf16, #tpu.memory_space<vmem>>, %arg7: memref<1x16xf32, #tpu.memory_space<vmem>>, %arg8: memref<16x128xbf16, #tpu.memory_space<vmem>>, %arg9: memref<1x128xf32, #tpu.memory_space<vmem>>, %arg10: memref<128x16xbf16, #tpu.memory_space<vmem>>, %arg11: memref<1x16xf32, #tpu.memory_space<vmem>>, %arg12: memref<16x64xbf16, #tpu.memory_space<vmem>>, %arg13: memref<1x64xf32, #tpu.memory_space<vmem>>, %arg14: memref<64x128xbf16, #tpu.memory_space<vmem>>, %arg15: memref<1x128xf32, #tpu.memory_space<vmem>>, %arg16: memref<128x784xbf16, #tpu.memory_space<vmem>>, %arg17: memref<1x784xf32, #tpu.memory_space<vmem>>, %arg18: memref<128x128xf32, #tpu.memory_space<vmem>>, %arg19: memref<128x784xf32, #tpu.memory_space<vmem>>) attributes {dimension_semantics = [#tpu.dimension_semantics<parallel>], iteration_bounds = array<i64: 1>, scalar_prefetch = 0 : i64, scratch_operands = 0 : i64, tpu.core_type = #tpu.core_type<tc>, window_params = [{transform_indices = @transform_0, window_bounds = array<i64: 128, 784>}, {pipeline_mode = #tpu.pipeline_mode<synchronous>, transform_indices = @transform_1, window_bounds = array<i64: 784, 128>}, {pipeline_mode = #tpu.pipeline_mode<synchronous>, transform_indices = @transform_2, window_bounds = array<i64: 1, 128>}, {pipeline_mode = #tpu.pipeline_mode<synchronous>, transform_indices = @transform_3, window_bounds = array<i64: 128, 64>}, {pipeline_mode = #tpu.pipeline_mode<synchronous>, transform_indices = @transform_4, window_bounds = array<i64: 1, 64>}, {pipeline_mode = #tpu.pipeline_mode<synchronous>, transform_indices = @transform_5, window_bounds = array<i64: 64, 16>}, {pipeline_mode = #tpu.pipeline_mode<synchronous>, transform_indices = @transform_6, window_bounds = array<i64: 1, 16>}, {pipeline_mode = #tpu.pipeline_mode<synchronous>, transform_indices = @transform_7, window_bounds = array<i64: 16, 128>}, {pipeline_mode = #tpu.pipeline_mode<synchronous>, transform_indices = @transform_8, window_bounds = array<i64: 1, 128>}, {pipeline_mode = #tpu.pipeline_mode<synchronous>, transform_indices = @transform_9, window_bounds = array<i64: 128, 16>}, {pipeline_mode = #tpu.pipeline_mode<synchronous>, transform_indices = @transform_10, window_bounds = array<i64: 1, 16>}, {pipeline_mode = #tpu.pipeline_mode<synchronous>, transform_indices = @transform_11, window_bounds = array<i64: 16, 64>}, {pipeline_mode = #tpu.pipeline_mode<synchronous>, transform_indices = @transform_12, window_bounds = array<i64: 1, 64>}, {pipeline_mode = #tpu.pipeline_mode<synchronous>, transform_indices = @transform_13, window_bounds = array<i64: 64, 128>}, {pipeline_mode = #tpu.pipeline_mode<synchronous>, transform_indices = @transform_14, window_bounds = array<i64: 1, 128>}, {pipeline_mode = #tpu.pipeline_mode<synchronous>, transform_indices = @transform_15, window_bounds = array<i64: 128, 784>}, {pipeline_mode = #tpu.pipeline_mode<synchronous>, transform_indices = @transform_16, window_bounds = array<i64: 1, 784>}, {transform_indices = @transform_17, window_bounds = array<i64: 128, 128>}, {transform_indices = @transform_18, window_bounds = array<i64: 128, 784>}]} {
    %c0 = arith.constant 0 : index
    %c0_0 = arith.constant 0 : index
    %0 = vector.load %arg1[%c0, %c0_0] : memref<128x784xf32, #tpu.memory_space<vmem>>, vector<128x784xf32>
    %1 = arith.truncf %0 : vector<128x784xf32> to vector<128x784xbf16>
    %c0_1 = arith.constant 0 : index
    %c0_2 = arith.constant 0 : index
    %2 = vector.load %arg2[%c0_1, %c0_2] : memref<784x128xbf16, #tpu.memory_space<vmem>>, vector<784x128xbf16>
    %cst = arith.constant dense<0.000000e+00> : vector<128x128xf32>
    %3 = tpu.matmul %1, %2, %cst {dimension_numbers = #tpu.dot_dimension_numbers<[1], [0], [0], [1], [0, 0, 1, 1], [], []>} : vector<128x784xbf16>, vector<784x128xbf16>, vector<128x128xf32> -> vector<128x128xf32>
    %c0_3 = arith.constant 0 : index
    %c0_4 = arith.constant 0 : index
    %4 = vector.load %arg3[%c0_3, %c0_4] : memref<1x128xf32, #tpu.memory_space<vmem>>, vector<1x128xf32>
    %5 = vector.broadcast %4 : vector<1x128xf32> to vector<128x128xf32>
    %6 = arith.addf %3, %5 : vector<128x128xf32>
    %7 = math.tanh %6 : vector<128x128xf32>
    %8 = arith.truncf %7 : vector<128x128xf32> to vector<128x128xbf16>
    %c0_5 = arith.constant 0 : index
    %c0_6 = arith.constant 0 : index
    %9 = vector.load %arg4[%c0_5, %c0_6] : memref<128x64xbf16, #tpu.memory_space<vmem>>, vector<128x64xbf16>
    %cst_7 = arith.constant dense<0.000000e+00> : vector<128x64xf32>
    %10 = tpu.matmul %8, %9, %cst_7 {dimension_numbers = #tpu.dot_dimension_numbers<[1], [0], [0], [1], [0, 0, 1, 1], [], []>} : vector<128x128xbf16>, vector<128x64xbf16>, vector<128x64xf32> -> vector<128x64xf32>
    %c0_8 = arith.constant 0 : index
    %c0_9 = arith.constant 0 : index
    %11 = vector.load %arg5[%c0_8, %c0_9] : memref<1x64xf32, #tpu.memory_space<vmem>>, vector<1x64xf32>
    %12 = vector.broadcast %11 : vector<1x64xf32> to vector<128x64xf32>
    %13 = arith.addf %10, %12 : vector<128x64xf32>
    %14 = math.tanh %13 : vector<128x64xf32>
    %15 = arith.truncf %14 : vector<128x64xf32> to vector<128x64xbf16>
    %c0_10 = arith.constant 0 : index
    %c0_11 = arith.constant 0 : index
    %16 = vector.load %arg6[%c0_10, %c0_11] : memref<64x16xbf16, #tpu.memory_space<vmem>>, vector<64x16xbf16>
    %cst_12 = arith.constant dense<0.000000e+00> : vector<128x16xf32>
    %17 = tpu.matmul %15, %16, %cst_12 {dimension_numbers = #tpu.dot_dimension_numbers<[1], [0], [0], [1], [0, 0, 1, 1], [], []>} : vector<128x64xbf16>, vector<64x16xbf16>, vector<128x16xf32> -> vector<128x16xf32>
    %c0_13 = arith.constant 0 : index
    %c0_14 = arith.constant 0 : index
    %18 = vector.load %arg7[%c0_13, %c0_14] : memref<1x16xf32, #tpu.memory_space<vmem>>, vector<1x16xf32>
    %19 = vector.broadcast %18 : vector<1x16xf32> to vector<128x16xf32>
    %20 = arith.addf %17, %19 : vector<128x16xf32>
    %21 = math.tanh %20 : vector<128x16xf32>
    %22 = arith.truncf %21 : vector<128x16xf32> to vector<128x16xbf16>
    %c0_15 = arith.constant 0 : index
    %c0_16 = arith.constant 0 : index
    %23 = vector.load %arg8[%c0_15, %c0_16] : memref<16x128xbf16, #tpu.memory_space<vmem>>, vector<16x128xbf16>
    %cst_17 = arith.constant dense<0.000000e+00> : vector<128x128xf32>
    %24 = tpu.matmul %22, %23, %cst_17 {dimension_numbers = #tpu.dot_dimension_numbers<[1], [0], [0], [1], [0, 0, 1, 1], [], []>} : vector<128x16xbf16>, vector<16x128xbf16>, vector<128x128xf32> -> vector<128x128xf32>
    %c0_18 = arith.constant 0 : index
    %c0_19 = arith.constant 0 : index
    %25 = vector.load %arg9[%c0_18, %c0_19] : memref<1x128xf32, #tpu.memory_space<vmem>>, vector<1x128xf32>
    %26 = vector.broadcast %25 : vector<1x128xf32> to vector<128x128xf32>
    %27 = arith.addf %24, %26 : vector<128x128xf32>
    %c0_20 = arith.constant 0 : index
    %c0_21 = arith.constant 0 : index
    %28 = vector.load %arg18[%c0_20, %c0_21] : memref<128x128xf32, #tpu.memory_space<vmem>>, vector<128x128xf32>
    tpu.vector_store %arg18[%c0_20, %c0_21], %27 {strides = array<i32>} : memref<128x128xf32, #tpu.memory_space<vmem>>, vector<128x128xf32>,
    %29 = arith.truncf %27 : vector<128x128xf32> to vector<128x128xbf16>
    %c0_22 = arith.constant 0 : index
    %c0_23 = arith.constant 0 : index
    %30 = vector.load %arg10[%c0_22, %c0_23] : memref<128x16xbf16, #tpu.memory_space<vmem>>, vector<128x16xbf16>
    %cst_24 = arith.constant dense<0.000000e+00> : vector<128x16xf32>
    %31 = tpu.matmul %29, %30, %cst_24 {dimension_numbers = #tpu.dot_dimension_numbers<[1], [0], [0], [1], [0, 0, 1, 1], [], []>} : vector<128x128xbf16>, vector<128x16xbf16>, vector<128x16xf32> -> vector<128x16xf32>
    %c0_25 = arith.constant 0 : index
    %c0_26 = arith.constant 0 : index
    %32 = vector.load %arg11[%c0_25, %c0_26] : memref<1x16xf32, #tpu.memory_space<vmem>>, vector<1x16xf32>
    %33 = vector.broadcast %32 : vector<1x16xf32> to vector<128x16xf32>
    %34 = arith.addf %31, %33 : vector<128x16xf32>
    %35 = math.tanh %34 : vector<128x16xf32>
    %36 = arith.truncf %35 : vector<128x16xf32> to vector<128x16xbf16>
    %c0_27 = arith.constant 0 : index
    %c0_28 = arith.constant 0 : index
    %37 = vector.load %arg12[%c0_27, %c0_28] : memref<16x64xbf16, #tpu.memory_space<vmem>>, vector<16x64xbf16>
    %cst_29 = arith.constant dense<0.000000e+00> : vector<128x64xf32>
    %38 = tpu.matmul %36, %37, %cst_29 {dimension_numbers = #tpu.dot_dimension_numbers<[1], [0], [0], [1], [0, 0, 1, 1], [], []>} : vector<128x16xbf16>, vector<16x64xbf16>, vector<128x64xf32> -> vector<128x64xf32>
    %c0_30 = arith.constant 0 : index
    %c0_31 = arith.constant 0 : index
    %39 = vector.load %arg13[%c0_30, %c0_31] : memref<1x64xf32, #tpu.memory_space<vmem>>, vector<1x64xf32>
    %40 = vector.broadcast %39 : vector<1x64xf32> to vector<128x64xf32>
    %41 = arith.addf %38, %40 : vector<128x64xf32>
    %42 = math.tanh %41 : vector<128x64xf32>
    %43 = arith.truncf %42 : vector<128x64xf32> to vector<128x64xbf16>
    %c0_32 = arith.constant 0 : index
    %c0_33 = arith.constant 0 : index
    %44 = vector.load %arg14[%c0_32, %c0_33] : memref<64x128xbf16, #tpu.memory_space<vmem>>, vector<64x128xbf16>
    %cst_34 = arith.constant dense<0.000000e+00> : vector<128x128xf32>
    %45 = tpu.matmul %43, %44, %cst_34 {dimension_numbers = #tpu.dot_dimension_numbers<[1], [0], [0], [1], [0, 0, 1, 1], [], []>} : vector<128x64xbf16>, vector<64x128xbf16>, vector<128x128xf32> -> vector<128x128xf32>
    %c0_35 = arith.constant 0 : index
    %c0_36 = arith.constant 0 : index
    %46 = vector.load %arg15[%c0_35, %c0_36] : memref<1x128xf32, #tpu.memory_space<vmem>>, vector<1x128xf32>
    %47 = vector.broadcast %46 : vector<1x128xf32> to vector<128x128xf32>
    %48 = arith.addf %45, %47 : vector<128x128xf32>
    %49 = math.tanh %48 : vector<128x128xf32>
    %50 = arith.truncf %49 : vector<128x128xf32> to vector<128x128xbf16>
    %c0_37 = arith.constant 0 : index
    %c0_38 = arith.constant 0 : index
    %51 = vector.load %arg16[%c0_37, %c0_38] : memref<128x784xbf16, #tpu.memory_space<vmem>>, vector<128x784xbf16>
    %cst_39 = arith.constant dense<0.000000e+00> : vector<128x784xf32>
    %52 = tpu.matmul %50, %51, %cst_39 {dimension_numbers = #tpu.dot_dimension_numbers<[1], [0], [0], [1], [0, 0, 1, 1], [], []>} : vector<128x128xbf16>, vector<128x784xbf16>, vector<128x784xf32> -> vector<128x784xf32>
    %c0_40 = arith.constant 0 : index
    %c0_41 = arith.constant 0 : index
    %53 = vector.load %arg17[%c0_40, %c0_41] : memref<1x784xf32, #tpu.memory_space<vmem>>, vector<1x784xf32>
    %54 = vector.broadcast %53 : vector<1x784xf32> to vector<128x784xf32>
    %55 = arith.addf %52, %54 : vector<128x784xf32>
    %56 = arith.negf %55 : vector<128x784xf32>
    %57 = math.exp %56 : vector<128x784xf32>
    %cst_42 = arith.constant 1.000000e+00 : f32
    %58 = vector.broadcast %cst_42 : f32 to vector<128x784xf32>
    %59 = arith.addf %58, %57 : vector<128x784xf32>
    %60 = arith.divf %58, %59 : vector<128x784xf32>
    %c0_43 = arith.constant 0 : index
    %c0_44 = arith.constant 0 : index
    %61 = vector.load %arg19[%c0_43, %c0_44] : memref<128x784xf32, #tpu.memory_space<vmem>>, vector<128x784xf32>
    tpu.vector_store %arg19[%c0_43, %c0_44], %60 {strides = array<i32>} : memref<128x784xf32, #tpu.memory_space<vmem>>, vector<128x784xf32>,
    return
  }
  func.func @transform_0(%arg0: i32) -> (i32, i32) {
    %c0_i32 = arith.constant 0 : i32
    %c0_i32_0 = arith.constant 0 : i32
    return %arg0, %c0_i32 : i32, i32
  }
  func.func @transform_1(%arg0: i32) -> (i32, i32) {
    %c0_i32 = arith.constant 0 : i32
    %c0_i32_0 = arith.constant 0 : i32
    %c0_i32_1 = arith.constant 0 : i32
    return %c0_i32, %c0_i32_0 : i32, i32
  }
  func.func @transform_2(%arg0: i32) -> (i32, i32) {
    %c0_i32 = arith.constant 0 : i32
    %c0_i32_0 = arith.constant 0 : i32
    %c0_i32_1 = arith.constant 0 : i32
    return %c0_i32, %c0_i32_0 : i32, i32
  }
  func.func @transform_3(%arg0: i32) -> (i32, i32) {
    %c0_i32 = arith.constant 0 : i32
    %c0_i32_0 = arith.constant 0 : i32
    %c0_i32_1 = arith.constant 0 : i32
    return %c0_i32, %c0_i32_0 : i32, i32
  }
  func.func @transform_4(%arg0: i32) -> (i32, i32) {
    %c0_i32 = arith.constant 0 : i32
    %c0_i32_0 = arith.constant 0 : i32
    %c0_i32_1 = arith.constant 0 : i32
    return %c0_i32, %c0_i32_0 : i32, i32
  }
  func.func @transform_5(%arg0: i32) -> (i32, i32) {
    %c0_i32 = arith.constant 0 : i32
    %c0_i32_0 = arith.constant 0 : i32
    %c0_i32_1 = arith.constant 0 : i32
    return %c0_i32, %c0_i32_0 : i32, i32
  }
  func.func @transform_6(%arg0: i32) -> (i32, i32) {
    %c0_i32 = arith.constant 0 : i32
    %c0_i32_0 = arith.constant 0 : i32
    %c0_i32_1 = arith.constant 0 : i32
    return %c0_i32, %c0_i32_0 : i32, i32
  }
  func.func @transform_7(%arg0: i32) -> (i32, i32) {
    %c0_i32 = arith.constant 0 : i32
    %c0_i32_0 = arith.constant 0 : i32
    %c0_i32_1 = arith.constant 0 : i32
    return %c0_i32, %c0_i32_0 : i32, i32
  }
  func.func @transform_8(%arg0: i32) -> (i32, i32) {
    %c0_i32 = arith.constant 0 : i32
    %c0_i32_0 = arith.constant 0 : i32
    %c0_i32_1 = arith.constant 0 : i32
    return %c0_i32, %c0_i32_0 : i32, i32
  }
  func.func @transform_9(%arg0: i32) -> (i32, i32) {
    %c0_i32 = arith.constant 0 : i32
    %c0_i32_0 = arith.constant 0 : i32
    %c0_i32_1 = arith.constant 0 : i32
    return %c0_i32, %c0_i32_0 : i32, i32
  }
  func.func @transform_10(%arg0: i32) -> (i32, i32) {
    %c0_i32 = arith.constant 0 : i32
    %c0_i32_0 = arith.constant 0 : i32
    %c0_i32_1 = arith.constant 0 : i32
    return %c0_i32, %c0_i32_0 : i32, i32
  }
  func.func @transform_11(%arg0: i32) -> (i32, i32) {
    %c0_i32 = arith.constant 0 : i32
    %c0_i32_0 = arith.constant 0 : i32
    %c0_i32_1 = arith.constant 0 : i32
    return %c0_i32, %c0_i32_0 : i32, i32
  }
  func.func @transform_12(%arg0: i32) -> (i32, i32) {
    %c0_i32 = arith.constant 0 : i32
    %c0_i32_0 = arith.constant 0 : i32
    %c0_i32_1 = arith.constant 0 : i32
    return %c0_i32, %c0_i32_0 : i32, i32
  }
  func.func @transform_13(%arg0: i32) -> (i32, i32) {
    %c0_i32 = arith.constant 0 : i32
    %c0_i32_0 = arith.constant 0 : i32
    %c0_i32_1 = arith.constant 0 : i32
    return %c0_i32, %c0_i32_0 : i32, i32
  }
  func.func @transform_14(%arg0: i32) -> (i32, i32) {
    %c0_i32 = arith.constant 0 : i32
    %c0_i32_0 = arith.constant 0 : i32
    %c0_i32_1 = arith.constant 0 : i32
    return %c0_i32, %c0_i32_0 : i32, i32
  }
  func.func @transform_15(%arg0: i32) -> (i32, i32) {
    %c0_i32 = arith.constant 0 : i32
    %c0_i32_0 = arith.constant 0 : i32
    %c0_i32_1 = arith.constant 0 : i32
    return %c0_i32, %c0_i32_0 : i32, i32
  }
  func.func @transform_16(%arg0: i32) -> (i32, i32) {
    %c0_i32 = arith.constant 0 : i32
    %c0_i32_0 = arith.constant 0 : i32
    %c0_i32_1 = arith.constant 0 : i32
    return %c0_i32, %c0_i32_0 : i32, i32
  }
  func.func @transform_17(%arg0: i32) -> (i32, i32) {
    %c0_i32 = arith.constant 0 : i32
    %c0_i32_0 = arith.constant 0 : i32
    return %arg0, %c0_i32 : i32, i32
  }
  func.func @transform_18(%arg0: i32) -> (i32, i32) {
    %c0_i32 = arith.constant 0 : i32
    %c0_i32_0 = arith.constant 0 : i32
    return %arg0, %c0_i32 : i32, i32
  }
}

</mosaic_0001>

<bundles_post_ra>
// kernel: autoencoder_forward.1
= control target key start
LH: loop header
LB: loop body
LE: loop exit
PB: predicated region body
PF: predicated region fallthrough
CT: control target
= control target key end

     0   :  { %vm626_vm0 = vcmask 130048   ;;  %vm1294_vm1 = vcmask 523264   ;;  %s7247_s1 = inlined_call_operand.vmem [shape: bf16[784,128], index: 1, kind: input, shape index: {}]   ;;  %s7248_s0 = inlined_call_operand.vmem [shape: f32[128,784], index: 0, kind: input, shape index: {}]   ;;  %s7249_s3 = inlined_call_operand.vmem [shape: bf16[128,64], index: 3, kind: input, shape index: {}]   ;;  %s7250_s2 = inlined_call_operand.vmem [shape: f32[1,128], index: 2, kind: input, shape index: {}]   ;;  %s7251_s5 = inlined_call_operand.vmem [shape: bf16[64,16], index: 5, kind: input, shape index: {}]   ;;  %s7252_s7 = inlined_call_operand.vmem [shape: bf16[16,128], index: 7, kind: input, shape index: {}]   ;;  %s7253_s4 = inlined_call_operand.vmem [shape: f32[1,64], index: 4, kind: input, shape index: {}]   ;;  %s7254_s9 = inlined_call_operand.vmem [shape: bf16[128,16], index: 9, kind: input, shape index: {}]   ;;  %s7255_s6 = inlined_call_operand.vmem [shape: f32[1,16], index: 6, kind: input, shape index: {}]   ;;  %s7256_s11 = inlined_call_operand.vmem [shape: bf16[16,64], index: 11, kind: input, shape index: {}]   ;;  %s7257_s8 = inlined_call_operand.vmem [shape: f32[1,128], index: 8, kind: input, shape index: {}]   ;;  %s7258_s17 = inlined_call_operand.vmem [shape: f32[128,128], index: 17, kind: output, shape index: {0}]   ;;  %s7259_s13 = inlined_call_operand.vmem [shape: bf16[64,128], index: 13, kind: input, shape index: {}]   ;;  %s7260_s10 = inlined_call_operand.vmem [shape: f32[1,16], index: 10, kind: input, shape index: {}]   ;;  %s7261_s15 = inlined_call_operand.vmem [shape: bf16[128,784], index: 15, kind: input, shape index: {}]   ;;  %s7262_s12 = inlined_call_operand.vmem [shape: f32[1,64], index: 12, kind: input, shape index: {}]   ;;  %s7263_s14 = inlined_call_operand.vmem [shape: f32[1,128], index: 14, kind: input, shape index: {}]   ;;  %s7264_s16 = inlined_call_operand.vmem [shape: f32[1,784], index: 16, kind: input, shape index: {}]   ;;  %s7265_s18 = inlined_call_operand.vmem [shape: f32[128,784], index: 18, kind: output, shape index: {1}]  }
   0x1   :  { %7269 = sst [smem:[#allocation5_spill]] %s7247_s1 }
   0x2   :  { %7270 = sst [smem:[#allocation6_spill]] %s7248_s0  ;;  %s7272_s29 = sld [smem:[#allocation5_spill]] }
   0x3   :  { %7271 = sst [smem:[#allocation7_spill]] %s7249_s3  ;;  %s7273_s22 = sld [smem:[#allocation6_spill]] }
   0x8   :  { %v4533_v0 = vld [vmem:[%s7272_s29 + $0x40] sm:$0xff]   ;;  %v4537_v4 = vld [vmem:[%s7272_s29 + $0x48] sm:$0xff]   ;;  %v4541_v8 = vld [vmem:[%s7272_s29 + $0x50] sm:$0xff]  }
   0x9   :  { %v4534_v1 = vld [vmem:[%s7272_s29] sm:$0xff]   ;;  %4043 = vmatprep.subr.bf16.mxu0 %v4533_v0  ;;  %v4538_v5 = vld [vmem:[%s7272_s29 + $0x8] sm:$0xff]   ;;  %v4542_v9 = vld [vmem:[%s7272_s29 + $0x10] sm:$0xff]  }
   0xa   :  { %v4535_v2 = vld [vmem:[%s7272_s29 + $0xc0] sm:$0xff]   ;;  %4044 = vmatpush3.bf16.msra.mxu0 %v4534_v1  ;;  %v4539_v6 = vld [vmem:[%s7272_s29 + $0xc8] sm:$0xff]   ;;  %v4543_v10 = vld [vmem:[%s7272_s29 + $0xd0] sm:$0xff]  }
   0xb   :  { %v4536_v3 = vld [vmem:[%s7272_s29 + $0x80] sm:$0xff]   ;;  %4107 = vmatprep.subr.bf16.mxu1 %v4535_v2  ;;  %4045 = vmatprep.subr.bf16.mxu0 %v4537_v4  ;;  %v4540_v7 = vld [vmem:[%s7272_s29 + $0x88] sm:$0xff]   ;;  %v4544_v11 = vld [vmem:[%s7272_s29 + $0x90] sm:$0xff]  }
   0xc   :  { %4108 = vmatpush3.bf16.msra.mxu1 %v4536_v3  ;;  %v4545_v12 = vld [vmem:[%s7272_s29 + $0x58] sm:$0xff]   ;;  %v4549_v16 = vld [vmem:[%s7272_s29 + $0x60] sm:$0xff]   ;;  %v4553_v20 = vld [vmem:[%s7272_s29 + $0x68] sm:$0xff]  }
   0xd   :  { %4109 = vmatprep.subr.bf16.mxu1 %v4539_v6  ;;  %v4546_v13 = vld [vmem:[%s7272_s29 + $0x18] sm:$0xff]   ;;  %v4550_v17 = vld [vmem:[%s7272_s29 + $0x20] sm:$0xff]   ;;  %v4554_v21 = vld [vmem:[%s7272_s29 + $0x28] sm:$0xff]  }
   0xe   :  { %4046 = vmatpush3.bf16.msra.mxu0 %v4538_v5  ;;  %v4547_v14 = vld [vmem:[%s7272_s29 + $0xd8] sm:$0xff]   ;;  %v4551_v18 = vld [vmem:[%s7272_s29 + $0xe0] sm:$0xff]   ;;  %v4555_v22 = vld [vmem:[%s7272_s29 + $0xe8] sm:$0xff]  }
   0xf   :  { %4047 = vmatprep.subr.bf16.mxu0 %v4541_v8  ;;  %v4548_v15 = vld [vmem:[%s7272_s29 + $0x98] sm:$0xff]   ;;  %v4552_v19 = vld [vmem:[%s7272_s29 + $0xa0] sm:$0xff]   ;;  %v4556_v23 = vld [vmem:[%s7272_s29 + $0xa8] sm:$0xff]  }
  0x10   :  { %4110 = vmatpush3.bf16.msra.mxu1 %v4540_v7  ;;  %v4557_v24 = vld [vmem:[%s7272_s29 + $0x70] sm:$0xff]   ;;  %v4561_v28 = vld [vmem:[%s7272_s29 + $0x78] sm:$0xff]   ;;  %v60_v31 = vld [vmem:[%s7273_s22 + $0x8] sm:$0xff] }
  0x11   :  { %4111 = vmatprep.subr.bf16.mxu1 %v4543_v10  ;;  %v4558_v25 = vld [vmem:[%s7272_s29 + $0x30] sm:$0xff]   ;;  %v4562_v29 = vld [vmem:[%s7272_s29 + $0x38] sm:$0xff]   ;;  %v67_v32 = vld [vmem:[%s7273_s22 + $0x40] sm:$0xff] }
  0x12   :  { %4048 = vmatpush3.bf16.msra.mxu0 %v4542_v9  ;;  %v4559_v26 = vld [vmem:[%s7272_s29 + $0xf0] sm:$0xff]   ;;  %v4563_v30 = vld [vmem:[%s7272_s29 + $0xf8] sm:$0xff]   ;;  %v172_v33 = vpack.c.bf16 %v67_v32, %v60_v31  ;;  %v59_v35 = vld [vmem:[%s7273_s22] sm:$0xff] }
  0x13   :  { %4049 = vmatprep.subr.bf16.mxu0 %v4545_v12  ;;  %v4560_v27 = vld [vmem:[%s7272_s29 + $0xb0] sm:$0xff]   ;;  %v4564_v34 = vld [vmem:[%s7272_s29 + $0xb8] sm:$0xff]   ;;  %v4565_v38 = vld [vmem:[%s7272_s29 + $0x140] sm:$0xff]  }
  0x14   :  { %4112 = vmatpush3.bf16.msra.mxu1 %v4544_v11  ;;  %v66_v36 = vld [vmem:[%s7273_s22 + $0x38] sm:$0xff]  ;;  %683 = vmatprep.mubr.bf16.mxu0 %v172_v33  ;;  %v69_v40 = vld [vmem:[%s7273_s22 + $0x50] sm:$0xff]  ;;  %v4566_v42 = vld [vmem:[%s7272_s29 + $0x100] sm:$0xff]  }
  0x15   :  { %4113 = vmatprep.subr.bf16.mxu1 %v4547_v14  ;;  %v171_v37 = vpack.c.bf16 %v66_v36, %v59_v35  ;;  %v62_v39 = vld [vmem:[%s7273_s22 + $0x18] sm:$0xff]  ;;  %v61_v43 = vld [vmem:[%s7273_s22 + $0x10] sm:$0xff]  ;;  %v68_v44 = vld [vmem:[%s7273_s22 + $0x48] sm:$0xff] }
  0x16   :  { %4050 = vmatpush3.bf16.msra.mxu0 %v4546_v13  ;;  %v174_v41 = vpack.c.bf16 %v69_v40, %v62_v39  ;;  %v74_v45 = vld [vmem:[%s7273_s22 + $0x78] sm:$0xff]  ;;  %v173_v46 = vpack.c.bf16 %v68_v44, %v61_v43  ;;  %v81_v47 = vld [vmem:[%s7273_s22 + $0xb0] sm:$0xff]  ;;  %v80_v49 = vld [vmem:[%s7273_s22 + $0xa8] sm:$0xff] }
  0x17   :  { %4051 = vmatprep.subr.bf16.mxu0 %v4549_v16  ;;  %v73_v48 = vld [vmem:[%s7273_s22 + $0x70] sm:$0xff]  ;;  %v179_v50 = vpack.c.bf16 %v81_v47, %v74_v45  ;;  %v4567_v51 = vld [vmem:[%s7272_s29 + $0x148] sm:$0xff]   ;;  %v83_v53 = vld [vmem:[%s7273_s22 + $0xc0] sm:$0xff] }
  0x18   :  { %4114 = vmatpush3.bf16.msra.mxu1 %v4548_v15  ;;  %780 = vmatprep.mubr.bf16.mxu1 %v174_v41  ;;  %v76_v52 = vld [vmem:[%s7273_s22 + $0x88] sm:$0xff]  ;;  %v178_v54 = vpack.c.bf16 %v80_v49, %v73_v48  ;;  %v75_v57 = vld [vmem:[%s7273_s22 + $0x80] sm:$0xff]  ;;  %v82_v58 = vld [vmem:[%s7273_s22 + $0xb8] sm:$0xff] }
  0x19   :  { %4115 = vmatprep.subr.bf16.mxu1 %v4551_v18  ;;  %v181_v55 = vpack.c.bf16 %v83_v53, %v76_v52  ;;  %v4568_v56 = vld [vmem:[%s7272_s29 + $0x108] sm:$0xff]   ;;  %v4569_v59 = vld [vmem:[%s7272_s29 + $0x180] sm:$0xff]   ;;  %v180_v62 = vpack.c.bf16 %v82_v58, %v75_v57  ;;  %v94_v1 = vld [vmem:[%s7273_s22 + $0x118] sm:$0xff] }
  0x1a   :  { %4052 = vmatpush3.bf16.msra.mxu0 %v4550_v17  ;;  %v88_v60 = vld [vmem:[%s7273_s22 + $0xe8] sm:$0xff]  ;;  %v95_v61 = vld [vmem:[%s7273_s22 + $0x120] sm:$0xff]  ;;  %v4570_v2 = vld [vmem:[%s7272_s29 + $0x150] sm:$0xff]  }
  0x1b   :  { %4053 = vmatprep.subr.bf16.mxu0 %v4553_v20  ;;  %v186_v63 = vpack.c.bf16 %v95_v61, %v88_v60  ;;  %v87_v0 = vld [vmem:[%s7273_s22 + $0xe0] sm:$0xff]  ;;  %v90_v3 = vld [vmem:[%s7273_s22 + $0xf8] sm:$0xff]  ;;  %v97_v4 = vld [vmem:[%s7273_s22 + $0x130] sm:$0xff] }
  0x1c   :  { %4116 = vmatpush3.bf16.msra.mxu1 %v4552_v19  ;;  %v188_v5 = vpack.c.bf16 %v97_v4, %v90_v3  ;;  %v4571_v6 = vld [vmem:[%s7272_s29 + $0x110] sm:$0xff]   ;;  %v102_v8 = vld [vmem:[%s7273_s22 + $0x158] sm:$0xff]  ;;  %v185_v10 = vpack.c.bf16 %v94_v1, %v87_v0  ;;  %v96_v11 = vld [vmem:[%s7273_s22 + $0x128] sm:$0xff] }
  0x1d   :  { %4117 = vmatprep.subr.bf16.mxu1 %v4555_v22  ;;  %v89_v7 = vld [vmem:[%s7273_s22 + $0xf0] sm:$0xff]  ;;  %v4572_v13 = vld [vmem:[%s7272_s29 + $0x158] sm:$0xff]   ;;  %v104_v14 = vld [vmem:[%s7273_s22 + $0x168] sm:$0xff] }
  0x1e   :  { %4054 = vmatpush3.bf16.msra.mxu0 %v4554_v21  ;;  %v109_v9 = vld [vmem:[%s7273_s22 + $0x190] sm:$0xff]  ;;  %v111_v15 = vld [vmem:[%s7273_s22 + $0x1a0] sm:$0xff]  ;;  %v4573_v16 = vld [vmem:[%s7272_s29 + $0x118] sm:$0xff]   ;;  %v187_v17 = vpack.c.bf16 %v96_v11, %v89_v7 }
  0x1f   :  { %4055 = vmatprep.subr.bf16.mxu0 %v4557_v24  ;;  %v193_v12 = vpack.c.bf16 %v109_v9, %v102_v8  ;;  %v101_v18 = vld [vmem:[%s7273_s22 + $0x150] sm:$0xff]  ;;  %v108_v19 = vld [vmem:[%s7273_s22 + $0x188] sm:$0xff]  ;;  %v195_v20 = vpack.c.bf16 %v111_v15, %v104_v14  ;;  %v4574_v21 = vld [vmem:[%s7272_s29 + $0x160] sm:$0xff]  }
  0x20   :  { %4118 = vmatpush3.bf16.msra.mxu1 %v4556_v23  ;;  %v116_v22 = vld [vmem:[%s7273_s22 + $0x1c8] sm:$0xff]  ;;  %v123_v23 = vld [vmem:[%s7273_s22 + $0x200] sm:$0xff]  ;;  %v122_v36 = vld [vmem:[%s7273_s22 + $0x1f8] sm:$0xff] }
  0x21   :  { %4119 = vmatprep.subr.bf16.mxu1 %v4559_v26  ;;  %v4575_v24 = vld [vmem:[%s7272_s29 + $0x120] sm:$0xff]   ;;  %v4576_v31 = vld [vmem:[%s7272_s29 + $0x168] sm:$0xff]   ;;  %v117_v39 = vld [vmem:[%s7273_s22 + $0x1d0] sm:$0xff] }
  0x22   :  { %4056 = vmatpush3.bf16.msra.mxu0 %v4558_v25  ;;  %v192_v25 = vpack.c.bf16 %v108_v19, %v101_v18  ;;  %v103_v26 = vld [vmem:[%s7273_s22 + $0x160] sm:$0xff]  ;;  %v124_v40 = vld [vmem:[%s7273_s22 + $0x208] sm:$0xff]  ;;  %v4578_v41 = vld [vmem:[%s7272_s29 + $0x170] sm:$0xff]  }
  0x23   :  { %4057 = vmatprep.subr.bf16.mxu0 %v4561_v28  ;;  %v200_v28 = vpack.c.bf16 %v123_v23, %v116_v22  ;;  %v115_v35 = vld [vmem:[%s7273_s22 + $0x1c0] sm:$0xff]  ;;  %v4579_v43 = vld [vmem:[%s7272_s29 + $0x130] sm:$0xff]   ;;  %v132_v45 = vld [vmem:[%s7273_s22 + $0x248] sm:$0xff]  ;;  %v201_v47 = vpack.c.bf16 %v124_v40, %v117_v39 }
  0x24   :  { %4120 = vmatpush3.bf16.msra.mxu1 %v4560_v27  ;;  %v110_v27 = vld [vmem:[%s7273_s22 + $0x198] sm:$0xff]  ;;  %v129_v49 = vld [vmem:[%s7273_s22 + $0x230] sm:$0xff]  ;;  %v144_v53 = vld [vmem:[%s7273_s22 + $0x2a8] sm:$0xff] }
  0x25   :  { %4121 = vmatprep.subr.bf16.mxu1 %v4563_v30  ;;  %v125_v30 = vld [vmem:[%s7273_s22 + $0x210] sm:$0xff]  ;;  %v194_v32 = vpack.c.bf16 %v110_v27, %v103_v26  ;;  %v4580_v48 = vld [vmem:[%s7272_s29 + $0x178] sm:$0xff]   ;;  %v160_v7 = vld [vmem:[%s7273_s22 + $0x328] sm:$0xff] }
  0x26   :  { %4058 = vmatpush3.bf16.msra.mxu0 %v4562_v29  ;;  %v118_v29 = vld [vmem:[%s7273_s22 + $0x1d8] sm:$0xff]  ;;  %v153_v60 = vld [vmem:[%s7273_s22 + $0x2f0] sm:$0xff]  ;;  %v167_v8 = vld [vmem:[%s7273_s22 + $0x360] sm:$0xff] }
  0x27   :  { %4171 = vmatprep.subr.bf16.mxu0 %v4565_v38  ;;  %v202_v33 = vpack.c.bf16 %v125_v30, %v118_v29  ;;  %v137_v38 = vld [vmem:[%s7273_s22 + $0x270] sm:$0xff]  ;;  %v4581_v52 = vld [vmem:[%s7272_s29 + $0x138] sm:$0xff]   ;;  %v71_v14 = vld [vmem:[%s7273_s22 + $0x60] sm:$0xff] }
  0x28   :  { %4122 = vmatpush3.bf16.msra.mxu1 %v4564_v34  ;;  %v4577_v34 = vld [vmem:[%s7272_s29 + $0x128] sm:$0xff]   ;;  %v138_v57 = vld [vmem:[%s7273_s22 + $0x278] sm:$0xff]  ;;  %v145_v4 = vld [vmem:[%s7273_s22 + $0x2b0] sm:$0xff]  ;;  %s7274_s29 = sld [smem:[#allocation7_spill]] }
  0x29   :  { %684 = vmatmul.mubr.bf16.vlgmr.msra.gmra.mrb[0].mxu0 %v171_v37  ;;  %4334 = vmatprep.subr.bf16.mxu1 %v4569_v59  ;;  %v130_v37 = vld [vmem:[%s7273_s22 + $0x238] sm:$0xff]  ;;  %v157_v11 = vld [vmem:[%s7273_s22 + $0x310] sm:$0xff]  ;;  %v63_v23 = vld [vmem:[%s7273_s22 + $0x20] sm:$0xff] }
  0x2a   :  { %4172 = vmatpush3.bf16.msra.mxu0 %v4566_v42  ;;  %691 = vmatprep.mubr.bf16.mxu0 %v179_v50  ;;  %v199_v42 = vpack.c.bf16 %v122_v36, %v115_v35  ;;  %v207_v44 = vpack.c.bf16 %v137_v38, %v130_v37  ;;  %v150_v0 = vld [vmem:[%s7273_s22 + $0x2d8] sm:$0xff]  ;;  %v65_v19 = vld [vmem:[%s7273_s22 + $0x30] sm:$0xff]  ;;  %v84_v36 = vld [vmem:[%s7273_s22 + $0xc8] sm:$0xff] }
  0x2b   :  { %781 = vmatmul.mubr.bf16.vlgmr.msra.gmra.mrb[0].mxu1 %v173_v46  ;;  %4173 = vmatprep.subr.bf16.mxu0 %v4567_v51  ;;  %v139_v46 = vld [vmem:[%s7273_s22 + $0x280] sm:$0xff]  ;;  %v136_v51 = vld [vmem:[%s7273_s22 + $0x268] sm:$0xff]  ;;  %v158_v1 = vld [vmem:[%s7273_s22 + $0x318] sm:$0xff] }
  0x2c   :  { %788 = vmatprep.mubr.bf16.mxu1 %v181_v55  ;;  %4335 = vmatpush3.bf16.msra.mxu1 %v4569_v59  ;;  %v209_v50 = vpack.c.bf16 %v139_v46, %v132_v45  ;;  %v206_v55 = vpack.c.bf16 %v136_v51, %v129_v49  ;;  %v146_v59 = vld [vmem:[%s7273_s22 + $0x2b8] sm:$0xff]  ;;  %v85_v26 = vld [vmem:[%s7273_s22 + $0xd0] sm:$0xff]  ;;  %v92_v37 = vld [vmem:[%s7273_s22 + $0x108] sm:$0xff] }
  0x2d   :  { %v86_v29 = vld [vmem:[%s7273_s22 + $0xd8] sm:$0xff]  ;;  %v77_v35 = vld [vmem:[%s7273_s22 + $0x90] sm:$0xff]  ;;  %v99_v38 = vld [vmem:[%s7273_s22 + $0x140] sm:$0xff] }
  0x2e   :  { %4174 = vmatpush3.bf16.msra.mxu0 %v4568_v56  ;;  %v131_v56 = vld [vmem:[%s7273_s22 + $0x240] sm:$0xff]  ;;  %v182_v39 = vpack.c.bf16 %v84_v36, %v77_v35  ;;  %v106_v49 = vld [vmem:[%s7273_s22 + $0x178] sm:$0xff] }
  0x2f   :  { %4175 = vmatprep.subr.bf16.mxu0 %v4570_v2  ;;  %v208_v61 = vpack.c.bf16 %v138_v57, %v131_v56  ;;  %v165_v2 = vld [vmem:[%s7273_s22 + $0x350] sm:$0xff]  ;;  %v107_v40 = vld [vmem:[%s7273_s22 + $0x180] sm:$0xff]  ;;  %v156_v56 = vld [vmem:[%s7273_s22 + $0x308] sm:$0xff] }
  0x31   :  { %692 = vmatmul.mubr.bf16.gmra.mrb[4].mxu0 %v178_v54  ;;  %v151_v54 = vld [vmem:[%s7273_s22 + $0x2e0] sm:$0xff] }
  0x32   :  { %699 = vmatprep.mubr.bf16.mxu0 %v186_v63  ;;  %4176 = vmatpush3.bf16.msra.mxu0 %v4571_v6  ;;  %v214_v58 = vpack.c.bf16 %v151_v54, %v144_v53  ;;  %v143_v63 = vld [vmem:[%s7273_s22 + $0x2a0] sm:$0xff]  ;;  %v221_v6 = vpack.c.bf16 %v165_v2, %v158_v1  ;;  %v142_v53 = vld [vmem:[%s7273_s22 + $0x298] sm:$0xff] }
  0x33   :  { %789 = vmatmul.mubr.bf16.gmra.mrb[4].mxu1 %v180_v62  ;;  %4177 = vmatprep.subr.bf16.mxu0 %v4572_v13  ;;  %v216_v62 = vpack.c.bf16 %v153_v60, %v146_v59  ;;  %v213_v3 = vpack.c.bf16 %v150_v0, %v143_v63  ;;  %v64_v13 = vld [vmem:[%s7273_s22 + $0x28] sm:$0xff]  ;;  %v105_v59 = vld [vmem:[%s7273_s22 + $0x170] sm:$0xff]  ;;  %v163_v0 = vld [vmem:[%s7273_s22 + $0x340] sm:$0xff] }
  0x34   :  { %796 = vmatprep.mubr.bf16.mxu1 %v188_v5  ;;  %v152_v5 = vld [vmem:[%s7273_s22 + $0x2e8] sm:$0xff]  ;;  %v176_v18 = vpack.c.bf16 %v71_v14, %v64_v13  ;;  %v170_v1 = vld [vmem:[%s7273_s22 + $0x378] sm:$0xff]  ;;  %v155_v13 = vld [vmem:[%s7273_s22 + $0x300] sm:$0xff] }
  0x35   :  { %v215_v9 = vpack.c.bf16 %v152_v5, %v145_v4  ;;  %v112_v60 = vld [vmem:[%s7273_s22 + $0x1a8] sm:$0xff]  ;;  %v119_v4 = vld [vmem:[%s7273_s22 + $0x1e0] sm:$0xff]  ;;  %v126_v5 = vld [vmem:[%s7273_s22 + $0x218] sm:$0xff] }
  0x36   :  { %4178 = vmatpush3.bf16.msra.mxu0 %v4573_v16  ;;  %v159_v16 = vld [vmem:[%s7273_s22 + $0x320] sm:$0xff]  ;;  %v196_v63 = vpack.c.bf16 %v112_v60, %v105_v59 }
  0x37   :  { %4179 = vmatprep.subr.bf16.mxu0 %v4574_v21 }
  0x39   :  { %700 = vmatmul.mubr.bf16.gmra.mrb[8].mxu0 %v185_v10  ;;  %v223_v10 = vpack.c.bf16 %v167_v8, %v160_v7  ;;  %v141_v7 = vld [vmem:[%s7273_s22 + $0x290] sm:$0xff]  ;;  %v203_v8 = vpack.c.bf16 %v126_v5, %v119_v4  ;;  %v4591_v5 = vld [vmem:[%s7251_s5 + $0x8] sm:$0xff]  }
  0x3a   :  { %707 = vmatprep.mubr.bf16.mxu0 %v193_v12  ;;  %4180 = vmatpush3.bf16.msra.mxu0 %v4575_v24  ;;  %v164_v12 = vld [vmem:[%s7273_s22 + $0x348] sm:$0xff]  ;;  %v70_v24 = vld [vmem:[%s7273_s22 + $0x58] sm:$0xff] }
  0x3b   :  { %797 = vmatmul.mubr.bf16.gmra.mrb[8].mxu1 %v187_v17  ;;  %4181 = vmatprep.subr.bf16.mxu0 %v4576_v31  ;;  %v220_v15 = vpack.c.bf16 %v164_v12, %v157_v11  ;;  %v166_v17 = vld [vmem:[%s7273_s22 + $0x358] sm:$0xff]  ;;  %v175_v27 = vpack.c.bf16 %v70_v24, %v63_v23  ;;  %v93_v31 = vld [vmem:[%s7273_s22 + $0x110] sm:$0xff]  ;;  %v140_v11 = vld [vmem:[%s7273_s22 + $0x288] sm:$0xff] }
  0x3c   :  { %804 = vmatprep.mubr.bf16.mxu1 %v195_v20  ;;  %v72_v20 = vld [vmem:[%s7273_s22 + $0x68] sm:$0xff]  ;;  %v222_v21 = vpack.c.bf16 %v166_v17, %v159_v16  ;;  %v147_v16 = vld [vmem:[%s7273_s22 + $0x2c0] sm:$0xff]  ;;  %v154_v17 = vld [vmem:[%s7273_s22 + $0x2f8] sm:$0xff] }
  0x3d   :  { %v177_v22 = vpack.c.bf16 %v72_v20, %v65_v19  ;;  %v148_v12 = vld [vmem:[%s7273_s22 + $0x2c8] sm:$0xff]  ;;  %v169_v19 = vld [vmem:[%s7273_s22 + $0x370] sm:$0xff]  ;;  %v217_v20 = vpack.c.bf16 %v154_v17, %v147_v16 }
  0x3e   :  { %4182 = vmatpush3.bf16.msra.mxu0 %v4577_v34  ;;  %v168_v23 = vld [vmem:[%s7273_s22 + $0x368] sm:$0xff] }
  0x3f   :  { %4183 = vmatprep.subr.bf16.mxu0 %v4578_v41  ;;  %v114_v41 = vld [vmem:[%s7273_s22 + $0x1b8] sm:$0xff] }
  0x40   :  { %v198_v45 = vpack.c.bf16 %v114_v41, %v107_v40 }
  0x41   :  { %708 = vmatmul.mubr.bf16.gmra.mrb[12].mxu0 %v192_v25  ;;  %v78_v25 = vld [vmem:[%s7273_s22 + $0x98] sm:$0xff] }
  0x42   :  { %715 = vmatprep.mubr.bf16.mxu0 %v200_v28  ;;  %4184 = vmatpush3.bf16.msra.mxu0 %v4579_v43  ;;  %v79_v28 = vld [vmem:[%s7273_s22 + $0xa0] sm:$0xff]  ;;  %v183_v30 = vpack.c.bf16 %v85_v26, %v78_v25  ;;  %v121_v43 = vld [vmem:[%s7273_s22 + $0x1f0] sm:$0xff]  ;;  %v4583_v26 = vld [vmem:[%s7274_s29 + $0x8] sm:$0xff]  }
  0x43   :  { %805 = vmatmul.mubr.bf16.gmra.mrb[12].mxu1 %v194_v32  ;;  %4185 = vmatprep.subr.bf16.mxu0 %v4580_v48  ;;  %v100_v32 = vld [vmem:[%s7273_s22 + $0x148] sm:$0xff]  ;;  %v98_v48 = vld [vmem:[%s7273_s22 + $0x138] sm:$0xff]  ;;  %v4582_v25 = vld [vmem:[%s7274_s29] sm:$0xff]  }
  0x44   :  { %812 = vmatprep.mubr.bf16.mxu1 %v202_v33  ;;  %v184_v33 = vpack.c.bf16 %v86_v29, %v79_v28  ;;  %v191_v34 = vpack.c.bf16 %v100_v32, %v93_v31  ;;  %4352 = vmatprep.subr.bf16.mxu1 %v4582_v25  ;;  %v4585_v28 = vld [vmem:[%s7274_s29 + $0x18] sm:$0xff]   ;;  %v4586_v29 = vld [vmem:[%s7274_s29 + $0x20] sm:$0xff]   ;;  %v4588_v31 = vld [vmem:[%s7274_s29 + $0x30] sm:$0xff]  }
  0x45   :  { %v4589_v32 = vld [vmem:[%s7274_s29 + $0x38] sm:$0xff]  }
  0x46   :  { %4186 = vmatpush3.bf16.msra.mxu0 %v4581_v52  ;;  %v135_v52 = vld [vmem:[%s7273_s22 + $0x260] sm:$0xff] }
  0x47   :  { %v212_v57 = vpack.c.bf16 %v142_v53, %v135_v52 }
  0x49   :  { %716 = vmatmul.mubr.bf16.gmra.mrb[16].mxu0 %v199_v42  ;;  %v190_v42 = vpack.c.bf16 %v99_v38, %v92_v37 }
  0x4a   :  { %723 = vmatprep.mubr.bf16.mxu0 %v207_v44  ;;  %v128_v44 = vld [vmem:[%s7273_s22 + $0x228] sm:$0xff] }
  0x4b   :  { %813 = vmatmul.mubr.bf16.gmra.mrb[16].mxu1 %v201_v47  ;;  %v205_v46 = vpack.c.bf16 %v128_v44, %v121_v43  ;;  %v91_v47 = vld [vmem:[%s7273_s22 + $0x100] sm:$0xff] }
  0x4c   :  { %820 = vmatprep.mubr.bf16.mxu1 %v209_v50  ;;  %v113_v50 = vld [vmem:[%s7273_s22 + $0x1b0] sm:$0xff]  ;;  %v189_v51 = vpack.c.bf16 %v98_v48, %v91_v47 }
  0x4d   :  { %v197_v54 = vpack.c.bf16 %v113_v50, %v106_v49 }
  0x51   :  { %724 = vmatmul.mubr.bf16.gmra.mrb[20].mxu0 %v206_v55  ;;  %v149_v55 = vld [vmem:[%s7273_s22 + $0x2d0] sm:$0xff] }
  0x52   :  { %731 = vmatprep.mubr.bf16.mxu0 %v214_v58  ;;  %v219_v58 = vpack.c.bf16 %v156_v56, %v149_v55 }
  0x53   :  { %821 = vmatmul.mubr.bf16.gmra.mrb[20].mxu1 %v208_v61  ;;  %v120_v61 = vld [vmem:[%s7273_s22 + $0x1e8] sm:$0xff] }
  0x54   :  { %828 = vmatprep.mubr.bf16.mxu1 %v216_v62  ;;  %v127_v62 = vld [vmem:[%s7273_s22 + $0x220] sm:$0xff] }
  0x55   :  { %v204_v2 = vpack.c.bf16 %v127_v62, %v120_v61 }
  0x59   :  { %732 = vmatmul.mubr.bf16.gmra.mrb[24].mxu0 %v213_v3  ;;  %v226_v3 = vpack.c.bf16 %v170_v1, %v163_v0 }
  0x5a   :  { %739 = vmatprep.mubr.bf16.mxu0 %v221_v6  ;;  %v134_v6 = vld [vmem:[%s7273_s22 + $0x258] sm:$0xff] }
  0x5b   :  { %829 = vmatmul.mubr.bf16.gmra.mrb[24].mxu1 %v215_v9  ;;  %v211_v9 = vpack.c.bf16 %v141_v7, %v134_v6 }
  0x5c   :  { %836 = vmatprep.mubr.bf16.mxu1 %v223_v10  ;;  %v133_v10 = vld [vmem:[%s7273_s22 + $0x250] sm:$0xff] }
  0x5d   :  { %v210_v14 = vpack.c.bf16 %v140_v11, %v133_v10 }
  0x61   :  { %740 = vmatmul.mubr.bf16.gmra.mrb[28].mxu0 %v220_v15  ;;  %v218_v15 = vpack.c.bf16 %v155_v13, %v148_v12  ;;  %v4592_v13 = vld [vmem:[%s7251_s5 + $0x10] sm:$0xff]  }
  0x62   :  { %877 = vmatprep.mubr.bf16.mxu0 %v176_v18  ;;  %v162_v18 = vld [vmem:[%s7273_s22 + $0x338] sm:$0xff] }
  0x63   :  { %837 = vmatmul.mubr.bf16.gmra.mrb[28].mxu1 %v222_v21  ;;  %v225_v21 = vpack.c.bf16 %v169_v19, %v162_v18 }
  0x64   :  { %4336 = vmatprep.mubr.msk.bf16.mxu1 %vm626_vm0, %v177_v22  ;;  %v161_v22 = vld [vmem:[%s7273_s22 + $0x330] sm:$0xff] }
  0x65   :  { %v224_v24 = vpack.c.bf16 %v168_v23, %v161_v22 }
  0x69   :  { %878 = vmatmul.mubr.bf16.vlgmr.msra.gmra.mrb[32].mxu0 %v175_v27  ;;  %v4584_v27 = vld [vmem:[%s7274_s29 + $0x10] sm:$0xff]  }
  0x6a   :  { %885 = vmatprep.mubr.bf16.mxu0 %v183_v30  ;;  %v4587_v30 = vld [vmem:[%s7274_s29 + $0x28] sm:$0xff]  }
  0x6b   :  { %4337 = vmatmul.mubr.msk.bf16.vlgmr.msra.gmra.mrb[32].mxu1 %vm626_vm0, %v184_v33 }
  0x6c   :  { %4340 = vmatprep.mubr.msk.bf16.mxu1 %vm626_vm0, %v191_v34  ;;  %4353 = vmatpush3.bf16.msra.mxu1 %v4582_v25  ;;  %v5943_v34 = vld [vmem:[%s7250_s2] ss:$0 sm:$0xff] }
  0x6d   :  { %4354 = vmatprep.subr.bf16.mxu1 %v4583_v26 }
  0x70   :  { %4355 = vmatpush3.bf16.msra.mxu1 %v4583_v26 }
  0x71   :  { %886 = vmatmul.mubr.bf16.gmra.mrb[36].mxu0 %v182_v39  ;;  %4356 = vmatprep.subr.bf16.mxu1 %v4584_v27 }
  0x72   :  { %893 = vmatprep.mubr.bf16.mxu0 %v190_v42 }
  0x73   :  { %4341 = vmatmul.mubr.msk.bf16.gmra.mrb[36].mxu1 %vm626_vm0, %v198_v45 }
  0x74   :  { %4344 = vmatprep.mubr.msk.bf16.mxu1 %vm626_vm0, %v205_v46  ;;  %4357 = vmatpush3.bf16.msra.mxu1 %v4584_v27 }
  0x75   :  { %4358 = vmatprep.subr.bf16.mxu1 %v4585_v28 }
  0x78   :  { %4359 = vmatpush3.bf16.msra.mxu1 %v4585_v28 }
  0x79   :  { %894 = vmatmul.mubr.bf16.gmra.mrb[40].mxu0 %v189_v51  ;;  %4360 = vmatprep.subr.bf16.mxu1 %v4586_v29 }
  0x7a   :  { %901 = vmatprep.mubr.bf16.mxu0 %v197_v54 }
  0x7b   :  { %4345 = vmatmul.mubr.msk.bf16.gmra.mrb[40].mxu1 %vm626_vm0, %v212_v57 }
  0x7c   :  { %4348 = vmatprep.mubr.msk.bf16.mxu1 %vm626_vm0, %v219_v58  ;;  %4361 = vmatpush3.bf16.msra.mxu1 %v4586_v29 }
  0x7d   :  { %4362 = vmatprep.subr.bf16.mxu1 %v4587_v30 }
  0x80   :  { %4363 = vmatpush3.bf16.msra.mxu1 %v4587_v30 }
  0x81   :  { %902 = vmatmul.mubr.bf16.gmra.mrb[44].mxu0 %v196_v63  ;;  %4364 = vmatprep.subr.bf16.mxu1 %v4588_v31 }
  0x82   :  { %909 = vmatprep.mubr.bf16.mxu0 %v204_v2  ;;  %v4590_v2 = vld [vmem:[%s7251_s5] sm:$0xff]  }
  0x83   :  { %4349 = vmatmul.mubr.msk.bf16.gmra.mrb[44].mxu1 %vm626_vm0, %v226_v3  ;;  %4384 = vmatprep.subr.bf16.mxu0 %v4590_v2 }
  0x84   :  { %4365 = vmatpush3.bf16.msra.mxu1 %v4588_v31  ;;  %4385 = vmatpush3.bf16.msra.mxu0 %v4590_v2 }
  0x85   :  { %4366 = vmatprep.subr.bf16.mxu1 %v4589_v32  ;;  %4386 = vmatprep.subr.bf16.mxu0 %v4591_v5 }
  0x88   :  { %4367 = vmatpush3.bf16.msra.mxu1 %v4589_v32  ;;  %4387 = vmatpush3.bf16.msra.mxu0 %v4591_v5 }
  0x89   :  { %910 = vmatmul.mubr.bf16.gmra.mrb[48].mxu0 %v203_v8  ;;  %4388 = vmatprep.subr.bf16.mxu0 %v4592_v13 }
  0x8a   :  { %917 = vmatprep.mubr.bf16.mxu0 %v211_v9 }
  0x8c   :  { %4389 = vmatpush3.bf16.msra.mxu0 %v4592_v13 }
  0x91   :  { %918 = vmatmul.mubr.bf16.gmra.mrb[52].mxu0 %v210_v14 }
  0x92   :  { %925 = vmatprep.mubr.bf16.mxu0 %v218_v15 }
  0x99   :  { %926 = vmatmul.mubr.bf16.gmra.mrb[56].mxu0 %v217_v20 }
  0x9a   :  { %933 = vmatprep.mubr.bf16.mxu0 %v225_v21 }
  0xa1   :  { %934 = vmatmul.mubr.bf16.gmra.mrb[60].mxu0 %v224_v24 }
  0xfc   :  { %v4059_v33 = vpop.f32.mrb[0].mxu0 }
  0xfd   :  { %v4060_v35 = vpop.f32.mrb[1].mxu0 }
  0xfe   :  { %v4061_v36 = vadd.f32 %v4060_v35, %v4059_v33  ;;  %v4062_v37 = vpop.f32.mrb[2].mxu0  ;;  %v4123_v38 = vpop.f32.mrb[0].mxu1 }
  0xff   :  { %v4063_v39 = vpop.f32.mrb[3].mxu0  ;;  %v4124_v42 = vpop.f32.mrb[1].mxu1 }
 0x100   :  { %v686_v40 = vadd.f32 %v4061_v36, %v5943_v34  ;;  %v4064_v41 = vadd.f32 %v4063_v39, %v4062_v37  ;;  %v4125_v43 = vadd.f32 %v4124_v42, %v4123_v38  ;;  %v4126_v44 = vpop.f32.mrb[2].mxu1 }
 0x101   :  { %v4127_v46 = vpop.f32.mrb[3].mxu1 }
 0x102   :  { %v689_v45 = vadd.f32 %v4064_v41, %v5943_v34  ;;  %v5947_v47 = vadd.f32 %v4125_v43, %v686_v40  ;;  %v4128_v48 = vadd.f32 %v4127_v46, %v4126_v44 }
 0x104   :  { %v4065_v49 = vpop.f32.mrb[4].mxu0  ;;  %v5949_v50 = vadd.f32 %v4128_v48, %v689_v45 }
 0x105   :  { %v4066_v51 = vpop.f32.mrb[5].mxu0 }
 0x106   :  { %v4067_v52 = vadd.f32 %v4066_v51, %v4065_v49  ;;  %v4068_v53 = vpop.f32.mrb[6].mxu0  ;;  %v4129_v54 = vpop.f32.mrb[4].mxu1 }
 0x107   :  { %v4069_v55 = vpop.f32.mrb[7].mxu0  ;;  %v4130_v58 = vpop.f32.mrb[5].mxu1 }
 0x108   :  { %v694_v56 = vadd.f32 %v4067_v52, %v5943_v34  ;;  %v4070_v57 = vadd.f32 %v4069_v55, %v4068_v53  ;;  %v4131_v59 = vadd.f32 %v4130_v58, %v4129_v54  ;;  %v4132_v60 = vpop.f32.mrb[6].mxu1 }
 0x109   :  { %v4133_v62 = vpop.f32.mrb[7].mxu1 }
 0x10a   :  { %v697_v61 = vadd.f32 %v4070_v57, %v5943_v34  ;;  %v5953_v63 = vadd.f32 %v4131_v59, %v694_v56  ;;  %v4134_v0 = vadd.f32 %v4133_v62, %v4132_v60 }
 0x10c   :  { %v4071_v1 = vpop.f32.mrb[8].mxu0  ;;  %v5958_v3 = vadd.f32 %v4134_v0, %v697_v61 }
 0x10d   :  { %v4072_v4 = vpop.f32.mrb[9].mxu0 }
 0x10e   :  { %v4073_v6 = vadd.f32 %v4072_v4, %v4071_v1  ;;  %v4074_v7 = vpop.f32.mrb[10].mxu0  ;;  %v4135_v8 = vpop.f32.mrb[8].mxu1 }
 0x10f   :  { %v4075_v9 = vpop.f32.mrb[11].mxu0  ;;  %v4136_v12 = vpop.f32.mrb[9].mxu1 }
 0x110   :  { %v702_v10 = vadd.f32 %v4073_v6, %v5943_v34  ;;  %v4076_v11 = vadd.f32 %v4075_v9, %v4074_v7  ;;  %v4137_v14 = vadd.f32 %v4136_v12, %v4135_v8  ;;  %v4138_v15 = vpop.f32.mrb[10].mxu1 }
 0x111   :  { %v4139_v17 = vpop.f32.mrb[11].mxu1 }
 0x112   :  { %v705_v16 = vadd.f32 %v4076_v11, %v5943_v34  ;;  %v5968_v18 = vadd.f32 %v4137_v14, %v702_v10  ;;  %v4140_v19 = vadd.f32 %v4139_v17, %v4138_v15 }
 0x114   :  { %v4077_v20 = vpop.f32.mrb[12].mxu0  ;;  %v5970_v21 = vadd.f32 %v4140_v19, %v705_v16 }
 0x115   :  { %v4078_v22 = vpop.f32.mrb[13].mxu0 }
 0x116   :  { %v4079_v23 = vadd.f32 %v4078_v22, %v4077_v20  ;;  %v4080_v24 = vpop.f32.mrb[14].mxu0  ;;  %v4141_v25 = vpop.f32.mrb[12].mxu1 }
 0x117   :  { %v4081_v26 = vpop.f32.mrb[15].mxu0  ;;  %v4142_v29 = vpop.f32.mrb[13].mxu1 }
 0x118   :  { %v710_v27 = vadd.f32 %v4079_v23, %v5943_v34  ;;  %v4082_v28 = vadd.f32 %v4081_v26, %v4080_v24  ;;  %v4143_v30 = vadd.f32 %v4142_v29, %v4141_v25  ;;  %v4144_v31 = vpop.f32.mrb[14].mxu1 }
 0x119   :  { %v4145_v33 = vpop.f32.mrb[15].mxu1 }
 0x11a   :  { %v713_v32 = vadd.f32 %v4082_v28, %v5943_v34  ;;  %v5974_v35 = vadd.f32 %v4143_v30, %v710_v27  ;;  %v4146_v36 = vadd.f32 %v4145_v33, %v4144_v31 }
 0x11c   :  { %v4083_v37 = vpop.f32.mrb[16].mxu0  ;;  %v5976_v38 = vadd.f32 %v4146_v36, %v713_v32 }
 0x11d   :  { %v4084_v39 = vpop.f32.mrb[17].mxu0 }
 0x11e   :  { %v4085_v40 = vadd.f32 %v4084_v39, %v4083_v37  ;;  %v4086_v41 = vpop.f32.mrb[18].mxu0  ;;  %v4147_v42 = vpop.f32.mrb[16].mxu1 }
 0x11f   :  { %v4087_v43 = vpop.f32.mrb[19].mxu0  ;;  %v4148_v46 = vpop.f32.mrb[17].mxu1 }
 0x120   :  { %v718_v44 = vadd.f32 %v4085_v40, %v5943_v34  ;;  %v4088_v45 = vadd.f32 %v4087_v43, %v4086_v41  ;;  %v4149_v48 = vadd.f32 %v4148_v46, %v4147_v42  ;;  %v4150_v49 = vpop.f32.mrb[18].mxu1 }
 0x121   :  { %v4151_v52 = vpop.f32.mrb[19].mxu1 }
 0x122   :  { %v721_v51 = vadd.f32 %v4088_v45, %v5943_v34  ;;  %v5980_v53 = vadd.f32 %v4149_v48, %v718_v44  ;;  %v4152_v54 = vadd.f32 %v4151_v52, %v4150_v49 }
 0x124   :  { %v4089_v55 = vpop.f32.mrb[20].mxu0  ;;  %v5982_v56 = vadd.f32 %v4152_v54, %v721_v51 }
 0x125   :  { %v4090_v57 = vpop.f32.mrb[21].mxu0 }
 0x126   :  { %v4091_v58 = vadd.f32 %v4090_v57, %v4089_v55  ;;  %v4092_v59 = vpop.f32.mrb[22].mxu0  ;;  %v4153_v60 = vpop.f32.mrb[20].mxu1 }
 0x127   :  { %v4093_v61 = vpop.f32.mrb[23].mxu0  ;;  %v4154_v1 = vpop.f32.mrb[21].mxu1 }
 0x128   :  { %v726_v62 = vadd.f32 %v4091_v58, %v5943_v34  ;;  %v4094_v0 = vadd.f32 %v4093_v61, %v4092_v59  ;;  %v4155_v2 = vadd.f32 %v4154_v1, %v4153_v60  ;;  %v4156_v4 = vpop.f32.mrb[22].mxu1 }
 0x129   :  { %v4157_v6 = vpop.f32.mrb[23].mxu1 }
 0x12a   :  { %v729_v5 = vadd.f32 %v4094_v0, %v5943_v34  ;;  %v5986_v7 = vadd.f32 %v4155_v2, %v726_v62  ;;  %v4158_v8 = vadd.f32 %v4157_v6, %v4156_v4 }
 0x12c   :  { %v4095_v9 = vpop.f32.mrb[24].mxu0  ;;  %v5988_v10 = vadd.f32 %v4158_v8, %v729_v5 }
 0x12d   :  { %v4096_v11 = vpop.f32.mrb[25].mxu0 }
 0x12e   :  { %v4097_v12 = vadd.f32 %v4096_v11, %v4095_v9  ;;  %v4098_v13 = vpop.f32.mrb[26].mxu0  ;;  %v4159_v14 = vpop.f32.mrb[24].mxu1 }
 0x12f   :  { %v4099_v15 = vpop.f32.mrb[27].mxu0  ;;  %v4160_v19 = vpop.f32.mrb[25].mxu1 }
 0x130   :  { %v734_v16 = vadd.f32 %v4097_v12, %v5943_v34  ;;  %v4100_v17 = vadd.f32 %v4099_v15, %v4098_v13  ;;  %v4161_v20 = vadd.f32 %v4160_v19, %v4159_v14  ;;  %v4162_v22 = vpop.f32.mrb[26].mxu1 }
 0x131   :  { %v4163_v24 = vpop.f32.mrb[27].mxu1 }
 0x132   :  { %v737_v23 = vadd.f32 %v4100_v17, %v5943_v34  ;;  %v5992_v25 = vadd.f32 %v4161_v20, %v734_v16  ;;  %v4164_v26 = vadd.f32 %v4163_v24, %v4162_v22 }
 0x134   :  { %v4101_v27 = vpop.f32.mrb[28].mxu0  ;;  %v5994_v28 = vadd.f32 %v4164_v26, %v737_v23 }
 0x135   :  { %v4102_v29 = vpop.f32.mrb[29].mxu0 }
 0x136   :  { %v4103_v30 = vadd.f32 %v4102_v29, %v4101_v27  ;;  %v4104_v31 = vpop.f32.mrb[30].mxu0  ;;  %v4165_v32 = vpop.f32.mrb[28].mxu1 }
 0x137   :  { %v4105_v33 = vpop.f32.mrb[31].mxu0  ;;  %v4166_v39 = vpop.f32.mrb[29].mxu1 }
 0x138   :  { %v742_v36 = vadd.f32 %v4103_v30, %v5943_v34  ;;  %v4106_v37 = vadd.f32 %v4105_v33, %v4104_v31  ;;  %v4167_v40 = vadd.f32 %v4166_v39, %v4165_v32  ;;  %v4168_v41 = vpop.f32.mrb[30].mxu1 }
 0x139   :  { %v4169_v43 = vpop.f32.mrb[31].mxu1 }
 0x13a   :  { %v745_v42 = vadd.f32 %v4106_v37, %v5943_v34  ;;  %v5998_v44 = vadd.f32 %v4167_v40, %v742_v36  ;;  %v4170_v45 = vadd.f32 %v4169_v43, %v4168_v41 }
 0x13c   :  { %v4187_v46 = vpop.f32.mrb[32].mxu0  ;;  %v6000_v48 = vadd.f32 %v4170_v45, %v745_v42 }
 0x13d   :  { %v4188_v49 = vpop.f32.mrb[33].mxu0 }
 0x13e   :  { %v4189_v51 = vadd.f32 %v4188_v49, %v4187_v46  ;;  %v4190_v52 = vpop.f32.mrb[34].mxu0  ;;  %v4338_v55 = vpop.f32.mrb[32].mxu1 }
 0x13f   :  { %v4191_v54 = vpop.f32.mrb[35].mxu0  ;;  %v976_v59 = vpop.f32.mrb[33].mxu1 }
 0x140   :  { %v4192_v57 = vadd.f32 %v4191_v54, %v4190_v52  ;;  %v880_v58 = vadd.f32 %v4189_v51, %v5947_v47  ;;  %v4339_v60 = vpop.f32.mrb[34].mxu1 }
 0x141   :  { %v979_v62 = vpop.f32.mrb[35].mxu1 }
 0x142   :  { %v977_v61 = vadd.f32 %v976_v59, %v880_v58  ;;  %v883_v34 = vadd.f32 %v4192_v57, %v5949_v50 }
 0x144   :  { %v980_v0 = vadd.f32 %v979_v62, %v883_v34  ;;  %v4193_v1 = vpop.f32.mrb[36].mxu0  ;;  %4688 = vtanh.f32 %v977_v61 }
 0x145   :  { %v4194_v2 = vpop.f32.mrb[37].mxu0 }
 0x146   :  { %4690 = vtanh.f32 %v980_v0  ;;  %v4195_v4 = vadd.f32 %v4194_v2, %v4193_v1  ;;  %v4196_v5 = vpop.f32.mrb[38].mxu0  ;;  %v4342_v8 = vpop.f32.mrb[36].mxu1 }
 0x147   :  { %v4197_v6 = vpop.f32.mrb[39].mxu0  ;;  %v992_v12 = vpop.f32.mrb[37].mxu1 }
 0x148   :  { %v888_v9 = vadd.f32 %v4195_v4, %v5953_v63  ;;  %v4198_v11 = vadd.f32 %v4197_v6, %v4196_v5  ;;  %v4343_v47 = vpop.f32.mrb[38].mxu1 }
 0x149   :  { %v995_v15 = vpop.f32.mrb[39].mxu1 }
 0x14a   :  { %v985_v13 = vadd.f32 %v4338_v55, %v888_v9  ;;  %v891_v14 = vadd.f32 %v4198_v11, %v5958_v3 }
 0x14c   :  { %v988_v50 = vadd.f32 %v4339_v60, %v891_v14  ;;  %v4199_v16 = vpop.f32.mrb[40].mxu0  ;;  %4692 = vtanh.f32 %v985_v13 }
 0x14d   :  { %v4200_v17 = vpop.f32.mrb[41].mxu0 }
 0x14e   :  { %4694 = vtanh.f32 %v988_v50  ;;  %v4201_v19 = vadd.f32 %v4200_v17, %v4199_v16  ;;  %v4202_v20 = vpop.f32.mrb[42].mxu0  ;;  %v4689_v22 = vpop.eup %4688 }
 0x14f   :  { %v4203_v23 = vpop.f32.mrb[43].mxu0  ;;  %v4346_v24 = vpop.f32.mrb[40].mxu1 }
 0x150   :  { %v4691_v26 = vpop.eup %4690  ;;  %v4204_v27 = vadd.f32 %v4203_v23, %v4202_v20  ;;  %v896_v63 = vadd.f32 %v4201_v19, %v5968_v18  ;;  %v1008_v29 = vpop.f32.mrb[41].mxu1 }
 0x151   :  { %v1055_v30 = vpack.c.bf16 %v4691_v26, %v4689_v22  ;;  %v4347_v31 = vpop.f32.mrb[42].mxu1 }
 0x152   :  { %v993_v32 = vadd.f32 %v992_v12, %v896_v63  ;;  %v899_v3 = vadd.f32 %v4204_v27, %v5970_v21  ;;  %v1011_v33 = vpop.f32.mrb[43].mxu1 }
 0x153   :  { %4368 = vmatprep.mubr.bf16.mxu1 %v1055_v30 }
 0x154   :  { %v996_v36 = vadd.f32 %v995_v15, %v899_v3  ;;  %v4205_v37 = vpop.f32.mrb[44].mxu0  ;;  %4696 = vtanh.f32 %v993_v32 }
 0x155   :  { %v4206_v39 = vpop.f32.mrb[45].mxu0 }
 0x156   :  { %4698 = vtanh.f32 %v996_v36  ;;  %v4207_v40 = vadd.f32 %v4206_v39, %v4205_v37  ;;  %v4208_v41 = vpop.f32.mrb[46].mxu0  ;;  %v4693_v42 = vpop.eup %4692 }
 0x157   :  { %v4209_v43 = vpop.f32.mrb[47].mxu0  ;;  %v6008_v45 = vpop.f32.mrb[44].mxu1 }
 0x158   :  { %v4695_v18 = vpop.eup %4694  ;;  %v904_v46 = vadd.f32 %v4207_v40, %v5974_v35  ;;  %v4210_v49 = vadd.f32 %v4209_v43, %v4208_v41  ;;  %v1024_v51 = vpop.f32.mrb[45].mxu1 }
 0x159   :  { %v1056_v52 = vpack.c.bf16 %v4695_v18, %v4693_v42  ;;  %v6011_v21 = vpop.f32.mrb[46].mxu1 }
 0x15a   :  { %v1001_v54 = vadd.f32 %v4342_v8, %v904_v46  ;;  %v907_v55 = vadd.f32 %v4210_v49, %v5976_v38  ;;  %v1027_v57 = vpop.f32.mrb[47].mxu1 }
 0x15b   :  { %4369 = vmatmul.mubr.bf16.vlgmr.msra.gmra.mrb[48].mxu1 %v1056_v52 }
 0x15c   :  { %v1004_v58 = vadd.f32 %v4343_v47, %v907_v55  ;;  %v4211_v59 = vpop.f32.mrb[48].mxu0  ;;  %4700 = vtanh.f32 %v1001_v54 }
 0x15d   :  { %v4212_v60 = vpop.f32.mrb[49].mxu0 }
 0x15e   :  { %4702 = vtanh.f32 %v1004_v58  ;;  %v4213_v61 = vadd.f32 %v4212_v60, %v4211_v59  ;;  %v4214_v34 = vpop.f32.mrb[50].mxu0  ;;  %v4697_v62 = vpop.eup %4696 }
 0x15f   :  { %v4215_v0 = vpop.f32.mrb[51].mxu0 }
 0x160   :  { %v4699_v35 = vpop.eup %4698  ;;  %v4216_v1 = vadd.f32 %v4215_v0, %v4214_v34  ;;  %v912_v2 = vadd.f32 %v4213_v61, %v5980_v53 }
 0x161   :  { %v1057_v4 = vpack.c.bf16 %v4699_v35, %v4697_v62 }
 0x162   :  { %v1009_v5 = vadd.f32 %v1008_v29, %v912_v2  ;;  %v915_v6 = vadd.f32 %v4216_v1, %v5982_v56 }
 0x163   :  { %4372 = vmatprep.mubr.bf16.mxu1 %v1057_v4 }
 0x164   :  { %v1012_v38 = vadd.f32 %v1011_v33, %v915_v6  ;;  %v4217_v8 = vpop.f32.mrb[52].mxu0  ;;  %4704 = vtanh.f32 %v1009_v5 }
 0x165   :  { %v4218_v9 = vpop.f32.mrb[53].mxu0 }
 0x166   :  { %4706 = vtanh.f32 %v1012_v38  ;;  %v4219_v11 = vadd.f32 %v4218_v9, %v4217_v8  ;;  %v4220_v12 = vpop.f32.mrb[54].mxu0  ;;  %v4701_v47 = vpop.eup %4700 }
 0x167   :  { %v4221_v13 = vpop.f32.mrb[55].mxu0 }
 0x168   :  { %v4703_v14 = vpop.eup %4702  ;;  %v920_v15 = vadd.f32 %v4219_v11, %v5986_v7  ;;  %v4222_v50 = vadd.f32 %v4221_v13, %v4220_v12 }
 0x169   :  { %v1058_v16 = vpack.c.bf16 %v4703_v14, %v4701_v47 }
 0x16a   :  { %v1017_v53 = vadd.f32 %v4346_v24, %v920_v15  ;;  %v923_v17 = vadd.f32 %v4222_v50, %v5988_v10 }
 0x16b   :  { %4373 = vmatmul.mubr.bf16.gmra.mrb[52].mxu1 %v1058_v16 }
 0x16c   :  { %v1020_v56 = vadd.f32 %v4347_v31, %v923_v17  ;;  %v4223_v19 = vpop.f32.mrb[56].mxu0  ;;  %4708 = vtanh.f32 %v1017_v53 }
 0x16d   :  { %v4224_v20 = vpop.f32.mrb[57].mxu0 }
 0x16e   :  { %4710 = vtanh.f32 %v1020_v56  ;;  %v4225_v22 = vadd.f32 %v4224_v20, %v4223_v19  ;;  %v4226_v23 = vpop.f32.mrb[58].mxu0  ;;  %v4705_v26 = vpop.eup %4704 }
 0x16f   :  { %v4227_v27 = vpop.f32.mrb[59].mxu0 }
 0x170   :  { %v4707_v63 = vpop.eup %4706  ;;  %v4228_v29 = vadd.f32 %v4227_v27, %v4226_v23  ;;  %v928_v30 = vadd.f32 %v4225_v22, %v5992_v25 }
 0x171   :  { %v1059_v7 = vpack.c.bf16 %v4707_v63, %v4705_v26 }
 0x172   :  { %v1025_v32 = vadd.f32 %v1024_v51, %v928_v30  ;;  %v931_v24 = vadd.f32 %v4228_v29, %v5994_v28 }
 0x173   :  { %4376 = vmatprep.mubr.bf16.mxu1 %v1059_v7 }
 0x174   :  { %v1028_v10 = vadd.f32 %v1027_v57, %v931_v24  ;;  %v4229_v3 = vpop.f32.mrb[60].mxu0  ;;  %4712 = vtanh.f32 %v1025_v32 }
 0x175   :  { %v4230_v31 = vpop.f32.mrb[61].mxu0 }
 0x176   :  { %4714 = vtanh.f32 %v1028_v10  ;;  %v4231_v33 = vadd.f32 %v4230_v31, %v4229_v3  ;;  %v4232_v36 = vpop.f32.mrb[62].mxu0  ;;  %v4709_v37 = vpop.eup %4708 }
 0x177   :  { %v4233_v39 = vpop.f32.mrb[63].mxu0 }
 0x178   :  { %v4711_v40 = vpop.eup %4710  ;;  %v936_v41 = vadd.f32 %v4231_v33, %v5998_v44  ;;  %v4234_v42 = vadd.f32 %v4233_v39, %v4232_v36  ;;  %v4593_v44 = vld [vmem:[%s7251_s5 + $0x18] sm:$0xff]  }
 0x179   :  { %v1060_v43 = vpack.c.bf16 %v4711_v40, %v4709_v37  ;;  %4390 = vmatprep.subr.bf16.mxu0 %v4593_v44 }
 0x17a   :  { %v1033_v25 = vadd.f32 %v6008_v45, %v936_v41  ;;  %v939_v18 = vadd.f32 %v4234_v42, %v6000_v48  ;;  %4391 = vmatpush3.bf16.msra.mxu0 %v4593_v44  ;;  %v4594_v48 = vld [vmem:[%s7252_s7] sm:$0xff]   ;;  %v4600_v44 = vld [vmem:[%s7254_s9 + $0x28] sm:$0xff]  }
 0x17b   :  { %4377 = vmatmul.mubr.bf16.gmra.mrb[56].mxu1 %v1060_v43  ;;  %4408 = vmatprep.subr.bf16.mxu1 %v4594_v48  ;;  %v6033_v45 = vld [vmem:[%s7253_s4] ss:$0 sm:$0xff] }
 0x17c   :  { %v1036_v28 = vadd.f32 %v6011_v21, %v939_v18  ;;  %4716 = vtanh.f32 %v1033_v25  ;;  %4409 = vmatpush3.bf16.msra.mxu1 %v4594_v48  ;;  %v6080_v48 = vld [vmem:[%s7255_s6] ss:$0 sm:$0xff] }
 0x17e   :  { %4718 = vtanh.f32 %v1036_v28  ;;  %v4713_v46 = vpop.eup %4712 }
 0x180   :  { %v4715_v49 = vpop.eup %4714 }
 0x181   :  { %v1061_v51 = vpack.c.bf16 %v4715_v49, %v4713_v46  ;;  %v4595_v49 = vld [vmem:[%s7254_s9] sm:$0xff]  }
 0x182   :  { %4426 = vmatprep.subr.bf16.mxu0 %v4595_v49 }
 0x183   :  { %4380 = vmatprep.mubr.bf16.mxu1 %v1061_v51  ;;  %v4596_v51 = vld [vmem:[%s7254_s9 + $0x8] sm:$0xff]  }
 0x186   :  { %v4717_v52 = vpop.eup %4716 }
 0x188   :  { %v4719_v54 = vpop.eup %4718 }
 0x189   :  { %v1062_v55 = vpack.c.bf16 %v4719_v54, %v4717_v52  ;;  %v4597_v52 = vld [vmem:[%s7254_s9 + $0x10] sm:$0xff]   ;;  %v4598_v54 = vld [vmem:[%s7254_s9 + $0x18] sm:$0xff]  }
 0x18b   :  { %4381 = vmatmul.mubr.bf16.gmra.mrb[60].mxu1 %v1062_v55  ;;  %v4599_v55 = vld [vmem:[%s7254_s9 + $0x20] sm:$0xff]  }
 0x22e   :  { %v4370_v21 = vpop.f32.mrb[48].mxu1 }
 0x22f   :  { %v1177_v57 = vadd.f32 %v4370_v21, %v6033_v45  ;;  %v1168_v58 = vpop.f32.mrb[49].mxu1 }
 0x230   :  { %v1169_v59 = vadd.f32 %v6033_v45, %v1168_v58  ;;  %v4371_v60 = vpop.f32.mrb[50].mxu1 }
 0x231   :  { %4720 = vtanh.f32 %v1177_v57  ;;  %v1180_v61 = vadd.f32 %v4371_v60, %v6033_v45  ;;  %v1171_v34 = vpop.f32.mrb[51].mxu1 }
 0x232   :  { %4722 = vtanh.f32 %v1169_v59  ;;  %v1172_v62 = vadd.f32 %v6033_v45, %v1171_v34 }
 0x233   :  { %4724 = vtanh.f32 %v1180_v61 }
 0x234   :  { %4726 = vtanh.f32 %v1172_v62 }
 0x23b   :  { %v4721_v0 = vpop.eup %4720 }
 0x23c   :  { %v4723_v35 = vpop.eup %4722 }
 0x23d   :  { %v4725_v1 = vpop.eup %4724 }
 0x23e   :  { %v4727_v2 = vpop.eup %4726  ;;  %v1248_v4 = vpack.c.bf16 %v4725_v1, %v4721_v0  ;;  %v4374_v5 = vpop.f32.mrb[52].mxu1 }
 0x23f   :  { %v1193_v6 = vadd.f32 %v4374_v5, %v6033_v45  ;;  %v1184_v38 = vpop.f32.mrb[53].mxu1  ;;  %v1247_v8 = vpack.c.bf16 %v4727_v2, %v4723_v35 }
 0x240   :  { %v1185_v9 = vadd.f32 %v6033_v45, %v1184_v38  ;;  %v4375_v11 = vpop.f32.mrb[54].mxu1 }
 0x241   :  { %4728 = vtanh.f32 %v1193_v6  ;;  %v1196_v12 = vadd.f32 %v4375_v11, %v6033_v45  ;;  %v1187_v47 = vpop.f32.mrb[55].mxu1  ;;  %4392 = vmatprep.mubr.msk.bf16.mxu0 %vm1294_vm1, %v1247_v8 }
 0x242   :  { %4730 = vtanh.f32 %v1185_v9  ;;  %v1188_v13 = vadd.f32 %v6033_v45, %v1187_v47  ;;  %4393 = vmatmul.mubr.msk.bf16.vlgmr.msra.gmra.mrb[64].mxu0 %vm1294_vm1, %v1248_v4 }
 0x243   :  { %4732 = vtanh.f32 %v1196_v12  ;;  %4427 = vmatpush3.bf16.msra.mxu0 %v4595_v49  ;;  %v4602_v49 = vld [vmem:[%s7254_s9 + $0x38] sm:$0xff]  }
 0x244   :  { %4734 = vtanh.f32 %v1188_v13  ;;  %4428 = vmatprep.subr.bf16.mxu0 %v4596_v51 }
 0x247   :  { %4429 = vmatpush3.bf16.msra.mxu0 %v4596_v51  ;;  %v4603_v51 = vld [vmem:[%s7256_s11] sm:$0xff]  }
 0x248   :  { %4430 = vmatprep.subr.bf16.mxu0 %v4597_v52  ;;  %4458 = vmatprep.subr.bf16.mxu1 %v4603_v51 }
 0x24b   :  { %v4729_v14 = vpop.eup %4728  ;;  %4431 = vmatpush3.bf16.msra.mxu0 %v4597_v52  ;;  %v3833_v52 = vld [vmem:[%s7257_s8] ss:$0 sm:$0xff] }
 0x24c   :  { %v4731_v15 = vpop.eup %4730  ;;  %4432 = vmatprep.subr.bf16.mxu0 %v4598_v54 }
 0x24d   :  { %v4733_v50 = vpop.eup %4732 }
 0x24e   :  { %v4735_v16 = vpop.eup %4734  ;;  %v4378_v53 = vpop.f32.mrb[56].mxu1  ;;  %v1250_v17 = vpack.c.bf16 %v4733_v50, %v4729_v14 }
 0x24f   :  { %v1209_v56 = vadd.f32 %v4378_v53, %v6033_v45  ;;  %v1200_v19 = vpop.f32.mrb[57].mxu1  ;;  %v1249_v20 = vpack.c.bf16 %v4735_v16, %v4731_v15  ;;  %4433 = vmatpush3.bf16.msra.mxu0 %v4598_v54 }
 0x250   :  { %v1201_v22 = vadd.f32 %v6033_v45, %v1200_v19  ;;  %v4379_v23 = vpop.f32.mrb[58].mxu1  ;;  %4434 = vmatprep.subr.bf16.mxu0 %v4599_v55 }
 0x251   :  { %4736 = vtanh.f32 %v1209_v56  ;;  %v1212_v26 = vadd.f32 %v4379_v23, %v6033_v45  ;;  %v1203_v27 = vpop.f32.mrb[59].mxu1  ;;  %4396 = vmatprep.mubr.msk.bf16.mxu0 %vm1294_vm1, %v1249_v20 }
 0x252   :  { %4738 = vtanh.f32 %v1201_v22  ;;  %v1204_v63 = vadd.f32 %v6033_v45, %v1203_v27  ;;  %4397 = vmatmul.mubr.msk.bf16.gmra.mrb[68].mxu0 %vm1294_vm1, %v1250_v17 }
 0x253   :  { %4740 = vtanh.f32 %v1212_v26  ;;  %4435 = vmatpush3.bf16.msra.mxu0 %v4599_v55 }
 0x254   :  { %4742 = vtanh.f32 %v1204_v63  ;;  %4436 = vmatprep.subr.bf16.mxu0 %v4600_v44 }
 0x257   :  { %4437 = vmatpush3.bf16.msra.mxu0 %v4600_v44 }
 0x25b   :  { %v4737_v29 = vpop.eup %4736 }
 0x25c   :  { %v4739_v30 = vpop.eup %4738 }
 0x25d   :  { %v4741_v7 = vpop.eup %4740 }
 0x25e   :  { %v4743_v32 = vpop.eup %4742  ;;  %v4382_v24 = vpop.f32.mrb[60].mxu1  ;;  %v1252_v10 = vpack.c.bf16 %v4741_v7, %v4737_v29 }
 0x25f   :  { %v1225_v3 = vadd.f32 %v4382_v24, %v6033_v45  ;;  %v1216_v31 = vpop.f32.mrb[61].mxu1  ;;  %v1251_v33 = vpack.c.bf16 %v4743_v32, %v4739_v30 }
 0x260   :  { %v1217_v36 = vadd.f32 %v6033_v45, %v1216_v31  ;;  %v4383_v37 = vpop.f32.mrb[62].mxu1 }
 0x261   :  { %4744 = vtanh.f32 %v1225_v3  ;;  %v1228_v39 = vadd.f32 %v4383_v37, %v6033_v45  ;;  %v1219_v40 = vpop.f32.mrb[63].mxu1  ;;  %4400 = vmatprep.mubr.msk.bf16.mxu0 %vm1294_vm1, %v1251_v33 }
 0x262   :  { %4746 = vtanh.f32 %v1217_v36  ;;  %v1220_v41 = vadd.f32 %v6033_v45, %v1219_v40  ;;  %4401 = vmatmul.mubr.msk.bf16.gmra.mrb[72].mxu0 %vm1294_vm1, %v1252_v10 }
 0x263   :  { %4748 = vtanh.f32 %v1228_v39 }
 0x264   :  { %4750 = vtanh.f32 %v1220_v41 }
 0x26b   :  { %v4745_v42 = vpop.eup %4744 }
 0x26c   :  { %v4747_v43 = vpop.eup %4746 }
 0x26d   :  { %v4749_v25 = vpop.eup %4748 }
 0x26e   :  { %v4751_v18 = vpop.eup %4750  ;;  %v1254_v28 = vpack.c.bf16 %v4749_v25, %v4745_v42 }
 0x26f   :  { %v1253_v46 = vpack.c.bf16 %v4751_v18, %v4747_v43 }
 0x271   :  { %4404 = vmatprep.mubr.msk.bf16.mxu0 %vm1294_vm1, %v1253_v46  ;;  %v4601_v46 = vld [vmem:[%s7254_s9 + $0x30] sm:$0xff]  }
 0x272   :  { %4405 = vmatmul.mubr.msk.bf16.gmra.mrb[76].mxu0 %vm1294_vm1, %v1254_v28  ;;  %4438 = vmatprep.subr.bf16.mxu0 %v4601_v46 }
 0x273   :  { %4439 = vmatpush3.bf16.msra.mxu0 %v4601_v46 }
 0x274   :  { %4440 = vmatprep.subr.bf16.mxu0 %v4602_v49 }
 0x277   :  { %4441 = vmatpush3.bf16.msra.mxu0 %v4602_v49 }
 0x315   :  { %v4394_v45 = vpop.f32.mrb[64].mxu0 }
 0x316   :  { %v1362_v21 = vadd.f32 %v4394_v45, %v6080_v48  ;;  %v1353_v57 = vpop.f32.mrb[65].mxu0 }
 0x317   :  { %v1354_v58 = vadd.f32 %v6080_v48, %v1353_v57  ;;  %v4395_v59 = vpop.f32.mrb[66].mxu0 }
 0x318   :  { %4752 = vtanh.f32 %v1362_v21  ;;  %v1365_v60 = vadd.f32 %v4395_v59, %v6080_v48  ;;  %v1356_v61 = vpop.f32.mrb[67].mxu0 }
 0x319   :  { %4754 = vtanh.f32 %v1354_v58  ;;  %v1357_v34 = vadd.f32 %v6080_v48, %v1356_v61 }
 0x31a   :  { %4756 = vtanh.f32 %v1365_v60 }
 0x31b   :  { %4758 = vtanh.f32 %v1357_v34 }
 0x322   :  { %v4753_v62 = vpop.eup %4752 }
 0x323   :  { %v4755_v0 = vpop.eup %4754 }
 0x324   :  { %v4757_v35 = vpop.eup %4756 }
 0x325   :  { %v4759_v1 = vpop.eup %4758  ;;  %v1433_v2 = vpack.c.bf16 %v4757_v35, %v4753_v62  ;;  %v4398_v4 = vpop.f32.mrb[68].mxu0 }
 0x326   :  { %v1378_v5 = vadd.f32 %v4398_v4, %v6080_v48  ;;  %v1369_v6 = vpop.f32.mrb[69].mxu0  ;;  %v1432_v38 = vpack.c.bf16 %v4759_v1, %v4755_v0 }
 0x327   :  { %v1370_v8 = vadd.f32 %v6080_v48, %v1369_v6  ;;  %v4399_v9 = vpop.f32.mrb[70].mxu0 }
 0x328   :  { %4760 = vtanh.f32 %v1378_v5  ;;  %v1381_v11 = vadd.f32 %v4399_v9, %v6080_v48  ;;  %v1372_v12 = vpop.f32.mrb[71].mxu0  ;;  %4410 = vmatprep.mubr.msk.bf16.mxu1 %vm626_vm0, %v1432_v38 }
 0x329   :  { %4762 = vtanh.f32 %v1370_v8  ;;  %v1373_v47 = vadd.f32 %v6080_v48, %v1372_v12  ;;  %4411 = vmatmul.mubr.msk.bf16.vlgmr.msra.gmra.mrb[64].mxu1 %vm626_vm0, %v1433_v2 }
 0x32a   :  { %4764 = vtanh.f32 %v1381_v11  ;;  %4459 = vmatpush3.bf16.msra.mxu1 %v4603_v51 }
 0x32b   :  { %4766 = vtanh.f32 %v1373_v47 }
 0x332   :  { %v4761_v13 = vpop.eup %4760 }
 0x333   :  { %v4763_v14 = vpop.eup %4762 }
 0x334   :  { %v4765_v15 = vpop.eup %4764 }
 0x335   :  { %v4767_v50 = vpop.eup %4766  ;;  %v4402_v16 = vpop.f32.mrb[72].mxu0  ;;  %v1435_v53 = vpack.c.bf16 %v4765_v15, %v4761_v13 }
 0x336   :  { %v1394_v17 = vadd.f32 %v4402_v16, %v6080_v48  ;;  %v1385_v56 = vpop.f32.mrb[73].mxu0  ;;  %v1434_v19 = vpack.c.bf16 %v4767_v50, %v4763_v14 }
 0x337   :  { %v1386_v20 = vadd.f32 %v6080_v48, %v1385_v56  ;;  %v4403_v22 = vpop.f32.mrb[74].mxu0 }
 0x338   :  { %4768 = vtanh.f32 %v1394_v17  ;;  %v1397_v23 = vadd.f32 %v4403_v22, %v6080_v48  ;;  %v1388_v26 = vpop.f32.mrb[75].mxu0  ;;  %4414 = vmatprep.mubr.msk.bf16.mxu1 %vm626_vm0, %v1434_v19 }
 0x339   :  { %4770 = vtanh.f32 %v1386_v20  ;;  %v1389_v27 = vadd.f32 %v6080_v48, %v1388_v26  ;;  %4415 = vmatmul.mubr.msk.bf16.gmra.mrb[68].mxu1 %vm626_vm0, %v1435_v53 }
 0x33a   :  { %4772 = vtanh.f32 %v1397_v23 }
 0x33b   :  { %4774 = vtanh.f32 %v1389_v27 }
 0x342   :  { %v4769_v63 = vpop.eup %4768 }
 0x343   :  { %v4771_v29 = vpop.eup %4770 }
 0x344   :  { %v4773_v30 = vpop.eup %4772 }
 0x345   :  { %v4775_v7 = vpop.eup %4774  ;;  %v4406_v32 = vpop.f32.mrb[76].mxu0  ;;  %v1437_v24 = vpack.c.bf16 %v4773_v30, %v4769_v63  ;;  %v4604_v63 = vld [vmem:[%s7259_s13] sm:$0xff]  }
 0x346   :  { %v1410_v10 = vadd.f32 %v4406_v32, %v6080_v48  ;;  %v1401_v3 = vpop.f32.mrb[77].mxu0  ;;  %v1436_v31 = vpack.c.bf16 %v4775_v7, %v4771_v29  ;;  %v4605_v29 = vld [vmem:[%s7259_s13 + $0x8] sm:$0xff]   ;;  %4476 = vmatprep.subr.bf16.mxu0 %v4604_v63  ;;  %v6175_v30 = vld [vmem:[%s7260_s10] ss:$0 sm:$0xff] }
 0x347   :  { %v1402_v33 = vadd.f32 %v6080_v48, %v1401_v3  ;;  %v4407_v36 = vpop.f32.mrb[78].mxu0 }
 0x348   :  { %4776 = vtanh.f32 %v1410_v10  ;;  %v1413_v37 = vadd.f32 %v4407_v36, %v6080_v48  ;;  %v1404_v39 = vpop.f32.mrb[79].mxu0  ;;  %4418 = vmatprep.mubr.msk.bf16.mxu1 %vm626_vm0, %v1436_v31 }
 0x349   :  { %4778 = vtanh.f32 %v1402_v33  ;;  %v1405_v40 = vadd.f32 %v6080_v48, %v1404_v39  ;;  %4419 = vmatmul.mubr.msk.bf16.gmra.mrb[72].mxu1 %vm626_vm0, %v1437_v24 }
 0x34a   :  { %4780 = vtanh.f32 %v1413_v37 }
 0x34b   :  { %4782 = vtanh.f32 %v1405_v40 }
 0x352   :  { %v4777_v41 = vpop.eup %4776 }
 0x353   :  { %v4779_v42 = vpop.eup %4778 }
 0x354   :  { %v4781_v43 = vpop.eup %4780 }
 0x355   :  { %v4783_v25 = vpop.eup %4782  ;;  %v1439_v18 = vpack.c.bf16 %v4781_v43, %v4777_v41 }
 0x356   :  { %v1438_v28 = vpack.c.bf16 %v4783_v25, %v4779_v42 }
 0x358   :  { %4422 = vmatprep.mubr.msk.bf16.mxu1 %vm626_vm0, %v1438_v28 }
 0x359   :  { %4423 = vmatmul.mubr.msk.bf16.gmra.mrb[76].mxu1 %vm626_vm0, %v1439_v18 }
 0x3fc   :  { %v4412_v54 = vpop.f32.mrb[64].mxu1 }
 0x3fd   :  { %v1522_v55 = vadd.f32 %v4412_v54, %v3833_v52  ;;  %v1513_v44 = vpop.f32.mrb[65].mxu1 }
 0x3fe   :  { %v1514_v48 = vadd.f32 %v3833_v52, %v1513_v44  ;;  %v4413_v45 = vpop.f32.mrb[66].mxu1 }
 0x3ff   :  { %1578 = vst [vmem:[%s7258_s17 + $0x10] sm:$0xff] %v1522_v55  ;;  %v1525_v21 = vadd.f32 %v4413_v45, %v3833_v52  ;;  %v1516_v57 = vpop.f32.mrb[67].mxu1 }
 0x400   :  { %1576 = vst [vmem:[%s7258_s17] sm:$0xff] %v1514_v48  ;;  %v1517_v58 = vadd.f32 %v3833_v52, %v1516_v57 }
 0x401   :  { %1579 = vst [vmem:[%s7258_s17 + $0x18] sm:$0xff] %v1525_v21  ;;  %v1593_v59 = vpack.c.bf16 %v1525_v21, %v1522_v55 }
 0x402   :  { %1577 = vst [vmem:[%s7258_s17 + $0x8] sm:$0xff] %v1517_v58  ;;  %v1592_v60 = vpack.c.bf16 %v1517_v58, %v1514_v48 }
 0x404   :  { %4442 = vmatprep.mubr.bf16.mxu0 %v1592_v60 }
 0x405   :  { %4443 = vmatmul.mubr.bf16.vlgmr.msra.gmra.mrb[80].mxu0 %v1593_v59 }
 0x406   :  { %4477 = vmatpush3.bf16.msra.mxu0 %v4604_v63  ;;  %v4616_v63 = vld [vmem:[%s7261_s15 + $0x3c] ss:$28 sps:$4 sm:$0xff]  }
 0x407   :  { %4478 = vmatprep.subr.bf16.mxu0 %v4605_v29 }
 0x40a   :  { %4479 = vmatpush3.bf16.msra.mxu0 %v4605_v29  ;;  %v4614_v29 = vld [vmem:[%s7261_s15 + $0x38] ss:$28 sps:$4 sm:$0xff]  }
 0x40c   :  { %v4416_v61 = vpop.f32.mrb[68].mxu1 }
 0x40d   :  { %v1538_v34 = vadd.f32 %v4416_v61, %v3833_v52  ;;  %v1529_v62 = vpop.f32.mrb[69].mxu1 }
 0x40e   :  { %v1530_v0 = vadd.f32 %v3833_v52, %v1529_v62  ;;  %v4417_v35 = vpop.f32.mrb[70].mxu1 }
 0x40f   :  { %1582 = vst [vmem:[%s7258_s17 + $0x30] sm:$0xff] %v1538_v34  ;;  %v1541_v1 = vadd.f32 %v4417_v35, %v3833_v52  ;;  %v1532_v2 = vpop.f32.mrb[71].mxu1 }
 0x410   :  { %1580 = vst [vmem:[%s7258_s17 + $0x20] sm:$0xff] %v1530_v0  ;;  %v1533_v4 = vadd.f32 %v3833_v52, %v1532_v2 }
 0x411   :  { %1583 = vst [vmem:[%s7258_s17 + $0x38] sm:$0xff] %v1541_v1  ;;  %v1595_v5 = vpack.c.bf16 %v1541_v1, %v1538_v34 }
 0x412   :  { %1581 = vst [vmem:[%s7258_s17 + $0x28] sm:$0xff] %v1533_v4  ;;  %v1594_v6 = vpack.c.bf16 %v1533_v4, %v1530_v0 }
 0x414   :  { %4446 = vmatprep.mubr.bf16.mxu0 %v1594_v6 }
 0x415   :  { %4447 = vmatmul.mubr.bf16.gmra.mrb[84].mxu0 %v1595_v5 }
 0x41c   :  { %v4420_v38 = vpop.f32.mrb[72].mxu1 }
 0x41d   :  { %v1554_v8 = vadd.f32 %v4420_v38, %v3833_v52  ;;  %v1545_v9 = vpop.f32.mrb[73].mxu1 }
 0x41e   :  { %v1546_v11 = vadd.f32 %v3833_v52, %v1545_v9  ;;  %v4421_v12 = vpop.f32.mrb[74].mxu1 }
 0x41f   :  { %1586 = vst [vmem:[%s7258_s17 + $0x50] sm:$0xff] %v1554_v8  ;;  %v1557_v47 = vadd.f32 %v4421_v12, %v3833_v52  ;;  %v1548_v13 = vpop.f32.mrb[75].mxu1 }
 0x420   :  { %1584 = vst [vmem:[%s7258_s17 + $0x40] sm:$0xff] %v1546_v11  ;;  %v1549_v14 = vadd.f32 %v3833_v52, %v1548_v13 }
 0x421   :  { %1587 = vst [vmem:[%s7258_s17 + $0x58] sm:$0xff] %v1557_v47  ;;  %v1597_v15 = vpack.c.bf16 %v1557_v47, %v1554_v8 }
 0x422   :  { %1585 = vst [vmem:[%s7258_s17 + $0x48] sm:$0xff] %v1549_v14  ;;  %v1596_v50 = vpack.c.bf16 %v1549_v14, %v1546_v11 }
 0x424   :  { %4450 = vmatprep.mubr.bf16.mxu0 %v1596_v50 }
 0x425   :  { %4451 = vmatmul.mubr.bf16.gmra.mrb[88].mxu0 %v1597_v15 }
 0x42c   :  { %v4424_v16 = vpop.f32.mrb[76].mxu1 }
 0x42d   :  { %v1570_v53 = vadd.f32 %v4424_v16, %v3833_v52  ;;  %v1561_v17 = vpop.f32.mrb[77].mxu1 }
 0x42e   :  { %v1562_v56 = vadd.f32 %v3833_v52, %v1561_v17  ;;  %v4425_v19 = vpop.f32.mrb[78].mxu1 }
 0x42f   :  { %1590 = vst [vmem:[%s7258_s17 + $0x70] sm:$0xff] %v1570_v53  ;;  %v1573_v20 = vadd.f32 %v4425_v19, %v3833_v52  ;;  %v1564_v22 = vpop.f32.mrb[79].mxu1 }
 0x430   :  { %1588 = vst [vmem:[%s7258_s17 + $0x60] sm:$0xff] %v1562_v56  ;;  %v1565_v23 = vadd.f32 %v3833_v52, %v1564_v22  ;;  %v4607_v22 = vld [vmem:[%s7259_s13 + $0x18] sm:$0xff]  }
 0x431   :  { %1591 = vst [vmem:[%s7258_s17 + $0x78] sm:$0xff] %v1573_v20  ;;  %v1599_v26 = vpack.c.bf16 %v1573_v20, %v1570_v53  ;;  %v4606_v20 = vld [vmem:[%s7259_s13 + $0x10] sm:$0xff]  }
 0x432   :  { %1589 = vst [vmem:[%s7258_s17 + $0x68] sm:$0xff] %v1565_v23  ;;  %v1598_v27 = vpack.c.bf16 %v1565_v23, %v1562_v56  ;;  %4480 = vmatprep.subr.bf16.mxu0 %v4606_v20  ;;  %v4608_v23 = vld [vmem:[%s7261_s15] ss:$28 sps:$4 sm:$0xff]  }
 0x433   :  { %4481 = vmatpush3.bf16.msra.mxu0 %v4606_v20 }
 0x434   :  { %4454 = vmatprep.mubr.bf16.mxu0 %v1598_v27  ;;  %4482 = vmatprep.subr.bf16.mxu0 %v4607_v22  ;;  %v4613_v27 = vld [vmem:[%s7261_s15 + $0xc] ss:$28 sps:$4 sm:$0xff]  }
 0x435   :  { %4455 = vmatmul.mubr.bf16.gmra.mrb[92].mxu0 %v1599_v26  ;;  %v4610_v26 = vld [vmem:[%s7261_s15 + $0x4] ss:$28 sps:$4 sm:$0xff]  }
 0x436   :  { %2525 = vmatprep.subr.bf16.mxu1 %v4610_v26 }
 0x437   :  { %4483 = vmatpush3.bf16.msra.mxu0 %v4607_v22 }
 0x438   :  { %2638 = vmatprep.subr.bf16.mxu0 %v4613_v27 }
 0x4d8   :  { %v4444_v7 = vpop.f32.mrb[80].mxu0 }
 0x4d9   :  { %v1714_v32 = vadd.f32 %v4444_v7, %v6175_v30  ;;  %v1705_v24 = vpop.f32.mrb[81].mxu0  ;;  %v4620_v7 = vld [vmem:[%s7261_s15 + $0x70] ss:$28 sps:$4 sm:$0xff]  }
 0x4da   :  { %v1706_v10 = vadd.f32 %v6175_v30, %v1705_v24  ;;  %v4445_v3 = vpop.f32.mrb[82].mxu0  ;;  %v4626_v24 = vld [vmem:[%s7261_s15 + $0xa8] ss:$28 sps:$4 sm:$0xff]  }
 0x4db   :  { %4784 = vtanh.f32 %v1714_v32  ;;  %v1717_v31 = vadd.f32 %v4445_v3, %v6175_v30  ;;  %v1708_v33 = vpop.f32.mrb[83].mxu0  ;;  %v4628_v32 = vld [vmem:[%s7261_s15 + $0xac] ss:$28 sps:$4 sm:$0xff]  }
 0x4dc   :  { %4786 = vtanh.f32 %v1706_v10  ;;  %v1709_v36 = vadd.f32 %v6175_v30, %v1708_v33  ;;  %v6237_v10 = vld [vmem:[%s7262_s12] ss:$0 sm:$0xff] }
 0x4dd   :  { %4788 = vtanh.f32 %v1717_v31 }
 0x4de   :  { %4790 = vtanh.f32 %v1709_v36 }
 0x4e5   :  { %v4785_v37 = vpop.eup %4784 }
 0x4e6   :  { %v4787_v39 = vpop.eup %4786 }
 0x4e7   :  { %v4789_v40 = vpop.eup %4788 }
 0x4e8   :  { %v4791_v41 = vpop.eup %4790  ;;  %v1785_v42 = vpack.c.bf16 %v4789_v40, %v4785_v37  ;;  %v4448_v43 = vpop.f32.mrb[84].mxu0 }
 0x4e9   :  { %v1730_v25 = vadd.f32 %v4448_v43, %v6175_v30  ;;  %v1721_v18 = vpop.f32.mrb[85].mxu0  ;;  %v1784_v28 = vpack.c.bf16 %v4791_v41, %v4787_v39 }
 0x4ea   :  { %v1722_v46 = vadd.f32 %v6175_v30, %v1721_v18  ;;  %v4449_v49 = vpop.f32.mrb[86].mxu0 }
 0x4eb   :  { %4792 = vtanh.f32 %v1730_v25  ;;  %v1733_v51 = vadd.f32 %v4449_v49, %v6175_v30  ;;  %v1724_v52 = vpop.f32.mrb[87].mxu0  ;;  %4460 = vmatprep.mubr.msk.bf16.mxu1 %vm626_vm0, %v1784_v28 }
 0x4ec   :  { %4794 = vtanh.f32 %v1722_v46  ;;  %v1725_v54 = vadd.f32 %v6175_v30, %v1724_v52  ;;  %4461 = vmatmul.mubr.msk.bf16.vlgmr.msra.gmra.mrb[80].mxu1 %vm626_vm0, %v1785_v42 }
 0x4ed   :  { %4796 = vtanh.f32 %v1733_v51  ;;  %2526 = vmatpush1.bf16.msra.mxu1 %v4608_v23 }
 0x4ee   :  { %4798 = vtanh.f32 %v1725_v54  ;;  %2527 = vmatprep.subr.bf16.mxu1 %v4616_v63  ;;  %v4611_v54 = vld [vmem:[%s7261_s15 + $0x8] ss:$28 sps:$4 sm:$0xff]  }
 0x4f1   :  { %2528 = vmatpush1.bf16.msra.mxu1 %v4614_v29 }
 0x4f5   :  { %v4793_v55 = vpop.eup %4792 }
 0x4f6   :  { %v4795_v44 = vpop.eup %4794 }
 0x4f7   :  { %v4797_v48 = vpop.eup %4796 }
 0x4f8   :  { %v4799_v45 = vpop.eup %4798  ;;  %v4452_v21 = vpop.f32.mrb[88].mxu0  ;;  %v1787_v57 = vpack.c.bf16 %v4797_v48, %v4793_v55  ;;  %v4619_v48 = vld [vmem:[%s7261_s15 + $0x44] ss:$28 sps:$4 sm:$0xff]  }
 0x4f9   :  { %v1746_v58 = vadd.f32 %v4452_v21, %v6175_v30  ;;  %v1737_v59 = vpop.f32.mrb[89].mxu0  ;;  %v1786_v60 = vpack.c.bf16 %v4799_v45, %v4795_v44 }
 0x4fa   :  { %v1738_v61 = vadd.f32 %v6175_v30, %v1737_v59  ;;  %v4453_v34 = vpop.f32.mrb[90].mxu0  ;;  %v4625_v59 = vld [vmem:[%s7261_s15 + $0x7c] ss:$28 sps:$4 sm:$0xff]  }
 0x4fb   :  { %4800 = vtanh.f32 %v1746_v58  ;;  %v1749_v62 = vadd.f32 %v4453_v34, %v6175_v30  ;;  %v1740_v0 = vpop.f32.mrb[91].mxu0  ;;  %4464 = vmatprep.mubr.msk.bf16.mxu1 %vm626_vm0, %v1786_v60  ;;  %v4617_v58 = vld [vmem:[%s7261_s15 + $0x40] ss:$28 sps:$4 sm:$0xff]   ;;  %v4623_v60 = vld [vmem:[%s7261_s15 + $0x78] ss:$28 sps:$4 sm:$0xff]  }
 0x4fc   :  { %4802 = vtanh.f32 %v1738_v61  ;;  %v1741_v35 = vadd.f32 %v6175_v30, %v1740_v0  ;;  %4465 = vmatmul.mubr.msk.bf16.gmra.mrb[84].mxu1 %vm626_vm0, %v1787_v57  ;;  %v4631_v61 = vld [vmem:[%s7261_s15 + $0xb4] ss:$28 sps:$4 sm:$0xff]  }
 0x4fd   :  { %4804 = vtanh.f32 %v1749_v62  ;;  %v4629_v62 = vld [vmem:[%s7261_s15 + $0xb0] ss:$28 sps:$4 sm:$0xff]  }
 0x4fe   :  { %4806 = vtanh.f32 %v1741_v35 }
 0x505   :  { %v4801_v1 = vpop.eup %4800 }
 0x506   :  { %v4803_v2 = vpop.eup %4802 }
 0x507   :  { %v4805_v4 = vpop.eup %4804 }
 0x508   :  { %v4807_v5 = vpop.eup %4806  ;;  %v4456_v6 = vpop.f32.mrb[92].mxu0  ;;  %v1789_v38 = vpack.c.bf16 %v4805_v4, %v4801_v1 }
 0x509   :  { %v1762_v8 = vadd.f32 %v4456_v6, %v6175_v30  ;;  %v1753_v9 = vpop.f32.mrb[93].mxu0  ;;  %v1788_v11 = vpack.c.bf16 %v4807_v5, %v4803_v2 }
 0x50a   :  { %v1754_v12 = vadd.f32 %v6175_v30, %v1753_v9  ;;  %v4457_v47 = vpop.f32.mrb[94].mxu0 }
 0x50b   :  { %4808 = vtanh.f32 %v1762_v8  ;;  %v1765_v13 = vadd.f32 %v4457_v47, %v6175_v30  ;;  %v1756_v14 = vpop.f32.mrb[95].mxu0  ;;  %4468 = vmatprep.mubr.msk.bf16.mxu1 %vm626_vm0, %v1788_v11 }
 0x50c   :  { %4810 = vtanh.f32 %v1754_v12  ;;  %v1757_v15 = vadd.f32 %v6175_v30, %v1756_v14  ;;  %4469 = vmatmul.mubr.msk.bf16.gmra.mrb[88].mxu1 %vm626_vm0, %v1789_v38  ;;  %v4622_v30 = vld [vmem:[%s7261_s15 + $0x74] ss:$28 sps:$4 sm:$0xff]  }
 0x50d   :  { %4812 = vtanh.f32 %v1765_v13  ;;  %2529 = vmatprep.subr.bf16.mxu1 %v4622_v30 }
 0x50e   :  { %4814 = vtanh.f32 %v1757_v15  ;;  %2530 = vmatpush1.bf16.msra.mxu1 %v4620_v7 }
 0x50f   :  { %2531 = vmatprep.subr.bf16.mxu1 %v4628_v32 }
 0x512   :  { %2532 = vmatpush1.bf16.msra.mxu1 %v4626_v24 }
 0x515   :  { %v4809_v50 = vpop.eup %4808 }
 0x516   :  { %v4811_v16 = vpop.eup %4810 }
 0x517   :  { %v4813_v53 = vpop.eup %4812 }
 0x518   :  { %v4815_v17 = vpop.eup %4814  ;;  %v1791_v56 = vpack.c.bf16 %v4813_v53, %v4809_v50 }
 0x519   :  { %v1790_v19 = vpack.c.bf16 %v4815_v17, %v4811_v16 }
 0x51b   :  { %4472 = vmatprep.mubr.msk.bf16.mxu1 %vm626_vm0, %v1790_v19 }
 0x51c   :  { %4473 = vmatmul.mubr.msk.bf16.gmra.mrb[92].mxu1 %vm626_vm0, %v1791_v56 }
 0x5bf   :  { %v4462_v3 = vpop.f32.mrb[80].mxu1 }
 0x5c0   :  { %v1874_v31 = vadd.f32 %v4462_v3, %v6237_v10  ;;  %v1865_v33 = vpop.f32.mrb[81].mxu1  ;;  %v4634_v3 = vld [vmem:[%s7261_s15 + $0xe4] ss:$28 sps:$4 sm:$0xff]  }
 0x5c1   :  { %v1866_v36 = vadd.f32 %v6237_v10, %v1865_v33  ;;  %v4463_v37 = vpop.f32.mrb[82].mxu1  ;;  %v4635_v33 = vld [vmem:[%s7261_s15 + $0xe8] ss:$28 sps:$4 sm:$0xff]   ;;  %2533 = vmatprep.subr.bf16.mxu1 %v4634_v3 }
 0x5c2   :  { %4816 = vtanh.f32 %v1874_v31  ;;  %v1877_v39 = vadd.f32 %v4463_v37, %v6237_v10  ;;  %v1868_v40 = vpop.f32.mrb[83].mxu1  ;;  %v4632_v31 = vld [vmem:[%s7261_s15 + $0xe0] ss:$28 sps:$4 sm:$0xff]  }
 0x5c3   :  { %4818 = vtanh.f32 %v1866_v36  ;;  %v1869_v41 = vadd.f32 %v6237_v10, %v1868_v40  ;;  %2534 = vmatpush1.bf16.msra.mxu1 %v4632_v31  ;;  %v4638_v36 = vld [vmem:[%s7261_s15 + $0x118] ss:$28 sps:$4 sm:$0xff]   ;;  %v4643_v40 = vld [vmem:[%s7261_s15 + $0x124] ss:$28 sps:$4 sm:$0xff]   ;;  %v4675_v31 = vld [vmem:[%s7261_s15 + $0x12c] ss:$28 sps:$4 sm:$0xff]  }
 0x5c4   :  { %4820 = vtanh.f32 %v1877_v39  ;;  %v4640_v37 = vld [vmem:[%s7261_s15 + $0x11c] ss:$28 sps:$4 sm:$0xff]  }
 0x5c5   :  { %4822 = vtanh.f32 %v1869_v41  ;;  %v4641_v39 = vld [vmem:[%s7261_s15 + $0x120] ss:$28 sps:$4 sm:$0xff]   ;;  %v4646_v41 = vld [vmem:[%s7261_s15 + $0x154] ss:$28 sps:$4 sm:$0xff]   ;;  %2535 = vmatprep.subr.bf16.mxu1 %v4640_v37 }
 0x5c6   :  { %v4682_v37 = vld [vmem:[%s7261_s15 + $0x130] ss:$28 sps:$4 sm:$0xff]  }
 0x5c7   :  { %2536 = vmatpush1.bf16.msra.mxu1 %v4638_v36 }
 0x5c8   :  { %2537 = vmatprep.subr.bf16.mxu1 %v4646_v41  ;;  %v4680_v41 = vld [vmem:[%s7261_s15 + $0x164] ss:$28 sps:$4 sm:$0xff]  }
 0x5cc   :  { %v4817_v42 = vpop.eup %4816 }
 0x5cd   :  { %v4819_v43 = vpop.eup %4818 }
 0x5ce   :  { %v4821_v25 = vpop.eup %4820 }
 0x5cf   :  { %v4823_v18 = vpop.eup %4822  ;;  %v1945_v28 = vpack.c.bf16 %v4821_v25, %v4817_v42  ;;  %v4466_v46 = vpop.f32.mrb[84].mxu1  ;;  %v4649_v42 = vld [vmem:[%s7261_s15 + $0x15c] ss:$28 sps:$4 sm:$0xff]  }
 0x5d0   :  { %v1890_v49 = vadd.f32 %v4466_v46, %v6237_v10  ;;  %v1881_v51 = vpop.f32.mrb[85].mxu1  ;;  %v1944_v52 = vpack.c.bf16 %v4823_v18, %v4819_v43  ;;  %v4644_v43 = vld [vmem:[%s7261_s15 + $0x150] ss:$28 sps:$4 sm:$0xff]   ;;  %v4647_v25 = vld [vmem:[%s7261_s15 + $0x158] ss:$28 sps:$4 sm:$0xff]  }
 0x5d1   :  { %v1882_v55 = vadd.f32 %v6237_v10, %v1881_v51  ;;  %v4467_v44 = vpop.f32.mrb[86].mxu1  ;;  %v4652_v18 = vld [vmem:[%s7261_s15 + $0x18c] ss:$28 sps:$4 sm:$0xff]   ;;  %2538 = vmatpush1.bf16.msra.mxu1 %v4644_v43  ;;  %v5329_v51 = vmov 0  }
 0x5d2   :  { %4824 = vtanh.f32 %v1890_v49  ;;  %v1893_v45 = vadd.f32 %v4467_v44, %v6237_v10  ;;  %v1884_v21 = vpop.f32.mrb[87].mxu1  ;;  %4484 = vmatprep.mubr.msk.bf16.mxu0 %vm1294_vm1, %v1944_v52  ;;  %v4650_v46 = vld [vmem:[%s7261_s15 + $0x188] ss:$28 sps:$4 sm:$0xff]   ;;  %2539 = vmatprep.subr.bf16.mxu1 %v4652_v18  ;;  %v4653_v49 = vld [vmem:[%s7261_s15 + $0x190] ss:$28 sps:$4 sm:$0xff]  }
 0x5d3   :  { %4826 = vtanh.f32 %v1882_v55  ;;  %v1885_v57 = vadd.f32 %v6237_v10, %v1884_v21  ;;  %4485 = vmatmul.mubr.msk.bf16.vlgmr.msra.gmra.mrb[96].mxu0 %vm1294_vm1, %v1945_v28  ;;  %v4655_v28 = vld [vmem:[%s7261_s15 + $0x194] ss:$28 sps:$4 sm:$0xff]   ;;  %2557 = vmatprep.mubr.bf16.mxu1 %v5329_v51  ;;  %v6343_v55 = vld [vmem:[%s7263_s14] ss:$0 sm:$0xff]  ;;  %v4686_v43 = vld [vmem:[%s7261_s15 + $0x168] ss:$28 sps:$4 sm:$0xff]  }
 0x5d4   :  { %4828 = vtanh.f32 %v1893_v45  ;;  %2639 = vmatpush1.bf16.msra.mxu0 %v4611_v54  ;;  %v4658_v52 = vld [vmem:[%s7261_s15 + $0x14] ss:$28 sps:$4 sm:$0xff]   ;;  %v4687_v18 = vld [vmem:[%s7261_s15 + $0x1a0] ss:$28 sps:$4 sm:$0xff]  }
 0x5d5   :  { %4830 = vtanh.f32 %v1885_v57  ;;  %2640 = vmatprep.subr.bf16.mxu0 %v4619_v48  ;;  %2540 = vmatpush1.bf16.msra.mxu1 %v4650_v46  ;;  %v4671_v54 = vld [vmem:[%s7261_s15 + $0x18] ss:$28 sps:$4 sm:$0xff]  }
 0x5d6   :  { %2751 = vmatprep.subr.bf16.mxu1 %v4658_v52  ;;  %v4683_v46 = vld [vmem:[%s7261_s15 + $0x198] ss:$28 sps:$4 sm:$0xff]  }
 0x5d8   :  { %2641 = vmatpush1.bf16.msra.mxu0 %v4617_v58 }
 0x5d9   :  { %2642 = vmatprep.subr.bf16.mxu0 %v4625_v59 }
 0x5dc   :  { %v4825_v34 = vpop.eup %4824  ;;  %2643 = vmatpush1.bf16.msra.mxu0 %v4623_v60 }
 0x5dd   :  { %v4827_v0 = vpop.eup %4826  ;;  %2644 = vmatprep.subr.bf16.mxu0 %v4631_v61 }
 0x5de   :  { %v4829_v35 = vpop.eup %4828 }
 0x5df   :  { %v4831_v1 = vpop.eup %4830  ;;  %v4470_v2 = vpop.f32.mrb[88].mxu1  ;;  %v1947_v4 = vpack.c.bf16 %v4829_v35, %v4825_v34 }
 0x5e0   :  { %v1906_v5 = vadd.f32 %v4470_v2, %v6237_v10  ;;  %v1897_v6 = vpop.f32.mrb[89].mxu1  ;;  %v1946_v38 = vpack.c.bf16 %v4831_v1, %v4827_v0  ;;  %2645 = vmatpush1.bf16.msra.mxu0 %v4629_v62  ;;  %v4656_v1 = vld [vmem:[%s7261_s15 + $0x10] ss:$28 sps:$4 sm:$0xff]  }
 0x5e1   :  { %v1898_v8 = vadd.f32 %v6237_v10, %v1897_v6  ;;  %v4471_v9 = vpop.f32.mrb[90].mxu1 }
 0x5e2   :  { %4832 = vtanh.f32 %v1906_v5  ;;  %v1909_v11 = vadd.f32 %v4471_v9, %v6237_v10  ;;  %v1900_v12 = vpop.f32.mrb[91].mxu1  ;;  %4488 = vmatprep.mubr.msk.bf16.mxu0 %vm1294_vm1, %v1946_v38  ;;  %v4661_v38 = vld [vmem:[%s7261_s15 + $0x4c] ss:$28 sps:$4 sm:$0xff]  }
 0x5e3   :  { %4834 = vtanh.f32 %v1898_v8  ;;  %v1901_v47 = vadd.f32 %v6237_v10, %v1900_v12  ;;  %4489 = vmatmul.mubr.msk.bf16.gmra.mrb[100].mxu0 %vm1294_vm1, %v1947_v4 }
 0x5e4   :  { %4836 = vtanh.f32 %v1909_v11 }
 0x5e5   :  { %4838 = vtanh.f32 %v1901_v47  ;;  %v4672_v47 = vld [vmem:[%s7261_s15 + $0x50] ss:$28 sps:$4 sm:$0xff]  }
 0x5ec   :  { %v4833_v13 = vpop.eup %4832 }
 0x5ed   :  { %v4835_v14 = vpop.eup %4834 }
 0x5ee   :  { %v4837_v15 = vpop.eup %4836 }
 0x5ef   :  { %v4839_v50 = vpop.eup %4838  ;;  %v4474_v16 = vpop.f32.mrb[92].mxu1  ;;  %v1949_v53 = vpack.c.bf16 %v4837_v15, %v4833_v13  ;;  %v4664_v15 = vld [vmem:[%s7261_s15 + $0x84] ss:$28 sps:$4 sm:$0xff]  }
 0x5f0   :  { %v1922_v17 = vadd.f32 %v4474_v16, %v6237_v10  ;;  %v1913_v56 = vpop.f32.mrb[93].mxu1  ;;  %v1948_v19 = vpack.c.bf16 %v4839_v50, %v4835_v14  ;;  %v4659_v14 = vld [vmem:[%s7261_s15 + $0x48] ss:$28 sps:$4 sm:$0xff]   ;;  %v4662_v50 = vld [vmem:[%s7261_s15 + $0x80] ss:$28 sps:$4 sm:$0xff]  }
 0x5f1   :  { %v1914_v20 = vadd.f32 %v6237_v10, %v1913_v56  ;;  %v4475_v22 = vpop.f32.mrb[94].mxu1  ;;  %v4676_v16 = vld [vmem:[%s7261_s15 + $0x88] ss:$28 sps:$4 sm:$0xff]  }
 0x5f2   :  { %4840 = vtanh.f32 %v1922_v17  ;;  %v1925_v23 = vadd.f32 %v4475_v22, %v6237_v10  ;;  %v1916_v26 = vpop.f32.mrb[95].mxu1  ;;  %4492 = vmatprep.mubr.msk.bf16.mxu0 %vm1294_vm1, %v1948_v19  ;;  %v4677_v17 = vld [vmem:[%s7261_s15 + $0xc0] ss:$28 sps:$4 sm:$0xff]   ;;  %v4665_v19 = vld [vmem:[%s7261_s15 + $0xb8] ss:$28 sps:$4 sm:$0xff]  }
 0x5f3   :  { %4842 = vtanh.f32 %v1914_v20  ;;  %v1917_v27 = vadd.f32 %v6237_v10, %v1916_v26  ;;  %4493 = vmatmul.mubr.msk.bf16.gmra.mrb[104].mxu0 %vm1294_vm1, %v1949_v53  ;;  %v4637_v10 = vld [vmem:[%s7261_s15 + $0xec] ss:$28 sps:$4 sm:$0xff]   ;;  %v4667_v53 = vld [vmem:[%s7261_s15 + $0xbc] ss:$28 sps:$4 sm:$0xff]   ;;  %v4670_v22 = vld [vmem:[%s7261_s15 + $0xf4] ss:$28 sps:$4 sm:$0xff]  }
 0x5f4   :  { %4844 = vtanh.f32 %v1925_v23  ;;  %2646 = vmatprep.subr.bf16.mxu0 %v4637_v10 }
 0x5f5   :  { %4846 = vtanh.f32 %v1917_v27  ;;  %2647 = vmatpush1.bf16.msra.mxu0 %v4635_v33 }
 0x5f6   :  { %2648 = vmatprep.subr.bf16.mxu0 %v4643_v40  ;;  %v4673_v40 = vld [vmem:[%s7261_s15 + $0x128] ss:$28 sps:$4 sm:$0xff]  }
 0x5f9   :  { %2649 = vmatpush1.bf16.msra.mxu0 %v4641_v39 }
 0x5fa   :  { %2650 = vmatprep.subr.bf16.mxu0 %v4649_v42  ;;  %v4678_v42 = vld [vmem:[%s7261_s15 + $0x160] ss:$28 sps:$4 sm:$0xff]  }
 0x5fc   :  { %v4841_v63 = vpop.eup %4840 }
 0x5fd   :  { %v4843_v29 = vpop.eup %4842  ;;  %2651 = vmatpush1.bf16.msra.mxu0 %v4647_v25  ;;  %v4685_v25 = vld [vmem:[%s7261_s15 + $0x19c] ss:$28 sps:$4 sm:$0xff]  }
 0x5fe   :  { %v4845_v30 = vpop.eup %4844  ;;  %2652 = vmatprep.subr.bf16.mxu0 %v4655_v28 }
 0x5ff   :  { %v4847_v7 = vpop.eup %4846  ;;  %v1951_v32 = vpack.c.bf16 %v4845_v30, %v4841_v63 }
 0x600   :  { %v1950_v24 = vpack.c.bf16 %v4847_v7, %v4843_v29 }
 0x601   :  { %2653 = vmatpush1.bf16.msra.mxu0 %v4653_v49 }
 0x602   :  { %4496 = vmatprep.mubr.msk.bf16.mxu0 %vm1294_vm1, %v1950_v24  ;;  %4500 = vmatprep.subr.bf16.mxu0 %v4671_v54  ;;  %v4681_v24 = vld [vmem:[%s7261_s15 + $0xf8] ss:$28 sps:$4 sm:$0xff]  }
 0x603   :  { %4497 = vmatmul.mubr.msk.bf16.gmra.mrb[108].mxu0 %vm1294_vm1, %v1951_v32  ;;  %v4668_v32 = vld [vmem:[%s7261_s15 + $0xf0] ss:$28 sps:$4 sm:$0xff]  }
 0x604   :  { %2670 = vmatprep.mubr.bf16.mxu0 %v5329_v51 }
 0x6a6   :  { %v4486_v44 = vpop.f32.mrb[96].mxu0 }
 0x6a7   :  { %v2058_v48 = vadd.f32 %v4486_v44, %v6343_v55  ;;  %v2049_v45 = vpop.f32.mrb[97].mxu0 }
 0x6a8   :  { %v2050_v21 = vadd.f32 %v6343_v55, %v2049_v45  ;;  %v4487_v57 = vpop.f32.mrb[98].mxu0 }
 0x6a9   :  { %4848 = vtanh.f32 %v2058_v48  ;;  %v2061_v58 = vadd.f32 %v4487_v57, %v6343_v55  ;;  %v2052_v59 = vpop.f32.mrb[99].mxu0 }
 0x6aa   :  { %4850 = vtanh.f32 %v2050_v21  ;;  %v2053_v60 = vadd.f32 %v6343_v55, %v2052_v59 }
 0x6ab   :  { %4852 = vtanh.f32 %v2061_v58 }
 0x6ac   :  { %4854 = vtanh.f32 %v2053_v60 }
 0x6b3   :  { %v4849_v61 = vpop.eup %4848 }
 0x6b4   :  { %v4851_v34 = vpop.eup %4850 }
 0x6b5   :  { %v4853_v62 = vpop.eup %4852 }
 0x6b6   :  { %v4855_v0 = vpop.eup %4854  ;;  %v4490_v35 = vpop.f32.mrb[100].mxu0  ;;  %v6352_v2 = vpack.c.bf16 %v4853_v62, %v4849_v61 }
 0x6b7   :  { %v2074_v4 = vadd.f32 %v4490_v35, %v6343_v55  ;;  %v2065_v5 = vpop.f32.mrb[101].mxu0  ;;  %v6355_v6 = vpack.c.bf16 %v4855_v0, %v4851_v34 }
 0x6b8   :  { %v2066_v8 = vadd.f32 %v6343_v55, %v2065_v5  ;;  %v4491_v9 = vpop.f32.mrb[102].mxu0 }
 0x6b9   :  { %4856 = vtanh.f32 %v2074_v4  ;;  %v2077_v11 = vadd.f32 %v4491_v9, %v6343_v55  ;;  %v2068_v12 = vpop.f32.mrb[103].mxu0  ;;  %2558 = vmatmul.mubr.bf16.vlgmr.msra.gmra.mrb[96].mxu1 %v6355_v6  ;;  %2671 = vmatmul.mubr.bf16.vlgmr.msra.gmra.mrb[112].mxu0 %v6355_v6 }
 0x6ba   :  { %4858 = vtanh.f32 %v2066_v8  ;;  %v2069_v13 = vadd.f32 %v6343_v55, %v2068_v12  ;;  %2752 = vmatpush1.bf16.msra.mxu1 %v4656_v1  ;;  %2567 = vmatprep.mubr.bf16.mxu1 %v5329_v51  ;;  %v6480_v8 = vld [vmem:[%s7264_s16] sm:$0x7f] }
 0x6bb   :  { %4860 = vtanh.f32 %v2077_v11  ;;  %2680 = vmatprep.mubr.bf16.mxu0 %v5329_v51  ;;  %2753 = vmatprep.subr.bf16.mxu1 %v4661_v38 }
 0x6bc   :  { %4862 = vtanh.f32 %v2069_v13  ;;  %4501 = vmatpush3.bf16.msra.mxu0 %v4671_v54 }
 0x6bd   :  { %4502 = vmatprep.subr.bf16.mxu0 %v4672_v47 }
 0x6be   :  { %2754 = vmatpush1.bf16.msra.mxu1 %v4659_v14 }
 0x6bf   :  { %2755 = vmatprep.subr.bf16.mxu1 %v4664_v15 }
 0x6c0   :  { %4503 = vmatpush3.bf16.msra.mxu0 %v4672_v47 }
 0x6c1   :  { %2568 = vmatmul.mubr.bf16.gmra.mrb[100].mxu1 %v6352_v2  ;;  %2681 = vmatmul.mubr.bf16.gmra.mrb[116].mxu0 %v6352_v2 }
 0x6c2   :  { %2577 = vmatprep.mubr.bf16.mxu1 %v5329_v51  ;;  %2690 = vmatprep.mubr.bf16.mxu0 %v5329_v51 }
 0x6c3   :  { %v4857_v56 = vpop.eup %4856  ;;  %2756 = vmatpush1.bf16.msra.mxu1 %v4662_v50  ;;  %4504 = vmatprep.subr.bf16.mxu0 %v4676_v16 }
 0x6c4   :  { %v4859_v20 = vpop.eup %4858  ;;  %2757 = vmatprep.subr.bf16.mxu1 %v4667_v53  ;;  %4505 = vmatpush3.bf16.msra.mxu0 %v4676_v16 }
 0x6c5   :  { %v4861_v23 = vpop.eup %4860  ;;  %4506 = vmatprep.subr.bf16.mxu0 %v4677_v17 }
 0x6c6   :  { %v4863_v26 = vpop.eup %4862  ;;  %v4494_v27 = vpop.f32.mrb[104].mxu0  ;;  %v6398_v63 = vpack.c.bf16 %v4861_v23, %v4857_v56 }
 0x6c7   :  { %v2090_v29 = vadd.f32 %v4494_v27, %v6343_v55  ;;  %v2081_v30 = vpop.f32.mrb[105].mxu0  ;;  %v6401_v7 = vpack.c.bf16 %v4863_v26, %v4859_v20  ;;  %2758 = vmatpush1.bf16.msra.mxu1 %v4665_v19 }
 0x6c8   :  { %v2082_v3 = vadd.f32 %v6343_v55, %v2081_v30  ;;  %v4495_v10 = vpop.f32.mrb[106].mxu0  ;;  %2759 = vmatprep.subr.bf16.mxu1 %v4670_v22  ;;  %4507 = vmatpush3.bf16.msra.mxu0 %v4677_v17 }
 0x6c9   :  { %4864 = vtanh.f32 %v2090_v29  ;;  %v2093_v33 = vadd.f32 %v4495_v10, %v6343_v55  ;;  %v2084_v36 = vpop.f32.mrb[107].mxu0  ;;  %2578 = vmatmul.mubr.bf16.gmra.mrb[104].mxu1 %v6401_v7  ;;  %2691 = vmatmul.mubr.bf16.gmra.mrb[120].mxu0 %v6401_v7 }
 0x6ca   :  { %4866 = vtanh.f32 %v2082_v3  ;;  %v2085_v39 = vadd.f32 %v6343_v55, %v2084_v36  ;;  %2587 = vmatprep.mubr.bf16.mxu1 %v5329_v51  ;;  %2700 = vmatprep.mubr.bf16.mxu0 %v5329_v51 }
 0x6cb   :  { %4868 = vtanh.f32 %v2093_v33  ;;  %2760 = vmatpush1.bf16.msra.mxu1 %v4668_v32  ;;  %4508 = vmatprep.subr.bf16.mxu0 %v4681_v24 }
 0x6cc   :  { %4870 = vtanh.f32 %v2085_v39  ;;  %2761 = vmatprep.subr.bf16.mxu1 %v4675_v31  ;;  %4509 = vmatpush3.bf16.msra.mxu0 %v4681_v24 }
 0x6cd   :  { %4510 = vmatprep.subr.bf16.mxu0 %v4682_v37 }
 0x6cf   :  { %2762 = vmatpush1.bf16.msra.mxu1 %v4673_v40 }
 0x6d0   :  { %2763 = vmatprep.subr.bf16.mxu1 %v4680_v41  ;;  %4511 = vmatpush3.bf16.msra.mxu0 %v4682_v37 }
 0x6d1   :  { %2588 = vmatmul.mubr.bf16.gmra.mrb[108].mxu1 %v6398_v63  ;;  %2701 = vmatmul.mubr.bf16.gmra.mrb[124].mxu0 %v6398_v63 }
 0x6d2   :  { %2597 = vmatprep.mubr.bf16.mxu1 %v5329_v51  ;;  %2710 = vmatprep.mubr.bf16.mxu0 %v5329_v51 }
 0x6d3   :  { %v4865_v28 = vpop.eup %4864  ;;  %2764 = vmatpush1.bf16.msra.mxu1 %v4678_v42  ;;  %4512 = vmatprep.subr.bf16.mxu0 %v4686_v43 }
 0x6d4   :  { %v4867_v49 = vpop.eup %4866  ;;  %2765 = vmatprep.subr.bf16.mxu1 %v4685_v25  ;;  %4513 = vmatpush3.bf16.msra.mxu0 %v4686_v43 }
 0x6d5   :  { %v4869_v52 = vpop.eup %4868  ;;  %4514 = vmatprep.subr.bf16.mxu0 %v4687_v18 }
 0x6d6   :  { %v4871_v54 = vpop.eup %4870  ;;  %v4498_v44 = vpop.f32.mrb[108].mxu0  ;;  %v2133_v48 = vpack.c.bf16 %v4869_v52, %v4865_v28 }
 0x6d7   :  { %v2106_v45 = vadd.f32 %v4498_v44, %v6343_v55  ;;  %v2097_v21 = vpop.f32.mrb[109].mxu0  ;;  %v2132_v57 = vpack.c.bf16 %v4871_v54, %v4867_v49  ;;  %2766 = vmatpush1.bf16.msra.mxu1 %v4683_v46 }
 0x6d8   :  { %v2098_v58 = vadd.f32 %v6343_v55, %v2097_v21  ;;  %v4499_v59 = vpop.f32.mrb[110].mxu0  ;;  %4515 = vmatpush3.bf16.msra.mxu0 %v4687_v18 }
 0x6d9   :  { %4872 = vtanh.f32 %v2106_v45  ;;  %v2109_v60 = vadd.f32 %v4499_v59, %v6343_v55  ;;  %v2100_v61 = vpop.f32.mrb[111].mxu0  ;;  %2598 = vmatmul.mubr.bf16.gmra.mrb[112].mxu1 %v2132_v57  ;;  %2711 = vmatmul.mubr.bf16.gmra.mrb[128].mxu0 %v2132_v57 }
 0x6da   :  { %4874 = vtanh.f32 %v2098_v58  ;;  %v2101_v34 = vadd.f32 %v6343_v55, %v2100_v61  ;;  %2607 = vmatprep.mubr.bf16.mxu1 %v5329_v51  ;;  %2720 = vmatprep.mubr.bf16.mxu0 %v5329_v51  ;;  %v2202_v55 = vlaneseq }
 0x6db   :  { %4876 = vtanh.f32 %v2109_v60 }
 0x6dc   :  { %4878 = vtanh.f32 %v2101_v34 }
 0x6e1   :  { %2608 = vmatmul.mubr.bf16.gmra.mrb[116].mxu1 %v2133_v48  ;;  %2721 = vmatmul.mubr.bf16.gmra.mrb[132].mxu0 %v2133_v48 }
 0x6e2   :  { %2617 = vmatprep.mubr.bf16.mxu1 %v5329_v51  ;;  %2730 = vmatprep.mubr.bf16.mxu0 %v5329_v51 }
 0x6e3   :  { %v4873_v62 = vpop.eup %4872 }
 0x6e4   :  { %v4875_v0 = vpop.eup %4874 }
 0x6e5   :  { %v4877_v35 = vpop.eup %4876 }
 0x6e6   :  { %v4879_v1 = vpop.eup %4878  ;;  %v2135_v4 = vpack.c.bf16 %v4877_v35, %v4873_v62 }
 0x6e7   :  { %v2134_v5 = vpack.c.bf16 %v4879_v1, %v4875_v0 }
 0x6e9   :  { %2618 = vmatmul.mubr.bf16.gmra.mrb[120].mxu1 %v2134_v5  ;;  %2731 = vmatmul.mubr.bf16.gmra.mrb[136].mxu0 %v2134_v5 }
 0x6ea   :  { %2627 = vmatprep.mubr.bf16.mxu1 %v5329_v51  ;;  %2740 = vmatprep.mubr.bf16.mxu0 %v5329_v51 }
 0x6f1   :  { %2628 = vmatmul.mubr.bf16.gmra.mrb[124].mxu1 %v2135_v4  ;;  %2741 = vmatmul.mubr.bf16.gmra.mrb[140].mxu0 %v2135_v4 }
 0x6f2   :  { %4516 = vmatprep.mubr.bf16.mxu0 %v6355_v6  ;;  %2783 = vmatprep.mubr.bf16.mxu1 %v5329_v51 }
 0x6f9   :  { %2784 = vmatmul.mubr.bf16.vlgmr.msra.gmra.mrb[128].mxu1 %v6355_v6  ;;  %4517 = vmatmul.mubr.bf16.vlgmr.msra.gmra.mrb[144].mxu0 %v6352_v2 }
 0x6fa   :  { %4520 = vmatprep.mubr.bf16.mxu0 %v6401_v7  ;;  %2793 = vmatprep.mubr.bf16.mxu1 %v5329_v51 }
 0x701   :  { %2794 = vmatmul.mubr.bf16.gmra.mrb[132].mxu1 %v6352_v2  ;;  %4521 = vmatmul.mubr.bf16.gmra.mrb[148].mxu0 %v6398_v63  ;;  %v6473_v2 = vshrl.u32 %v2202_v55, 7 }
 0x702   :  { %4524 = vmatprep.mubr.bf16.mxu0 %v2132_v57  ;;  %2803 = vmatprep.mubr.bf16.mxu1 %v5329_v51 }
 0x703   :  { %v2204_v6 = vsub.s32 0, %v6473_v2  ;;  %v2212_v38 = vsub.s32 2, %v6473_v2  ;;  %v2208_v9 = vsub.s32 1, %v6473_v2  ;;  %v2216_v11 = vsub.s32 3, %v6473_v2 }
 0x705   :  { %v6485_v12 = vrot.slane %v6480_v8, %v2204_v6  ;;  %v6491_v47 = vrot.slane %v6480_v8, %v2208_v9  ;;  %v6494_v13 = vrot.slane %v6480_v8, %v2216_v11 }
 0x709   :  { %2804 = vmatmul.mubr.bf16.gmra.mrb[136].mxu1 %v6401_v7  ;;  %4525 = vmatmul.mubr.bf16.gmra.mrb[152].mxu0 %v2133_v48 }
 0x70a   :  { %4528 = vmatprep.mubr.bf16.mxu0 %v2134_v5  ;;  %2813 = vmatprep.mubr.bf16.mxu1 %v5329_v51 }
 0x711   :  { %2814 = vmatmul.mubr.bf16.gmra.mrb[140].mxu1 %v6398_v63  ;;  %4529 = vmatmul.mubr.bf16.gmra.mrb[156].mxu0 %v2135_v4 }
 0x712   :  { %2823 = vmatprep.mubr.bf16.mxu1 %v5329_v51 }
 0x719   :  { %2824 = vmatmul.mubr.bf16.gmra.mrb[144].mxu1 %v2132_v57 }
 0x71a   :  { %2833 = vmatprep.mubr.bf16.mxu1 %v5329_v51 }
 0x721   :  { %2834 = vmatmul.mubr.bf16.gmra.mrb[148].mxu1 %v2133_v48 }
 0x722   :  { %2843 = vmatprep.mubr.bf16.mxu1 %v5329_v51 }
 0x729   :  { %2844 = vmatmul.mubr.bf16.gmra.mrb[152].mxu1 %v2134_v5 }
 0x72a   :  { %2853 = vmatprep.mubr.bf16.mxu1 %v5329_v51  ;;  %v6488_v51 = vrot.slane %v6480_v8, %v2212_v38 }
 0x731   :  { %2854 = vmatmul.mubr.bf16.gmra.mrb[156].mxu1 %v2135_v4 }
 0x78c   :  { %v2559_v14 = vpop.f32.mrb[96].mxu1  ;;  %v2672_v15 = vpop.f32.mrb[112].mxu0 }
 0x78d   :  { %v2560_v50 = vadd.f32 %v2559_v14, %v6485_v12  ;;  %v2673_v16 = vadd.f32 %v2672_v15, %v6488_v51  ;;  %v2561_v53 = vpop.f32.mrb[97].mxu1  ;;  %v2674_v17 = vpop.f32.mrb[113].mxu0 }
 0x78e   :  { %v2562_v56 = vadd.f32 %v2561_v53, %v6491_v47  ;;  %v2675_v19 = vadd.f32 %v2674_v17, %v6494_v13  ;;  %v2563_v20 = vpop.f32.mrb[98].mxu1  ;;  %v2676_v22 = vpop.f32.mrb[114].mxu0 }
 0x78f   :  { %v3931_v23 = vmul.f32 -1.442695, %v2560_v50  ;;  %v3933_v26 = vmul.f32 -1.442695, %v2673_v16  ;;  %v2564_v27 = vadd.f32 %v2563_v20, %v6485_v12  ;;  %v2677_v63 = vadd.f32 %v2676_v22, %v6488_v51  ;;  %v2565_v29 = vpop.f32.mrb[99].mxu1  ;;  %v2678_v30 = vpop.f32.mrb[115].mxu0 }
 0x790   :  { %v3932_v7 = vmul.f32 -1.442695, %v2562_v56  ;;  %v3934_v32 = vmul.f32 -1.442695, %v2675_v19  ;;  %v2566_v24 = vadd.f32 %v2565_v29, %v6491_v47  ;;  %v2679_v3 = vadd.f32 %v2678_v30, %v6494_v13 }
 0x791   :  { %4880 = vpow2.f32 %v3931_v23  ;;  %v3938_v10 = vmul.f32 -1.442695, %v2564_v27  ;;  %v3940_v31 = vmul.f32 -1.442695, %v2677_v63 }
 0x792   :  { %4882 = vpow2.f32 %v3933_v26  ;;  %v3939_v33 = vmul.f32 -1.442695, %v2566_v24  ;;  %v3941_v36 = vmul.f32 -1.442695, %v2679_v3 }
 0x793   :  { %4884 = vpow2.f32 %v3932_v7 }
 0x794   :  { %4886 = vpow2.f32 %v3934_v32  ;;  %v2569_v37 = vpop.f32.mrb[100].mxu1  ;;  %v2682_v39 = vpop.f32.mrb[116].mxu0 }
 0x795   :  { %4888 = vpow2.f32 %v3938_v10  ;;  %v2570_v40 = vadd.f32 %v2569_v37, %v6485_v12  ;;  %v2683_v41 = vadd.f32 %v2682_v39, %v6488_v51  ;;  %v2571_v42 = vpop.f32.mrb[101].mxu1  ;;  %v2684_v43 = vpop.f32.mrb[117].mxu0 }
 0x796   :  { %4890 = vpow2.f32 %v3940_v31  ;;  %v2572_v25 = vadd.f32 %v2571_v42, %v6491_v47  ;;  %v2685_v18 = vadd.f32 %v2684_v43, %v6494_v13  ;;  %v2573_v28 = vpop.f32.mrb[102].mxu1  ;;  %v2686_v46 = vpop.f32.mrb[118].mxu0 }
 0x797   :  { %4892 = vpow2.f32 %v3939_v33  ;;  %v3945_v49 = vmul.f32 -1.442695, %v2570_v40  ;;  %v3947_v52 = vmul.f32 -1.442695, %v2683_v41  ;;  %v2574_v54 = vadd.f32 %v2573_v28, %v6485_v12  ;;  %v2575_v44 = vpop.f32.mrb[103].mxu1  ;;  %v2688_v48 = vpop.f32.mrb[119].mxu0 }
 0x798   :  { %4894 = vpow2.f32 %v3941_v36  ;;  %v3946_v45 = vmul.f32 -1.442695, %v2572_v25  ;;  %v3948_v21 = vmul.f32 -1.442695, %v2685_v18  ;;  %v2687_v22 = vadd.f32 %v2686_v46, %v6488_v51 }
 0x799   :  { %4896 = vpow2.f32 %v3945_v49  ;;  %v3952_v57 = vmul.f32 -1.442695, %v2574_v54  ;;  %v2576_v27 = vadd.f32 %v2575_v44, %v6491_v47  ;;  %v2689_v7 = vadd.f32 %v2688_v48, %v6494_v13 }
 0x79a   :  { %4898 = vpow2.f32 %v3947_v52  ;;  %v3954_v40 = vmul.f32 -1.442695, %v2687_v22 }
 0x79b   :  { %v4881_v58 = vpop.eup %4880  ;;  %4900 = vpow2.f32 %v3946_v45  ;;  %v3953_v28 = vmul.f32 -1.442695, %v2576_v27  ;;  %v3955_v54 = vmul.f32 -1.442695, %v2689_v7 }
 0x79c   :  { %v4883_v59 = vpop.eup %4882  ;;  %v3297_v60 = vadd.f32 1.0, %v4881_v58  ;;  %4902 = vpow2.f32 %v3948_v21  ;;  %v2579_v61 = vpop.f32.mrb[104].mxu1 }
 0x79d   :  { %v2692_v34 = vpop.f32.mrb[120].mxu0  ;;  %v4885_v62 = vpop.eup %4884  ;;  %v3299_v0 = vadd.f32 1.0, %v4883_v59  ;;  %4904 = vpow2.f32 %v3952_v57  ;;  %v2580_v31 = vadd.f32 %v2579_v61, %v6485_v12 }
 0x79e   :  { %v2581_v35 = vpop.f32.mrb[105].mxu1  ;;  %v2694_v1 = vpop.f32.mrb[121].mxu0  ;;  %4906 = vrcp.f32 %v3297_v60  ;;  %v3298_v5 = vadd.f32 1.0, %v4885_v62  ;;  %v2693_v41 = vadd.f32 %v2692_v34, %v6488_v51 }
 0x79f   :  { %v4887_v4 = vpop.eup %4886  ;;  %v2583_v55 = vpop.f32.mrb[106].mxu1  ;;  %4908 = vrcp.f32 %v3299_v0  ;;  %v2582_v46 = vadd.f32 %v2581_v35, %v6491_v47  ;;  %v2695_v44 = vadd.f32 %v2694_v1, %v6494_v13  ;;  %v3959_v45 = vmul.f32 -1.442695, %v2580_v31 }
 0x7a0   :  { %v6509_v6 = vpop.f32.mrb[122].mxu0  ;;  %v4889_v38 = vpop.eup %4888  ;;  %v3300_v9 = vadd.f32 1.0, %v4887_v4  ;;  %4910 = vrcp.f32 %v3298_v5  ;;  %v2584_v21 = vadd.f32 %v2583_v55, %v6485_v12  ;;  %v3961_v58 = vmul.f32 -1.442695, %v2693_v41 }
 0x7a1   :  { %v6511_v11 = vpop.f32.mrb[107].mxu1  ;;  %v4891_v14 = vpop.eup %4890  ;;  %v3304_v15 = vadd.f32 1.0, %v4889_v38  ;;  %v2697_v59 = vadd.f32 %v6509_v6, %v6488_v51  ;;  %v3960_v61 = vmul.f32 -1.442695, %v2582_v46  ;;  %v3962_v1 = vmul.f32 -1.442695, %v2695_v44 }
 0x7a2   :  { %v6513_v50 = vpop.f32.mrb[123].mxu0  ;;  %v4893_v16 = vpop.eup %4892  ;;  %4912 = vrcp.f32 %v3300_v9  ;;  %v3306_v53 = vadd.f32 1.0, %v4891_v14  ;;  %v2586_v34 = vadd.f32 %v6511_v11, %v6491_v47  ;;  %v3966_v38 = vmul.f32 -1.442695, %v2584_v21 }
 0x7a3   :  { %v4895_v17 = vpop.eup %4894  ;;  %4914 = vrcp.f32 %v3304_v15  ;;  %v3305_v56 = vadd.f32 1.0, %v4893_v16  ;;  %v2699_v4 = vadd.f32 %v6513_v50, %v6494_v13  ;;  %v3968_v50 = vmul.f32 -1.442695, %v2697_v59 }
 0x7a4   :  { %v4897_v19 = vpop.eup %4896  ;;  %4916 = vrcp.f32 %v3306_v53  ;;  %v3307_v20 = vadd.f32 1.0, %v4895_v17  ;;  %v2589_v63 = vpop.f32.mrb[108].mxu1 }
 0x7a5   :  { %v4899_v23 = vpop.eup %4898  ;;  %4918 = vrcp.f32 %v3305_v56  ;;  %v3311_v26 = vadd.f32 1.0, %v4897_v19  ;;  %v2702_v32 = vpop.f32.mrb[124].mxu0  ;;  %v2590_v9 = vadd.f32 %v2589_v63, %v6485_v12  ;;  %v3967_v19 = vmul.f32 -1.442695, %v2586_v34 }
 0x7a6   :  { %v4901_v29 = vpop.eup %4900  ;;  %4920 = vrcp.f32 %v3307_v20  ;;  %v3313_v30 = vadd.f32 1.0, %v4899_v23  ;;  %v6518_v24 = vpop.f32.mrb[109].mxu1  ;;  %v2703_v16 = vadd.f32 %v2702_v32, %v6488_v51  ;;  %v3969_v22 = vmul.f32 -1.442695, %v2699_v4 }
 0x7a7   :  { %v4903_v3 = vpop.eup %4902  ;;  %4922 = vrcp.f32 %v3311_v26  ;;  %v3312_v10 = vadd.f32 1.0, %v4901_v29  ;;  %v6521_v33 = vpop.f32.mrb[125].mxu0  ;;  %v3973_v27 = vmul.f32 -1.442695, %v2590_v9  ;;  %v2592_v44 = vadd.f32 %v6518_v24, %v6491_v47 }
 0x7a8   :  { %v6523_v36 = vpop.f32.mrb[110].mxu1  ;;  %v4905_v37 = vpop.eup %4904  ;;  %4924 = vrcp.f32 %v3313_v30  ;;  %v3314_v39 = vadd.f32 1.0, %v4903_v3  ;;  %v3975_v29 = vmul.f32 -1.442695, %v2703_v16 }
 0x7a9   :  { %v6526_v42 = vpop.f32.mrb[126].mxu0  ;;  %v6528_v43 = vpop.f32.mrb[111].mxu1  ;;  %4926 = vrcp.f32 %v3312_v10  ;;  %v3318_v18 = vadd.f32 1.0, %v4905_v37  ;;  %v2594_v16 = vadd.f32 %v6523_v36, %v6485_v12 }
 0x7aa   :  { %v4907_v25 = vpop.eup %4906  ;;  %v6531_v49 = vpop.f32.mrb[127].mxu0  ;;  %4928 = vrcp.f32 %v3314_v39 }
 0x7ab   :  { %v4909_v52 = vpop.eup %4908  ;;  %3633 = vst [vmem:[%s7265_s18] sm:$0xff] %v4907_v25  ;;  %4930 = vrcp.f32 %v3318_v18 }
 0x7ac   :  { %v4911_v48 = vpop.eup %4910  ;;  %3635 = vst [vmem:[%s7265_s18 + $0x10] sm:$0xff] %v4909_v52  ;;  %4932 = vpow2.f32 %v3954_v40  ;;  %v6551_v62 = vpop.f32.mrb[112].mxu1 }
 0x7ad   :  { %v4913_v57 = vpop.eup %4912  ;;  %3634 = vst [vmem:[%s7265_s18 + $0x8] sm:$0xff] %v4911_v48  ;;  %4934 = vpow2.f32 %v3953_v28  ;;  %v6553_v0 = vpop.f32.mrb[128].mxu0 }
 0x7ae   :  { %v4915_v60 = vpop.eup %4914  ;;  %3636 = vst [vmem:[%s7265_s18 + $0x18] sm:$0xff] %v4913_v57  ;;  %4936 = vpow2.f32 %v3955_v54  ;;  %v6560_v5 = vpop.f32.mrb[113].mxu1  ;;  %v2705_v57 = vadd.f32 %v6521_v33, %v6494_v13 }
 0x7af   :  { %v4917_v35 = vpop.eup %4916  ;;  %3640 = vst [vmem:[%s7265_s18 + $0x38] sm:$0xff] %v4915_v60  ;;  %v6562_v55 = vpop.f32.mrb[129].mxu0  ;;  %4938 = vpow2.f32 %v3959_v45 }
 0x7b0   :  { %v4919_v6 = vpop.eup %4918  ;;  %3642 = vst [vmem:[%s7265_s18 + $0x48] sm:$0xff] %v4917_v35  ;;  %v6568_v11 = vpop.f32.mrb[114].mxu1  ;;  %4940 = vpow2.f32 %v3961_v58 }
 0x7b1   :  { %v6570_v14 = vpop.f32.mrb[130].mxu0  ;;  %v4921_v15 = vpop.eup %4920  ;;  %3641 = vst [vmem:[%s7265_s18 + $0x40] sm:$0xff] %v4919_v6  ;;  %4942 = vpow2.f32 %v3960_v61 }
 0x7b2   :  { %v6576_v53 = vpop.f32.mrb[115].mxu1  ;;  %v2718_v17 = vpop.f32.mrb[131].mxu0  ;;  %3643 = vst [vmem:[%s7265_s18 + $0x50] sm:$0xff] %v4921_v15  ;;  %4944 = vpow2.f32 %v3962_v1 }
 0x7b3   :  { %v4923_v56 = vpop.eup %4922  ;;  %v6585_v23 = vadd.f32 %v2718_v17, %v6494_v13  ;;  %4946 = vpow2.f32 %v3966_v38  ;;  %v3974_v38 = vmul.f32 -1.442695, %v2592_v44 }
 0x7b4   :  { %v4925_v20 = vpop.eup %4924  ;;  %3647 = vst [vmem:[%s7265_s18 + $0x70] sm:$0xff] %v4923_v56  ;;  %4948 = vpow2.f32 %v3968_v50  ;;  %v2609_v7 = vpop.f32.mrb[116].mxu1  ;;  %v6627_v50 = vmul.f32 -1.442695, %v2705_v57 }
 0x7b5   :  { %v4927_v26 = vpop.eup %4926  ;;  %3649 = vst [vmem:[%s7265_s18 + $0x80] sm:$0xff] %v4925_v20  ;;  %4950 = vpow2.f32 %v3967_v19  ;;  %v2722_v32 = vpop.f32.mrb[132].mxu0  ;;  %v6600_v10 = vadd.f32 %v2609_v7, %v6485_v12  ;;  %v2707_v20 = vadd.f32 %v6526_v42, %v6488_v51  ;;  %v2596_v42 = vadd.f32 %v6528_v43, %v6491_v47 }
 0x7b6   :  { %v4929_v63 = vpop.eup %4928  ;;  %3648 = vst [vmem:[%s7265_s18 + $0x78] sm:$0xff] %v4927_v26  ;;  %4952 = vpow2.f32 %v3969_v22  ;;  %v6603_v31 = vadd.f32 %v2722_v32, %v6488_v51  ;;  %v2611_v37 = vpop.f32.mrb[117].mxu1 }
 0x7b7   :  { %v4931_v30 = vpop.eup %4930  ;;  %3650 = vst [vmem:[%s7265_s18 + $0x88] sm:$0xff] %v4929_v63  ;;  %v2724_v39 = vpop.f32.mrb[133].mxu0  ;;  %4954 = vpow2.f32 %v3973_v27  ;;  %v6606_v25 = vadd.f32 %v2611_v37, %v6491_v47 }
 0x7b8   :  { %v4933_v3 = vpop.eup %4932  ;;  %3654 = vst [vmem:[%s7265_s18 + $0xa8] sm:$0xff] %v4931_v30  ;;  %v6609_v18 = vadd.f32 %v2724_v39, %v6494_v13  ;;  %v2613_v28 = vpop.f32.mrb[118].mxu1  ;;  %4956 = vpow2.f32 %v3975_v29 }
 0x7b9   :  { %v4935_v40 = vpop.eup %4934  ;;  %v3320_v41 = vadd.f32 1.0, %v4933_v3  ;;  %v2726_v46 = vpop.f32.mrb[134].mxu0  ;;  %v6616_v61 = vadd.f32 %v2613_v28, %v6485_v12 }
 0x7ba   :  { %v4937_v52 = vpop.eup %4936  ;;  %v3319_v54 = vadd.f32 1.0, %v4935_v40  ;;  %v2615_v48 = vpop.f32.mrb[119].mxu1  ;;  %v6619_v34 = vadd.f32 %v2726_v46, %v6488_v51 }
 0x7bb   :  { %v4939_v45 = vpop.eup %4938  ;;  %4958 = vrcp.f32 %v3320_v41  ;;  %v3321_v21 = vadd.f32 1.0, %v4937_v52  ;;  %v2728_v58 = vpop.f32.mrb[135].mxu0  ;;  %v6622_v1 = vadd.f32 %v2615_v48, %v6491_v47  ;;  %v3980_v52 = vmul.f32 -1.442695, %v2594_v16 }
 0x7bc   :  { %v4941_v59 = vpop.eup %4940  ;;  %4960 = vrcp.f32 %v3319_v54  ;;  %v3325_v60 = vadd.f32 1.0, %v4939_v45  ;;  %v6625_v4 = vadd.f32 %v2728_v58, %v6494_v13  ;;  %v2619_v17 = vpop.f32.mrb[120].mxu1  ;;  %v2709_v54 = vadd.f32 %v6531_v49, %v6494_v13 }
 0x7bd   :  { %v4943_v35 = vpop.eup %4942  ;;  %4962 = vrcp.f32 %v3321_v21  ;;  %v3327_v24 = vadd.f32 1.0, %v4941_v59  ;;  %v6634_v22 = vadd.f32 %v2619_v17, %v6485_v12  ;;  %v2732_v26 = vpop.f32.mrb[136].mxu0  ;;  %v2600_v21 = vadd.f32 %v6551_v62, %v6485_v12 }
 0x7be   :  { %v4945_v33 = vpop.eup %4944  ;;  %4964 = vrcp.f32 %v3325_v60  ;;  %v3326_v6 = vadd.f32 1.0, %v4943_v35  ;;  %v2621_v27 = vpop.f32.mrb[121].mxu1  ;;  %v6637_v30 = vadd.f32 %v2732_v26, %v6488_v51  ;;  %v3982_v35 = vmul.f32 -1.442695, %v2707_v20 }
 0x7bf   :  { %v4947_v9 = vpop.eup %4946  ;;  %4966 = vrcp.f32 %v3327_v24  ;;  %v3328_v15 = vadd.f32 1.0, %v4945_v33  ;;  %v6640_v36 = vadd.f32 %v2621_v27, %v6491_v47  ;;  %v2734_v7 = vpop.f32.mrb[137].mxu0  ;;  %v2713_v62 = vadd.f32 %v6553_v0, %v6488_v51 }
 0x7c0   :  { %v4949_v56 = vpop.eup %4948  ;;  %4968 = vrcp.f32 %v3326_v6  ;;  %v3332_v19 = vadd.f32 1.0, %v4947_v9  ;;  %v2623_v32 = vpop.f32.mrb[122].mxu1  ;;  %v6645_v39 = vadd.f32 %v2734_v7, %v6494_v13  ;;  %v3981_v6 = vmul.f32 -1.442695, %v2596_v42 }
 0x7c1   :  { %v4951_v63 = vpop.eup %4950  ;;  %4970 = vrcp.f32 %v3328_v15  ;;  %v3334_v29 = vadd.f32 1.0, %v4949_v56  ;;  %v2736_v40 = vpop.f32.mrb[138].mxu0  ;;  %v6652_v43 = vadd.f32 %v2623_v32, %v6485_v12  ;;  %v3983_v9 = vmul.f32 -1.442695, %v2709_v54 }
 0x7c2   :  { %v4953_v3 = vpop.eup %4952  ;;  %4972 = vrcp.f32 %v3332_v19  ;;  %v3333_v37 = vadd.f32 1.0, %v4951_v63  ;;  %v2625_v41 = vpop.f32.mrb[123].mxu1  ;;  %v6655_v59 = vadd.f32 %v2736_v40, %v6488_v51  ;;  %v2602_v15 = vadd.f32 %v6560_v5, %v6491_v47 }
 0x7c3   :  { %v4955_v28 = vpop.eup %4954  ;;  %4974 = vrcp.f32 %v3334_v29  ;;  %v3335_v46 = vadd.f32 1.0, %v4953_v3  ;;  %v2738_v44 = vpop.f32.mrb[139].mxu0  ;;  %v6658_v60 = vadd.f32 %v2625_v41, %v6491_v47  ;;  %v2715_v0 = vadd.f32 %v6562_v55, %v6494_v13 }
 0x7c4   :  { %v4957_v48 = vpop.eup %4956  ;;  %4976 = vrcp.f32 %v3333_v37  ;;  %v3339_v45 = vadd.f32 1.0, %v4955_v28  ;;  %v6666_v24 = vadd.f32 %v2738_v44, %v6494_v13  ;;  %v2629_v16 = vpop.f32.mrb[124].mxu1  ;;  %v3987_v63 = vmul.f32 -1.442695, %v2600_v21 }
 0x7c5   :  { %v4959_v57 = vpop.eup %4958  ;;  %4978 = vrcp.f32 %v3335_v46  ;;  %v3341_v58 = vadd.f32 1.0, %v4957_v48  ;;  %v2742_v17 = vpop.f32.mrb[140].mxu0  ;;  %v6679_v19 = vadd.f32 %v2629_v16, %v6485_v12  ;;  %v3989_v3 = vmul.f32 -1.442695, %v2713_v62 }
 0x7c6   :  { %v4961_v49 = vpop.eup %4960  ;;  %3656 = vst [vmem:[%s7265_s18 + $0xb8] sm:$0xff] %v4959_v57  ;;  %4980 = vrcp.f32 %v3339_v45  ;;  %v6682_v20 = vadd.f32 %v2742_v17, %v6488_v51  ;;  %v2631_v26 = vpop.f32.mrb[125].mxu1  ;;  %v2604_v37 = vadd.f32 %v6568_v11, %v6485_v12  ;;  %v3988_v28 = vmul.f32 -1.442695, %v2602_v15 }
 0x7c7   :  { %v4963_v33 = vpop.eup %4962  ;;  %3655 = vst [vmem:[%s7265_s18 + $0xb0] sm:$0xff] %v4961_v49  ;;  %4982 = vrcp.f32 %v3341_v58  ;;  %v2744_v27 = vpop.f32.mrb[141].mxu0  ;;  %v2717_v46 = vadd.f32 %v6570_v14, %v6488_v51 }
 0x7c8   :  { %v4965_v56 = vpop.eup %4964  ;;  %3657 = vst [vmem:[%s7265_s18 + $0xc0] sm:$0xff] %v4963_v33  ;;  %4984 = vpow2.f32 %v3974_v38  ;;  %v6689_v38 = vadd.f32 %v2631_v26, %v6491_v47  ;;  %v6692_v55 = vadd.f32 %v2744_v27, %v6494_v13  ;;  %v2633_v29 = vpop.f32.mrb[126].mxu1 }
 0x7c9   :  { %v4967_v5 = vpop.eup %4966  ;;  %3661 = vst [vmem:[%s7265_s18 + $0xe0] sm:$0xff] %v4965_v56  ;;  %4986 = vpow2.f32 %v6627_v50  ;;  %v2746_v7 = vpop.f32.mrb[142].mxu0  ;;  %v6700_v50 = vadd.f32 %v2633_v29, %v6485_v12  ;;  %v2606_v12 = vadd.f32 %v6576_v53, %v6491_v47  ;;  %v3994_v53 = vmul.f32 -1.442695, %v2604_v37 }
 0x7ca   :  { %v4969_v32 = vpop.eup %4968  ;;  %3663 = vst [vmem:[%s7265_s18 + $0xf0] sm:$0xff] %v4967_v5  ;;  %4988 = vpow2.f32 %v3980_v52  ;;  %v2635_v42 = vpop.f32.mrb[127].mxu1  ;;  %v6708_v52 = vadd.f32 %v2746_v7, %v6488_v51  ;;  %v3990_v51 = vmul.f32 -1.442695, %v2715_v0 }
 0x7cb   :  { %v2748_v40 = vpop.f32.mrb[143].mxu0  ;;  %v4971_v41 = vpop.eup %4970  ;;  %3662 = vst [vmem:[%s7265_s18 + $0xe8] sm:$0xff] %v4969_v32  ;;  %4990 = vpow2.f32 %v3982_v35  ;;  %v6716_v11 = vadd.f32 %v2635_v42, %v6491_v47  ;;  %v3996_v47 = vmul.f32 -1.442695, %v2717_v46  ;;  %v3995_v58 = vmul.f32 -1.442695, %v2606_v12 }
 0x7cc   :  { %v4973_v54 = vpop.eup %4972  ;;  %3664 = vst [vmem:[%s7265_s18 + $0xf8] sm:$0xff] %v4971_v41  ;;  %4992 = vpow2.f32 %v3981_v6  ;;  %v6719_v44 = vadd.f32 %v2748_v40, %v6494_v13  ;;  %v6730_v13 = vpop.f32.mrb[128].mxu1 }
 0x7cd   :  { %v4975_v48 = vpop.eup %4974  ;;  %3668 = vst [vmem:[%s7265_s18 + $0x118] sm:$0xff] %v4973_v54  ;;  %4994 = vpow2.f32 %v3983_v9  ;;  %v6732_v21 = vpop.f32.mrb[144].mxu0 }
 0x7ce   :  { %v4977_v14 = vpop.eup %4976  ;;  %3670 = vst [vmem:[%s7265_s18 + $0x128] sm:$0xff] %v4975_v48  ;;  %4996 = vpow2.f32 %v3987_v63  ;;  %v6737_v49 = vpop.f32.mrb[129].mxu1 }
 0x7cf   :  { %v4979_v45 = vpop.eup %4978  ;;  %3669 = vst [vmem:[%s7265_s18 + $0x120] sm:$0xff] %v4977_v14  ;;  %4998 = vpow2.f32 %v3989_v3  ;;  %v6739_v35 = vpop.f32.mrb[145].mxu0 }
 0x7d0   :  { %v4981_v57 = vpop.eup %4980  ;;  %3671 = vst [vmem:[%s7265_s18 + $0x130] sm:$0xff] %v4979_v45  ;;  %5000 = vpow2.f32 %v3988_v28  ;;  %v6744_v33 = vpop.f32.mrb[130].mxu1 }
 0x7d1   :  { %v4983_v62 = vpop.eup %4982  ;;  %3675 = vst [vmem:[%s7265_s18 + $0x150] sm:$0xff] %v4981_v57  ;;  %5002 = vpow2.f32 %v3990_v51  ;;  %v6746_v6 = vpop.f32.mrb[146].mxu0 }
 0x7d2   :  { %v4985_v9 = vpop.eup %4984  ;;  %3677 = vst [vmem:[%s7265_s18 + $0x160] sm:$0xff] %v4983_v62  ;;  %5004 = vpow2.f32 %v3994_v53  ;;  %v6751_v15 = vpop.f32.mrb[131].mxu1 }
 0x7d3   :  { %v6753_v16 = vpop.f32.mrb[147].mxu0  ;;  %v4987_v17 = vpop.eup %4986  ;;  %v3340_v56 = vadd.f32 1.0, %v4985_v9  ;;  %5006 = vpow2.f32 %v3996_v47 }
 0x7d4   :  { %v4989_v0 = vpop.eup %4988  ;;  %v3342_v26 = vadd.f32 1.0, %v4987_v17  ;;  %5008 = vpow2.f32 %v3995_v58  ;;  %v6755_v3 = vpop.f32.mrb[132].mxu1 }
 0x7d5   :  { %v4991_v27 = vpop.eup %4990  ;;  %5010 = vrcp.f32 %v3340_v56  ;;  %v3346_v5 = vadd.f32 1.0, %v4989_v0  ;;  %v6757_v40 = vpop.f32.mrb[148].mxu0 }
 0x7d6   :  { %v4993_v63 = vpop.eup %4992  ;;  %5012 = vrcp.f32 %v3342_v26  ;;  %v3348_v29 = vadd.f32 1.0, %v4991_v27  ;;  %v6759_v41 = vpop.f32.mrb[133].mxu1  ;;  %v3997_v26 = vmul.f32 -1.442695, %v6585_v23 }
 0x7d7   :  { %v4995_v7 = vpop.eup %4994  ;;  %5014 = vrcp.f32 %v3346_v5  ;;  %v3347_v32 = vadd.f32 1.0, %v4993_v63  ;;  %v6761_v54 = vpop.f32.mrb[149].mxu0  ;;  %v4001_v63 = vmul.f32 -1.442695, %v6600_v10  ;;  %v4002_v10 = vmul.f32 -1.442695, %v6606_v25 }
 0x7d8   :  { %v4997_v37 = vpop.eup %4996  ;;  %5016 = vrcp.f32 %v3348_v29  ;;  %v3349_v42 = vadd.f32 1.0, %v4995_v7  ;;  %v6763_v12 = vpop.f32.mrb[134].mxu1  ;;  %v4008_v25 = vmul.f32 -1.442695, %v6616_v61  ;;  %v4009_v61 = vmul.f32 -1.442695, %v6622_v1 }
 0x7d9   :  { %v4999_v28 = vpop.eup %4998  ;;  %5018 = vrcp.f32 %v3347_v32  ;;  %v3353_v46 = vadd.f32 1.0, %v4997_v37  ;;  %v6765_v14 = vpop.f32.mrb[150].mxu0  ;;  %v4003_v32 = vmul.f32 -1.442695, %v6603_v31  ;;  %v4004_v31 = vmul.f32 -1.442695, %v6609_v18 }
 0x7da   :  { %v5001_v48 = vpop.eup %5000  ;;  %5020 = vrcp.f32 %v3349_v42  ;;  %v3355_v51 = vadd.f32 1.0, %v4999_v28  ;;  %v6767_v53 = vpop.f32.mrb[135].mxu1  ;;  %v4010_v18 = vmul.f32 -1.442695, %v6619_v34  ;;  %v4015_v34 = vmul.f32 -1.442695, %v6634_v22 }
 0x7db   :  { %v5003_v45 = vpop.eup %5002  ;;  %5022 = vrcp.f32 %v3353_v46  ;;  %v3354_v47 = vadd.f32 1.0, %v5001_v48  ;;  %v6769_v57 = vpop.f32.mrb[151].mxu0 }
 0x7dc   :  { %v5005_v58 = vpop.eup %5004  ;;  %5024 = vrcp.f32 %v3355_v51  ;;  %v3356_v62 = vadd.f32 1.0, %v5003_v45  ;;  %v6773_v29 = vpop.f32.mrb[136].mxu1 }
 0x7dd   :  { %v5007_v9 = vpop.eup %5006  ;;  %5026 = vrcp.f32 %v3354_v47  ;;  %v3360_v17 = vadd.f32 1.0, %v5005_v58  ;;  %v6779_v37 = vpop.f32.mrb[152].mxu0 }
 0x7de   :  { %v5009_v56 = vpop.eup %5008  ;;  %5028 = vrcp.f32 %v3356_v62  ;;  %v3362_v0 = vadd.f32 1.0, %v5007_v9  ;;  %v6781_v42 = vpop.f32.mrb[137].mxu1  ;;  %v2220_v9 = vsub.s32 4, %v6473_v2 }
 0x7df   :  { %v5011_v27 = vpop.eup %5010  ;;  %5030 = vrcp.f32 %v3360_v17  ;;  %v3361_v5 = vadd.f32 1.0, %v5009_v56  ;;  %v6787_v28 = vpop.f32.mrb[153].mxu0 }
 0x7e0   :  { %v5013_v7 = vpop.eup %5012  ;;  %3676 = vst [vmem:[%s7265_s18 + $0x158] sm:$0xff] %v5011_v27  ;;  %5032 = vrcp.f32 %v3362_v0  ;;  %v6789_v46 = vpop.f32.mrb[138].mxu1  ;;  %v4011_v0 = vmul.f32 -1.442695, %v6625_v4  ;;  %v4017_v4 = vmul.f32 -1.442695, %v6637_v30 }
 0x7e1   :  { %v5015_v23 = vpop.eup %5014  ;;  %3678 = vst [vmem:[%s7265_s18 + $0x168] sm:$0xff] %v5013_v7  ;;  %5034 = vrcp.f32 %v3361_v5  ;;  %v6795_v51 = vpop.f32.mrb[154].mxu0 }
 0x7e2   :  { %v5017_v48 = vpop.eup %5016  ;;  %3682 = vst [vmem:[%s7265_s18 + $0x188] sm:$0xff] %v5015_v23  ;;  %5036 = vpow2.f32 %v3997_v26  ;;  %v6797_v45 = vpop.f32.mrb[139].mxu1  ;;  %v4016_v23 = vmul.f32 -1.442695, %v6640_v36 }
 0x7e3   :  { %v5019_v47 = vpop.eup %5018  ;;  %3684 = vst [vmem:[%s7265_s18 + $0x198] sm:$0xff] %v5017_v48  ;;  %5038 = vpow2.f32 %v4001_v63  ;;  %v6803_v58 = vpop.f32.mrb[155].mxu0  ;;  %v6831_v63 = vrot.slane %v6480_v8, %v2220_v9  ;;  %v4018_v8 = vmul.f32 -1.442695, %v6645_v39 }
 0x7e4   :  { %v5021_v62 = vpop.eup %5020  ;;  %3683 = vst [vmem:[%s7265_s18 + $0x190] sm:$0xff] %v5019_v47  ;;  %5040 = vpow2.f32 %v4003_v32  ;;  %v6822_v27 = vpop.f32.mrb[140].mxu1 }
 0x7e5   :  { %v5023_v17 = vpop.eup %5022  ;;  %3685 = vst [vmem:[%s7265_s18 + $0x1a0] sm:$0xff] %v5021_v62  ;;  %5042 = vpow2.f32 %v4002_v10  ;;  %v6824_v5 = vpop.f32.mrb[156].mxu0 }
 0x7e6   :  { %v5025_v56 = vpop.eup %5024  ;;  %3689 = vst [vmem:[%s7265_s18 + $0x1c0] sm:$0xff] %v5023_v17  ;;  %5044 = vpow2.f32 %v4004_v31  ;;  %v6833_v7 = vpop.f32.mrb[141].mxu1 }
 0x7e7   :  { %v5027_v26 = vpop.eup %5026  ;;  %3691 = vst [vmem:[%s7265_s18 + $0x1d0] sm:$0xff] %v5025_v56  ;;  %5046 = vpow2.f32 %v4008_v25  ;;  %v6835_v32 = vpop.f32.mrb[157].mxu0 }
 0x7e8   :  { %v5029_v1 = vpop.eup %5028  ;;  %3690 = vst [vmem:[%s7265_s18 + $0x1c8] sm:$0xff] %v5027_v26  ;;  %5048 = vpow2.f32 %v4010_v18  ;;  %v2819_v10 = vpop.f32.mrb[142].mxu1 }
 0x7e9   :  { %v5031_v22 = vpop.eup %5030  ;;  %3692 = vst [vmem:[%s7265_s18 + $0x1d8] sm:$0xff] %v5029_v1  ;;  %5050 = vpow2.f32 %v4009_v61  ;;  %v6841_v48 = vpop.f32.mrb[158].mxu0  ;;  %v6848_v30 = vadd.f32 %v2819_v10, %v6831_v63 }
 0x7ea   :  { %v5033_v31 = vpop.eup %5032  ;;  %3696 = vst [vmem:[%s7265_s18 + $0x1f8] sm:$0xff] %v5031_v22  ;;  %5052 = vpow2.f32 %v4011_v0  ;;  %v6850_v47 = vpop.f32.mrb[143].mxu1 }
 0x7eb   :  { %v6852_v25 = vpop.f32.mrb[159].mxu0  ;;  %v5035_v62 = vpop.eup %5034  ;;  %3698 = vst [vmem:[%s7265_s18 + $0x208] sm:$0xff] %v5033_v31  ;;  %5054 = vpow2.f32 %v4015_v34 }
 0x7ec   :  { %v5037_v36 = vpop.eup %5036  ;;  %3697 = vst [vmem:[%s7265_s18 + $0x200] sm:$0xff] %v5035_v62  ;;  %5056 = vpow2.f32 %v4017_v4  ;;  %v2825_v0 = vpop.f32.mrb[144].mxu1 }
 0x7ed   :  { %v5039_v39 = vpop.eup %5038  ;;  %v3363_v18 = vadd.f32 1.0, %v5037_v36  ;;  %5058 = vpow2.f32 %v4016_v23  ;;  %v6861_v34 = vadd.f32 %v2825_v0, %v6831_v63  ;;  %v6863_v22 = vpop.f32.mrb[145].mxu1 }
 0x7ee   :  { %v5041_v9 = vpop.eup %5040  ;;  %v3367_v17 = vadd.f32 1.0, %v5039_v39  ;;  %5060 = vpow2.f32 %v4018_v8  ;;  %v2829_v31 = vpop.f32.mrb[146].mxu1 }
 0x7ef   :  { %v5043_v61 = vpop.eup %5042  ;;  %5062 = vrcp.f32 %v3363_v18  ;;  %v3369_v56 = vadd.f32 1.0, %v5041_v9  ;;  %7275 = vst [vmem:[#allocation2_spill] sm:$0xff] %v6861_v34  ;;  %v6866_v8 = vadd.f32 %v2829_v31, %v6831_v63  ;;  %v6868_v36 = vpop.f32.mrb[147].mxu1 }
 0x7f0   :  { %v5045_v26 = vpop.eup %5044  ;;  %5064 = vrcp.f32 %v3367_v17  ;;  %v3368_v1 = vadd.f32 1.0, %v5043_v61  ;;  %7277 = vst [vmem:[#allocation4_spill] sm:$0xff] %v6868_v36 }
 0x7f1   :  { %v5047_v10 = vpop.eup %5046  ;;  %5066 = vrcp.f32 %v3369_v56  ;;  %v3370_v4 = vadd.f32 1.0, %v5045_v26  ;;  %7276 = vst [vmem:[#allocation3_spill] sm:$0xff] %v6866_v8  ;;  %v2224_v56 = vsub.s32 5, %v6473_v2 }
 0x7f2   :  { %v5049_v23 = vpop.eup %5048  ;;  %5068 = vrcp.f32 %v3368_v1  ;;  %v3374_v62 = vadd.f32 1.0, %v5047_v10 }
 0x7f3   :  { %v5051_v39 = vpop.eup %5050  ;;  %5070 = vrcp.f32 %v3370_v4  ;;  %v3376_v18 = vadd.f32 1.0, %v5049_v23  ;;  %v4022_v4 = vmul.f32 -1.442695, %v6652_v43 }
 0x7f4   :  { %v5053_v9 = vpop.eup %5052  ;;  %5072 = vrcp.f32 %v3374_v62  ;;  %v3375_v17 = vadd.f32 1.0, %v5051_v39  ;;  %v2835_v8 = vpop.f32.mrb[148].mxu1 }
 0x7f5   :  { %v5055_v61 = vpop.eup %5054  ;;  %5074 = vrcp.f32 %v3376_v18  ;;  %v3377_v0 = vadd.f32 1.0, %v5053_v9  ;;  %v6873_v23 = vadd.f32 %v2835_v8, %v6831_v63  ;;  %v6875_v62 = vpop.f32.mrb[149].mxu1  ;;  %v4024_v9 = vmul.f32 -1.442695, %v6655_v59 }
 0x7f6   :  { %v5057_v26 = vpop.eup %5056  ;;  %5076 = vrcp.f32 %v3375_v17  ;;  %v3381_v1 = vadd.f32 1.0, %v5055_v61  ;;  %v6881_v17 = vld [vmem:[%s7264_s16] sm:$0x7f]  ;;  %v4023_v8 = vmul.f32 -1.442695, %v6658_v60 }
 0x7f7   :  { %v5059_v10 = vpop.eup %5058  ;;  %5078 = vrcp.f32 %v3377_v0  ;;  %v3383_v31 = vadd.f32 1.0, %v5057_v26  ;;  %v6884_v61 = vrot.slane %v6881_v17, %v2224_v56  ;;  %v2839_v0 = vpop.f32.mrb[150].mxu1  ;;  %v4025_v56 = vmul.f32 -1.442695, %v6666_v24 }
 0x7f8   :  { %v5061_v34 = vpop.eup %5060  ;;  %5080 = vrcp.f32 %v3381_v1  ;;  %v3382_v36 = vadd.f32 1.0, %v5059_v10  ;;  %v2841_v59 = vpop.f32.mrb[151].mxu1  ;;  %v4029_v60 = vmul.f32 -1.442695, %v6679_v19  ;;  %v4032_v19 = vmul.f32 -1.442695, %v6692_v55 }
 0x7f9   :  { %v5063_v39 = vpop.eup %5062  ;;  %5082 = vrcp.f32 %v3383_v31  ;;  %v3384_v18 = vadd.f32 1.0, %v5061_v34  ;;  %v6891_v34 = vadd.f32 %v2839_v0, %v6831_v63  ;;  %v6898_v1 = vadd.f32 %v2841_v59, %v6884_v61 }
 0x7fa   :  { %v5065_v43 = vpop.eup %5064  ;;  %3699 = vst [vmem:[%s7265_s18 + $0x210] sm:$0xff] %v5063_v39  ;;  %5084 = vrcp.f32 %v3382_v36  ;;  %v4031_v31 = vmul.f32 -1.442695, %v6682_v20  ;;  %v4030_v39 = vmul.f32 -1.442695, %v6689_v38  ;;  %v2786_v38 = vadd.f32 %v6730_v13, %v6831_v63 }
 0x7fb   :  { %v5067_v26 = vpop.eup %5066  ;;  %3703 = vst [vmem:[%s7265_s18 + $0x230] sm:$0xff] %v5065_v43  ;;  %5086 = vrcp.f32 %v3384_v18  ;;  %v4036_v20 = vmul.f32 -1.442695, %v6700_v50  ;;  %v4038_v55 = vmul.f32 -1.442695, %v6708_v52 }
 0x7fc   :  { %v5069_v10 = vpop.eup %5068  ;;  %3705 = vst [vmem:[%s7265_s18 + $0x240] sm:$0xff] %v5067_v26  ;;  %5088 = vpow2.f32 %v4022_v4  ;;  %v2845_v4 = vpop.f32.mrb[152].mxu1  ;;  %v4037_v13 = vmul.f32 -1.442695, %v6716_v11  ;;  %v4039_v52 = vmul.f32 -1.442695, %v6719_v44 }
 0x7fd   :  { %v5071_v36 = vpop.eup %5070  ;;  %3704 = vst [vmem:[%s7265_s18 + $0x238] sm:$0xff] %v5069_v10  ;;  %5090 = vpow2.f32 %v4024_v9  ;;  %v6923_v0 = vadd.f32 %v2845_v4, %v6831_v63  ;;  %v2847_v43 = vpop.f32.mrb[153].mxu1  ;;  %v3935_v11 = vmul.f32 -1.442695, %v2786_v38  ;;  %v2228_v44 = vsub.s32 6, %v6473_v2 }
 0x7fe   :  { %v5073_v24 = vpop.eup %5072  ;;  %3706 = vst [vmem:[%s7265_s18 + $0x248] sm:$0xff] %v5071_v36  ;;  %5092 = vpow2.f32 %v4023_v8  ;;  %v6930_v59 = vadd.f32 %v2847_v43, %v6884_v61  ;;  %v2849_v26 = vpop.f32.mrb[154].mxu1 }
 0x7ff   :  { %v5075_v18 = vpop.eup %5074  ;;  %3710 = vst [vmem:[%s7265_s18 + $0x268] sm:$0xff] %v5073_v24  ;;  %5094 = vpow2.f32 %v4025_v56  ;;  %v6937_v56 = vadd.f32 %v2849_v26, %v6831_v63  ;;  %v2851_v10 = vpop.f32.mrb[155].mxu1 }
 0x800   :  { %v5077_v9 = vpop.eup %5076  ;;  %3712 = vst [vmem:[%s7265_s18 + $0x278] sm:$0xff] %v5075_v18  ;;  %5096 = vpow2.f32 %v4029_v60  ;;  %v6944_v36 = vadd.f32 %v2851_v10, %v6884_v61  ;;  %v6963_v10 = vrot.slane %v6881_v17, %v2228_v44 }
 0x801   :  { %v5079_v8 = vpop.eup %5078  ;;  %3711 = vst [vmem:[%s7265_s18 + $0x270] sm:$0xff] %v5077_v9  ;;  %5098 = vpow2.f32 %v4031_v31 }
 0x802   :  { %v5081_v50 = vpop.eup %5080  ;;  %3713 = vst [vmem:[%s7265_s18 + $0x280] sm:$0xff] %v5079_v8  ;;  %5100 = vpow2.f32 %v4030_v39  ;;  %v2907_v44 = vadd.f32 %v6732_v21, %v6963_v10 }
 0x803   :  { %v5083_v60 = vpop.eup %5082  ;;  %3717 = vst [vmem:[%s7265_s18 + $0x2a0] sm:$0xff] %v5081_v50  ;;  %5102 = vpow2.f32 %v4032_v19 }
 0x804   :  { %v5085_v31 = vpop.eup %5084  ;;  %3719 = vst [vmem:[%s7265_s18 + $0x2b0] sm:$0xff] %v5083_v60  ;;  %5104 = vpow2.f32 %v4036_v20  ;;  %v2855_v4 = vpop.f32.mrb[156].mxu1 }
 0x805   :  { %v5087_v24 = vpop.eup %5086  ;;  %3718 = vst [vmem:[%s7265_s18 + $0x2a8] sm:$0xff] %v5085_v31  ;;  %5106 = vpow2.f32 %v4038_v55  ;;  %v6957_v38 = vadd.f32 %v2855_v4, %v6831_v63  ;;  %v2857_v43 = vpop.f32.mrb[157].mxu1 }
 0x806   :  { %v5089_v39 = vpop.eup %5088  ;;  %3720 = vst [vmem:[%s7265_s18 + $0x2b8] sm:$0xff] %v5087_v24  ;;  %5108 = vpow2.f32 %v4037_v13  ;;  %v6960_v26 = vadd.f32 %v2857_v43, %v6884_v61  ;;  %v2859_v50 = vpop.f32.mrb[158].mxu1 }
 0x807   :  { %v5091_v18 = vpop.eup %5090  ;;  %v3388_v19 = vadd.f32 1.0, %v5089_v39  ;;  %5110 = vpow2.f32 %v4039_v52  ;;  %v6966_v60 = vadd.f32 %v2859_v50, %v6831_v63  ;;  %v2861_v52 = vpop.f32.mrb[159].mxu1 }
 0x808   :  { %v5093_v9 = vpop.eup %5092  ;;  %v3390_v20 = vadd.f32 1.0, %v5091_v18  ;;  %5112 = vpow2.f32 %v3935_v11  ;;  %v6969_v24 = vadd.f32 %v2861_v52, %v6884_v61 }
 0x809   :  { %v5095_v8 = vpop.eup %5094  ;;  %5114 = vrcp.f32 %v3388_v19  ;;  %v3389_v55 = vadd.f32 1.0, %v5093_v9 }
 0x80a   :  { %v5097_v13 = vpop.eup %5096  ;;  %5116 = vrcp.f32 %v3390_v20  ;;  %v3391_v2 = vadd.f32 1.0, %v5095_v8  ;;  %v2788_v8 = vadd.f32 %v6737_v49, %v6884_v61 }
 0x80b   :  { %v5099_v31 = vpop.eup %5098  ;;  %5118 = vrcp.f32 %v3389_v55  ;;  %v3395_v11 = vadd.f32 1.0, %v5097_v13  ;;  %v2899_v13 = vadd.f32 %v6739_v35, %v6963_v10  ;;  %v2792_v35 = vadd.f32 %v6751_v15, %v6884_v61 }
 0x80c   :  { %v5101_v39 = vpop.eup %5100  ;;  %5120 = vrcp.f32 %v3391_v2  ;;  %v3397_v18 = vadd.f32 1.0, %v5099_v31  ;;  %v2790_v31 = vadd.f32 %v6744_v33, %v6831_v63  ;;  %v2796_v15 = vadd.f32 %v6755_v3, %v6831_v63 }
 0x80d   :  { %v5103_v19 = vpop.eup %5102  ;;  %5122 = vrcp.f32 %v3395_v11  ;;  %v3396_v4 = vadd.f32 1.0, %v5101_v39  ;;  %v3951_v39 = vmul.f32 -1.442695, %v2907_v44  ;;  %v3937_v33 = vmul.f32 -1.442695, %v2899_v13 }
 0x80e   :  { %v5105_v9 = vpop.eup %5104  ;;  %5124 = vrcp.f32 %v3397_v18  ;;  %v3398_v17 = vadd.f32 1.0, %v5103_v19  ;;  %v2910_v18 = vadd.f32 %v6746_v6, %v6963_v10  ;;  %v3942_v6 = vmul.f32 -1.442695, %v2790_v31 }
 0x80f   :  { %v5107_v20 = vpop.eup %5106  ;;  %5126 = vrcp.f32 %v3396_v4  ;;  %v3402_v43 = vadd.f32 1.0, %v5105_v9  ;;  %v3936_v4 = vmul.f32 -1.442695, %v2788_v8  ;;  %v2798_v3 = vadd.f32 %v6759_v41, %v6884_v61 }
 0x810   :  { %v5109_v55 = vpop.eup %5108  ;;  %5128 = vrcp.f32 %v3398_v17  ;;  %v3404_v50 = vadd.f32 1.0, %v5107_v20  ;;  %v2902_v17 = vadd.f32 %v6753_v16, %v6963_v10  ;;  %v2923_v16 = vadd.f32 %v6757_v40, %v6963_v10 }
 0x811   :  { %v5111_v2 = vpop.eup %5110  ;;  %5130 = vrcp.f32 %v3402_v43  ;;  %v3403_v52 = vadd.f32 1.0, %v5109_v55  ;;  %v3958_v43 = vmul.f32 -1.442695, %v2910_v18  ;;  %v3943_v55 = vmul.f32 -1.442695, %v2792_v35 }
 0x812   :  { %v5113_v11 = vpop.eup %5112  ;;  %5132 = vrcp.f32 %v3404_v50  ;;  %v3405_v21 = vadd.f32 1.0, %v5111_v2  ;;  %v3944_v13 = vmul.f32 -1.442695, %v2902_v17  ;;  %v2915_v40 = vadd.f32 %v6761_v54, %v6963_v10 }
 0x813   :  { %v5115_v49 = vpop.eup %5114  ;;  %5134 = vrcp.f32 %v3403_v52  ;;  %v3301_v19 = vadd.f32 1.0, %v5113_v11  ;;  %v3949_v52 = vmul.f32 -1.442695, %v2796_v15  ;;  %v2800_v41 = vadd.f32 %v6763_v12, %v6831_v63 }
 0x814   :  { %v5117_v9 = vpop.eup %5116  ;;  %3724 = vst [vmem:[%s7265_s18 + $0x2d8] sm:$0xff] %v5115_v49  ;;  %5136 = vrcp.f32 %v3405_v21  ;;  %v3979_v11 = vmul.f32 -1.442695, %v2923_v16  ;;  %v2926_v54 = vadd.f32 %v6765_v14, %v6963_v10  ;;  %v3965_v12 = vmul.f32 -1.442695, %v2915_v40 }
 0x815   :  { %v5119_v44 = vpop.eup %5118  ;;  %3726 = vst [vmem:[%s7265_s18 + $0x2e8] sm:$0xff] %v5117_v9  ;;  %5138 = vrcp.f32 %v3301_v19  ;;  %v3956_v14 = vmul.f32 -1.442695, %v2800_v41  ;;  %v2802_v41 = vadd.f32 %v6767_v53, %v6884_v61 }
 0x816   :  { %v5121_v20 = vpop.eup %5120  ;;  %3725 = vst [vmem:[%s7265_s18 + $0x2e0] sm:$0xff] %v5119_v44  ;;  %5140 = vpow2.f32 %v3951_v39  ;;  %v3950_v39 = vmul.f32 -1.442695, %v2798_v3 }
 0x817   :  { %v5123_v8 = vpop.eup %5122  ;;  %3727 = vst [vmem:[%s7265_s18 + $0x2f0] sm:$0xff] %v5121_v20  ;;  %5142 = vpow2.f32 %v3936_v4  ;;  %v3986_v4 = vmul.f32 -1.442695, %v2926_v54  ;;  %v2918_v54 = vadd.f32 %v6769_v57, %v6963_v10 }
 0x818   :  { %v5125_v50 = vpop.eup %5124  ;;  %3731 = vst [vmem:[%s7265_s18 + $0x310] sm:$0xff] %v5123_v8  ;;  %5144 = vpow2.f32 %v3937_v33 }
 0x819   :  { %v5127_v2 = vpop.eup %5126  ;;  %3733 = vst [vmem:[%s7265_s18 + $0x320] sm:$0xff] %v5125_v50  ;;  %5146 = vpow2.f32 %v3942_v6 }
 0x81a   :  { %v5129_v31 = vpop.eup %5128  ;;  %3732 = vst [vmem:[%s7265_s18 + $0x318] sm:$0xff] %v5127_v2  ;;  %5148 = vpow2.f32 %v3958_v43 }
 0x81b   :  { %v5131_v21 = vpop.eup %5130  ;;  %3734 = vst [vmem:[%s7265_s18 + $0x328] sm:$0xff] %v5129_v31  ;;  %5150 = vpow2.f32 %v3943_v55 }
 0x81c   :  { %v5133_v18 = vpop.eup %5132  ;;  %3738 = vst [vmem:[%s7265_s18 + $0x348] sm:$0xff] %v5131_v21  ;;  %5152 = vpow2.f32 %v3944_v13 }
 0x81d   :  { %v5135_v49 = vpop.eup %5134  ;;  %3740 = vst [vmem:[%s7265_s18 + $0x358] sm:$0xff] %v5133_v18  ;;  %5154 = vpow2.f32 %v3949_v52  ;;  %v2806_v18 = vadd.f32 %v6773_v29, %v6831_v63  ;;  %v2931_v29 = vadd.f32 %v6787_v28, %v6963_v10  ;;  %v2942_v28 = vadd.f32 %v6795_v51, %v6963_v10 }
 0x81e   :  { %v5137_v19 = vpop.eup %5136  ;;  %3739 = vst [vmem:[%s7265_s18 + $0x350] sm:$0xff] %v5135_v49  ;;  %5156 = vpow2.f32 %v3979_v11  ;;  %v2934_v51 = vadd.f32 %v6803_v58, %v6963_v10  ;;  %v2955_v58 = vadd.f32 %v6824_v5, %v6963_v10 }
 0x81f   :  { %v5139_v35 = vpop.eup %5138  ;;  %3741 = vst [vmem:[%s7265_s18 + $0x360] sm:$0xff] %v5137_v19  ;;  %5158 = vpow2.f32 %v3950_v39 }
 0x820   :  { %v5141_v9 = vpop.eup %5140  ;;  %3637 = vst [vmem:[%s7265_s18 + $0x20] sm:$0xff] %v5139_v35  ;;  %5160 = vpow2.f32 %v3965_v12  ;;  %v2808_v35 = vadd.f32 %v6781_v42, %v6884_v61 }
 0x821   :  { %v5143_v33 = vpop.eup %5142  ;;  %v3317_v17 = vadd.f32 1.0, %v5141_v9  ;;  %5162 = vpow2.f32 %v3956_v14  ;;  %v2939_v14 = vadd.f32 %v6779_v37, %v6963_v10  ;;  %v3963_v37 = vmul.f32 -1.442695, %v2806_v18 }
 0x822   :  { %v5145_v44 = vpop.eup %5144  ;;  %v3302_v6 = vadd.f32 1.0, %v5143_v33  ;;  %5164 = vpow2.f32 %v3986_v4  ;;  %v3957_v4 = vmul.f32 -1.442695, %v2802_v41  ;;  %v3972_v33 = vmul.f32 -1.442695, %v2918_v54 }
 0x823   :  { %v5147_v15 = vpop.eup %5146  ;;  %5166 = vrcp.f32 %v3317_v17  ;;  %v3303_v20 = vadd.f32 1.0, %v5145_v44  ;;  %v2810_v44 = vadd.f32 %v6789_v46, %v6831_v63  ;;  %v4007_v42 = vmul.f32 -1.442695, %v2939_v14 }
 0x824   :  { %v5149_v43 = vpop.eup %5148  ;;  %5168 = vrcp.f32 %v3302_v6  ;;  %v3308_v16 = vadd.f32 1.0, %v5147_v15  ;;  %v2812_v46 = vadd.f32 %v6797_v45, %v6884_v61  ;;  %v2816_v45 = vadd.f32 %v6822_v27, %v6831_v63 }
 0x825   :  { %v5151_v8 = vpop.eup %5150  ;;  %5170 = vrcp.f32 %v3303_v20  ;;  %v3324_v55 = vadd.f32 1.0, %v5149_v43  ;;  %v3964_v20 = vmul.f32 -1.442695, %v2808_v35  ;;  %v2818_v27 = vadd.f32 %v6833_v7, %v6884_v61 }
 0x826   :  { %v5153_v3 = vpop.eup %5152  ;;  %5172 = vrcp.f32 %v3308_v16  ;;  %v3309_v50 = vadd.f32 1.0, %v5151_v8  ;;  %v3993_v16 = vmul.f32 -1.442695, %v2931_v29  ;;  %v3977_v5 = vmul.f32 -1.442695, %v2816_v45 }
 0x827   :  { %v5155_v13 = vpop.eup %5154  ;;  %5174 = vrcp.f32 %v3324_v55  ;;  %v3310_v40 = vadd.f32 1.0, %v5153_v3  ;;  %v3970_v55 = vmul.f32 -1.442695, %v2810_v44  ;;  %v4035_v7 = vmul.f32 -1.442695, %v2955_v58 }
 0x828   :  { %v5157_v2 = vpop.eup %5156  ;;  %5176 = vrcp.f32 %v3309_v50  ;;  %v3315_v52 = vadd.f32 1.0, %v5155_v13  ;;  %v4014_v50 = vmul.f32 -1.442695, %v2942_v28  ;;  %v3984_v58 = vmul.f32 -1.442695, %v6848_v30 }
 0x829   :  { %v5159_v31 = vpop.eup %5158  ;;  %5178 = vrcp.f32 %v3310_v40  ;;  %v3345_v11 = vadd.f32 1.0, %v5157_v2  ;;  %v3971_v40 = vmul.f32 -1.442695, %v2812_v46  ;;  %v4000_v2 = vmul.f32 -1.442695, %v2934_v51 }
 0x82a   :  { %v5161_v21 = vpop.eup %5160  ;;  %5180 = vrcp.f32 %v3315_v52  ;;  %v3316_v39 = vadd.f32 1.0, %v5159_v31  ;;  %v2958_v46 = vadd.f32 %v6841_v48, %v6963_v10  ;;  %v2822_v51 = vadd.f32 %v6850_v47, %v6884_v61 }
 0x82b   :  { %v5163_v12 = vpop.eup %5162  ;;  %5182 = vrcp.f32 %v3345_v11  ;;  %v3331_v49 = vadd.f32 1.0, %v5161_v21  ;;  %v3978_v11 = vmul.f32 -1.442695, %v2818_v27  ;;  %v2828_v47 = vadd.f32 %v6863_v22, %v6884_v61  ;;  %v7278_v27 = vld [vmem:[#allocation4_spill] sm:$0xff]  ;;  %v7279_v22 = vld [vmem:[#allocation2_spill] sm:$0xff] }
 0x82c   :  { %v5165_v19 = vpop.eup %5164  ;;  %5184 = vrcp.f32 %v3316_v39  ;;  %v3322_v53 = vadd.f32 1.0, %v5163_v12  ;;  %v4042_v48 = vmul.f32 -1.442695, %v2958_v46 }
 0x82d   :  { %v5167_v57 = vpop.eup %5166  ;;  %5186 = vrcp.f32 %v3331_v49  ;;  %v3352_v9 = vadd.f32 1.0, %v5165_v19 }
 0x82e   :  { %v5169_v17 = vpop.eup %5168  ;;  %3653 = vst.msk [vmem:[%s7265_s18 + $0xa0] sm:$0xff] %vm626_vm0, %v5167_v57  ;;  %5188 = vrcp.f32 %v3322_v53 }
 0x82f   :  { %v5171_v6 = vpop.eup %5170  ;;  %3638 = vst [vmem:[%s7265_s18 + $0x28] sm:$0xff] %v5169_v17  ;;  %5190 = vrcp.f32 %v3352_v9 }
 0x830   :  { %v5173_v15 = vpop.eup %5172  ;;  %3639 = vst.msk [vmem:[%s7265_s18 + $0x30] sm:$0xff] %vm626_vm0, %v5171_v6  ;;  %5192 = vpow2.f32 %v3957_v4  ;;  %v2947_v6 = vadd.f32 %v6835_v32, %v6963_v10  ;;  %v2950_v32 = vadd.f32 %v6852_v25, %v6963_v10  ;;  %v3985_v25 = vmul.f32 -1.442695, %v2822_v51 }
 0x831   :  { %v5175_v43 = vpop.eup %5174  ;;  %3644 = vst [vmem:[%s7265_s18 + $0x58] sm:$0xff] %v5173_v15  ;;  %5194 = vpow2.f32 %v3972_v33 }
 0x832   :  { %v5177_v8 = vpop.eup %5176  ;;  %3660 = vst.msk [vmem:[%s7265_s18 + $0xd8] sm:$0xff] %vm626_vm0, %v5175_v43  ;;  %5196 = vpow2.f32 %v3963_v37  ;;  %v4021_v45 = vmul.f32 -1.442695, %v2947_v6  ;;  %v4028_v30 = vmul.f32 -1.442695, %v2950_v32 }
 0x833   :  { %v5179_v3 = vpop.eup %5178  ;;  %3645 = vst [vmem:[%s7265_s18 + $0x60] sm:$0xff] %v5177_v8  ;;  %5198 = vpow2.f32 %v4007_v42 }
 0x834   :  { %v5181_v13 = vpop.eup %5180  ;;  %3646 = vst.msk [vmem:[%s7265_s18 + $0x68] sm:$0xff] %vm626_vm0, %v5179_v3  ;;  %5200 = vpow2.f32 %v3964_v20 }
 0x835   :  { %v5183_v63 = vpop.eup %5182  ;;  %3651 = vst [vmem:[%s7265_s18 + $0x90] sm:$0xff] %v5181_v13  ;;  %5202 = vpow2.f32 %v3993_v16 }
 0x836   :  { %v5185_v52 = vpop.eup %5184  ;;  %3681 = vst.msk [vmem:[%s7265_s18 + $0x180] sm:$0xff] %vm626_vm0, %v5183_v63  ;;  %5204 = vpow2.f32 %v3970_v55  ;;  %v2832_v63 = vadd.f32 %v7278_v27, %v6884_v61 }
 0x837   :  { %v5187_v41 = vpop.eup %5186  ;;  %3652 = vst [vmem:[%s7265_s18 + $0x98] sm:$0xff] %v5185_v52  ;;  %5206 = vpow2.f32 %v4014_v50  ;;  %v3991_v52 = vmul.f32 -1.442695, %v7279_v22 }
 0x838   :  { %v5189_v31 = vpop.eup %5188  ;;  %3667 = vst.msk [vmem:[%s7265_s18 + $0x110] sm:$0xff] %vm626_vm0, %v5187_v41  ;;  %5208 = vpow2.f32 %v3971_v40  ;;  %v3992_v41 = vmul.f32 -1.442695, %v2828_v47 }
 0x839   :  { %v5191_v54 = vpop.eup %5190  ;;  %3658 = vst [vmem:[%s7265_s18 + $0xc8] sm:$0xff] %v5189_v31  ;;  %5210 = vpow2.f32 %v4000_v2 }
 0x83a   :  { %v5193_v21 = vpop.eup %5192  ;;  %3688 = vst.msk [vmem:[%s7265_s18 + $0x1b8] sm:$0xff] %vm626_vm0, %v5191_v54  ;;  %5212 = vpow2.f32 %v3977_v5 }
 0x83b   :  { %v5195_v39 = vpop.eup %5194  ;;  %v3323_v18 = vadd.f32 1.0, %v5193_v21  ;;  %5214 = vpow2.f32 %v4035_v7  ;;  %v2838_v7 = vadd.f32 %v6875_v62, %v6884_v61  ;;  %v4005_v62 = vmul.f32 -1.442695, %v6873_v23 }
 0x83c   :  { %v5197_v12 = vpop.eup %5196  ;;  %v3338_v49 = vadd.f32 1.0, %v5195_v39  ;;  %5216 = vpow2.f32 %v3978_v11  ;;  %v7280_v11 = vld [vmem:[#allocation3_spill] sm:$0xff]  ;;  %v3999_v39 = vmul.f32 -1.442695, %v2832_v63  ;;  %v4013_v23 = vmul.f32 -1.442695, %v6898_v1 }
 0x83d   :  { %v5199_v14 = vpop.eup %5198  ;;  %5218 = vrcp.f32 %v3323_v18  ;;  %v3329_v19 = vadd.f32 1.0, %v5197_v12  ;;  %v3998_v54 = vmul.f32 -1.442695, %v7280_v11  ;;  %v4006_v12 = vmul.f32 -1.442695, %v2838_v7 }
 0x83e   :  { %v5201_v53 = vpop.eup %5200  ;;  %5220 = vrcp.f32 %v3338_v49  ;;  %v3373_v4 = vadd.f32 1.0, %v5199_v14  ;;  %v4012_v14 = vmul.f32 -1.442695, %v6891_v34 }
 0x83f   :  { %v5203_v35 = vpop.eup %5202  ;;  %5222 = vrcp.f32 %v3329_v19  ;;  %v3330_v57 = vadd.f32 1.0, %v5201_v53 }
 0x840   :  { %v5205_v9 = vpop.eup %5204  ;;  %5224 = vrcp.f32 %v3373_v4  ;;  %v3359_v33 = vadd.f32 1.0, %v5203_v35 }
 0x841   :  { %v5207_v29 = vpop.eup %5206  ;;  %5226 = vrcp.f32 %v3330_v57  ;;  %v3336_v17 = vadd.f32 1.0, %v5205_v9 }
 0x842   :  { %v5209_v37 = vpop.eup %5208  ;;  %5228 = vrcp.f32 %v3359_v33  ;;  %v3380_v44 = vadd.f32 1.0, %v5207_v29 }
 0x843   :  { %v5211_v42 = vpop.eup %5210  ;;  %5230 = vrcp.f32 %v3336_v17  ;;  %v3337_v28 = vadd.f32 1.0, %v5209_v37 }
 0x844   :  { %v5213_v15 = vpop.eup %5212  ;;  %5232 = vrcp.f32 %v3380_v44  ;;  %v3366_v20 = vadd.f32 1.0, %v5211_v42 }
 0x845   :  { %v5215_v43 = vpop.eup %5214  ;;  %5234 = vrcp.f32 %v3337_v28  ;;  %v3343_v16 = vadd.f32 1.0, %v5213_v15 }
 0x846   :  { %v5217_v8 = vpop.eup %5216  ;;  %5236 = vrcp.f32 %v3366_v20  ;;  %v3401_v55 = vadd.f32 1.0, %v5215_v43 }
 0x847   :  { %v5219_v3 = vpop.eup %5218  ;;  %5238 = vrcp.f32 %v3343_v16  ;;  %v3344_v50 = vadd.f32 1.0, %v5217_v8 }
 0x848   :  { %v5221_v13 = vpop.eup %5220  ;;  %3659 = vst [vmem:[%s7265_s18 + $0xd0] sm:$0xff] %v5219_v3  ;;  %5240 = vrcp.f32 %v3401_v55 }
 0x849   :  { %v5223_v40 = vpop.eup %5222  ;;  %3674 = vst.msk [vmem:[%s7265_s18 + $0x148] sm:$0xff] %vm626_vm0, %v5221_v13  ;;  %5242 = vrcp.f32 %v3344_v50  ;;  %v4019_v50 = vmul.f32 -1.442695, %v6923_v0  ;;  %v4027_v0 = vmul.f32 -1.442695, %v6944_v36 }
 0x84a   :  { %v5225_v10 = vpop.eup %5224  ;;  %3665 = vst [vmem:[%s7265_s18 + $0x100] sm:$0xff] %v5223_v40  ;;  %5244 = vpow2.f32 %v4021_v45  ;;  %v4026_v40 = vmul.f32 -1.442695, %v6937_v56  ;;  %v4034_v56 = vmul.f32 -1.442695, %v6960_v26 }
 0x84b   :  { %v5227_v2 = vpop.eup %5226  ;;  %3709 = vst.msk [vmem:[%s7265_s18 + $0x260] sm:$0xff] %vm626_vm0, %v5225_v10  ;;  %5246 = vpow2.f32 %v3984_v58  ;;  %v4040_v36 = vmul.f32 -1.442695, %v6966_v60 }
 0x84c   :  { %v5229_v5 = vpop.eup %5228  ;;  %3666 = vst [vmem:[%s7265_s18 + $0x108] sm:$0xff] %v5227_v2  ;;  %5248 = vpow2.f32 %v4042_v48  ;;  %v4020_v48 = vmul.f32 -1.442695, %v6930_v59  ;;  %v4033_v59 = vmul.f32 -1.442695, %v6957_v38 }
 0x84d   :  { %v5231_v31 = vpop.eup %5230  ;;  %3695 = vst.msk [vmem:[%s7265_s18 + $0x1f0] sm:$0xff] %vm626_vm0, %v5229_v5  ;;  %5250 = vpow2.f32 %v3985_v25  ;;  %v4041_v38 = vmul.f32 -1.442695, %v6969_v24 }
 0x84e   :  { %v5233_v21 = vpop.eup %5232  ;;  %3672 = vst [vmem:[%s7265_s18 + $0x138] sm:$0xff] %v5231_v31  ;;  %5252 = vpow2.f32 %v4028_v30 }
 0x84f   :  { %v5235_v18 = vpop.eup %5234  ;;  %3716 = vst.msk [vmem:[%s7265_s18 + $0x298] sm:$0xff] %vm626_vm0, %v5233_v21  ;;  %5254 = vpow2.f32 %v3991_v52 }
 0x850   :  { %v5237_v61 = vpop.eup %5236  ;;  %3673 = vst [vmem:[%s7265_s18 + $0x140] sm:$0xff] %v5235_v18  ;;  %5256 = vpow2.f32 %v3992_v41 }
 0x851   :  { %v5239_v49 = vpop.eup %5238  ;;  %3702 = vst.msk [vmem:[%s7265_s18 + $0x228] sm:$0xff] %vm626_vm0, %v5237_v61  ;;  %5258 = vpow2.f32 %v3998_v54 }
 0x852   :  { %v5241_v19 = vpop.eup %5240  ;;  %3679 = vst [vmem:[%s7265_s18 + $0x170] sm:$0xff] %v5239_v49  ;;  %5260 = vpow2.f32 %v3999_v39 }
 0x853   :  { %v5243_v53 = vpop.eup %5242  ;;  %3737 = vst.msk [vmem:[%s7265_s18 + $0x340] sm:$0xff] %vm626_vm0, %v5241_v19  ;;  %5262 = vpow2.f32 %v4005_v62 }
 0x854   :  { %v5245_v4 = vpop.eup %5244  ;;  %3680 = vst [vmem:[%s7265_s18 + $0x178] sm:$0xff] %v5243_v53  ;;  %5264 = vpow2.f32 %v4006_v12 }
 0x855   :  { %v5247_v34 = vpop.eup %5246  ;;  %v3387_v35 = vadd.f32 1.0, %v5245_v4  ;;  %5266 = vpow2.f32 %v4012_v14 }
 0x856   :  { %v5249_v57 = vpop.eup %5248  ;;  %v3350_v9 = vadd.f32 1.0, %v5247_v34  ;;  %5268 = vpow2.f32 %v4013_v23 }
 0x857   :  { %v5251_v1 = vpop.eup %5250  ;;  %5270 = vrcp.f32 %v3387_v35  ;;  %v3408_v33 = vadd.f32 1.0, %v5249_v57 }
 0x858   :  { %v5253_v29 = vpop.eup %5252  ;;  %5272 = vrcp.f32 %v3350_v9  ;;  %v3351_v17 = vadd.f32 1.0, %v5251_v1 }
 0x859   :  { %v5255_v37 = vpop.eup %5254  ;;  %5274 = vrcp.f32 %v3408_v33  ;;  %v3394_v44 = vadd.f32 1.0, %v5253_v29 }
 0x85a   :  { %v5257_v6 = vpop.eup %5256  ;;  %5276 = vrcp.f32 %v3351_v17  ;;  %v3357_v42 = vadd.f32 1.0, %v5255_v37 }
 0x85b   :  { %v5259_v28 = vpop.eup %5258  ;;  %5278 = vrcp.f32 %v3394_v44  ;;  %v3358_v15 = vadd.f32 1.0, %v5257_v6 }
 0x85c   :  { %v5261_v20 = vpop.eup %5260  ;;  %5280 = vrcp.f32 %v3357_v42  ;;  %v3364_v46 = vadd.f32 1.0, %v5259_v28 }
 0x85d   :  { %v5263_v43 = vpop.eup %5262  ;;  %5282 = vrcp.f32 %v3358_v15  ;;  %v3365_v16 = vadd.f32 1.0, %v5261_v20 }
 0x85e   :  { %v5265_v51 = vpop.eup %5264  ;;  %5284 = vrcp.f32 %v3364_v46  ;;  %v3371_v8 = vadd.f32 1.0, %v5263_v43 }
 0x85f   :  { %v5267_v55 = vpop.eup %5266  ;;  %5286 = vrcp.f32 %v3365_v16  ;;  %v3372_v45 = vadd.f32 1.0, %v5265_v51 }
 0x860   :  { %v5269_v32 = vpop.eup %5268  ;;  %5288 = vrcp.f32 %v3371_v8  ;;  %v3378_v3 = vadd.f32 1.0, %v5267_v55 }
 0x861   :  { %v5271_v58 = vpop.eup %5270  ;;  %5290 = vrcp.f32 %v3372_v45  ;;  %v3379_v13 = vadd.f32 1.0, %v5269_v32 }
 0x862   :  { %v5273_v47 = vpop.eup %5272  ;;  %3723 = vst.msk [vmem:[%s7265_s18 + $0x2d0] sm:$0xff] %vm626_vm0, %v5271_v58  ;;  %5292 = vrcp.f32 %v3378_v3 }
 0x863   :  { %v5275_v25 = vpop.eup %5274  ;;  %3686 = vst [vmem:[%s7265_s18 + $0x1a8] sm:$0xff] %v5273_v47  ;;  %5294 = vrcp.f32 %v3379_v13 }
 0x864   :  { %v5277_v10 = vpop.eup %5276  ;;  %3744 = vst.msk [vmem:[%s7265_s18 + $0x378] sm:$0xff] %vm626_vm0, %v5275_v25  ;;  %5296 = vpow2.f32 %v4019_v50 }
 0x865   :  { %v5279_v30 = vpop.eup %5278  ;;  %3687 = vst [vmem:[%s7265_s18 + $0x1b0] sm:$0xff] %v5277_v10  ;;  %5298 = vpow2.f32 %v4020_v48 }
 0x866   :  { %v5281_v27 = vpop.eup %5280  ;;  %3730 = vst.msk [vmem:[%s7265_s18 + $0x308] sm:$0xff] %vm626_vm0, %v5279_v30  ;;  %5300 = vpow2.f32 %v4026_v40 }
 0x867   :  { %v5283_v63 = vpop.eup %5282  ;;  %3693 = vst [vmem:[%s7265_s18 + $0x1e0] sm:$0xff] %v5281_v27  ;;  %5302 = vpow2.f32 %v4027_v0 }
 0x868   :  { %v5285_v2 = vpop.eup %5284  ;;  %3694 = vst [vmem:[%s7265_s18 + $0x1e8] sm:$0xff] %v5283_v63  ;;  %5304 = vpow2.f32 %v4033_v59 }
 0x869   :  { %v5287_v26 = vpop.eup %5286  ;;  %3700 = vst [vmem:[%s7265_s18 + $0x218] sm:$0xff] %v5285_v2  ;;  %5306 = vpow2.f32 %v4034_v56 }
 0x86a   :  { %v5289_v60 = vpop.eup %5288  ;;  %3701 = vst [vmem:[%s7265_s18 + $0x220] sm:$0xff] %v5287_v26  ;;  %5308 = vpow2.f32 %v4040_v36 }
 0x86b   :  { %v5291_v22 = vpop.eup %5290  ;;  %3707 = vst [vmem:[%s7265_s18 + $0x250] sm:$0xff] %v5289_v60  ;;  %5310 = vpow2.f32 %v4041_v38 }
 0x86c   :  { %v5293_v24 = vpop.eup %5292  ;;  %3708 = vst [vmem:[%s7265_s18 + $0x258] sm:$0xff] %v5291_v22 }
 0x86d   :  { %v5295_v52 = vpop.eup %5294  ;;  %3714 = vst [vmem:[%s7265_s18 + $0x288] sm:$0xff] %v5293_v24 }
 0x86e   :  { %v5297_v5 = vpop.eup %5296  ;;  %3715 = vst [vmem:[%s7265_s18 + $0x290] sm:$0xff] %v5295_v52 }
 0x86f   :  { %v5299_v41 = vpop.eup %5298  ;;  %v3385_v7 = vadd.f32 1.0, %v5297_v5 }
 0x870   :  { %v5301_v31 = vpop.eup %5300  ;;  %v3386_v11 = vadd.f32 1.0, %v5299_v41 }
 0x871   :  { %v5303_v54 = vpop.eup %5302  ;;  %5312 = vrcp.f32 %v3385_v7  ;;  %v3392_v21 = vadd.f32 1.0, %v5301_v31 }
 0x872   :  { %v5305_v39 = vpop.eup %5304  ;;  %5314 = vrcp.f32 %v3386_v11  ;;  %v3393_v18 = vadd.f32 1.0, %v5303_v54 }
 0x873   :  { %v5307_v62 = vpop.eup %5306  ;;  %5316 = vrcp.f32 %v3392_v21  ;;  %v3399_v61 = vadd.f32 1.0, %v5305_v39 }
 0x874   :  { %v5309_v12 = vpop.eup %5308  ;;  %5318 = vrcp.f32 %v3393_v18  ;;  %v3400_v49 = vadd.f32 1.0, %v5307_v62 }
 0x875   :  { %v5311_v14 = vpop.eup %5310  ;;  %5320 = vrcp.f32 %v3399_v61  ;;  %v3406_v19 = vadd.f32 1.0, %v5309_v12 }
 0x876   :  { %5322 = vrcp.f32 %v3400_v49  ;;  %v3407_v23 = vadd.f32 1.0, %v5311_v14 }
 0x877   :  { %5324 = vrcp.f32 %v3406_v19 }
 0x878   :  { %5326 = vrcp.f32 %v3407_v23 }
 0x87b   :  { %v5313_v53 = vpop.eup %5312 }
 0x87c   :  { %v5315_v4 = vpop.eup %5314  ;;  %3721 = vst [vmem:[%s7265_s18 + $0x2c0] sm:$0xff] %v5313_v53 }
 0x87d   :  { %v5317_v34 = vpop.eup %5316  ;;  %3722 = vst [vmem:[%s7265_s18 + $0x2c8] sm:$0xff] %v5315_v4 }
 0x87e   :  { %v5319_v35 = vpop.eup %5318  ;;  %3728 = vst [vmem:[%s7265_s18 + $0x2f8] sm:$0xff] %v5317_v34 }
 0x87f   :  { %v5321_v57 = vpop.eup %5320  ;;  %3729 = vst [vmem:[%s7265_s18 + $0x300] sm:$0xff] %v5319_v35 }
 0x880   :  { %v5323_v9 = vpop.eup %5322  ;;  %3735 = vst [vmem:[%s7265_s18 + $0x330] sm:$0xff] %v5321_v57 }
 0x881   :  { %v5325_v1 = vpop.eup %5324  ;;  %3736 = vst [vmem:[%s7265_s18 + $0x338] sm:$0xff] %v5323_v9 }
 0x882   :  { %v5327_v33 = vpop.eup %5326  ;;  %3742 = vst [vmem:[%s7265_s18 + $0x368] sm:$0xff] %v5325_v1 }
 0x883   :  { %3743 = vst [vmem:[%s7265_s18 + $0x370] sm:$0xff] %v5327_v33 }

</bundles_post_ra>
